<compile_context>
chip_gen: v6e
topology: v6e:2x2x1
jax: 0.10.0
libtpu: 0.0.40
codegen_flags: <defaults>
</compile_context>

<pallas_src>
import jax
import jax.numpy as jnp
from jax.experimental import pallas as pl
from jax.experimental.pallas import tpu as pltpu

# ------------------------------ config ---------------------------------------
D_MODEL = 32
N_HEAD = 4
HEAD_DIM = D_MODEL // N_HEAD
D_FF = 64
NUM_LAYERS = 2
EPS = 1e-5

# Set to jnp.bfloat16 on v6e/v7x at production sizes (f32 accumulation is kept
# via preferred_element_type); f32 here for exact parity with the reference.
MATMUL_OPERAND_DTYPE = jnp.float32

# EUP approximate reciprocal for the softmax denominator; left False so the
# parity assert vs. the f32 reference stays at 1e-4.
APPROX_RECIPROCAL = False


# ------------------------------ kernel math -----------------------------------
def _layernorm(x, gamma, beta):
    mu = jnp.mean(x, axis=-1, keepdims=True)
    var = jnp.mean((x - mu) ** 2, axis=-1, keepdims=True)
    return (x - mu) * jax.lax.rsqrt(var + EPS) * gamma + beta


def _softmax_rows(s):
    s = s - jnp.max(s, axis=-1, keepdims=True)
    p = jnp.exp(s)
    denom = jnp.sum(p, axis=-1, keepdims=True)
    if APPROX_RECIPROCAL:
        return p * pl.reciprocal(denom, approx=True)
    return p / denom


def _mm(a, b):
    """Matmul with configurable operand dtype, f32 accumulation."""
    return jnp.dot(a.astype(MATMUL_OPERAND_DTYPE), b.astype(MATMUL_OPERAND_DTYPE),
                   preferred_element_type=jnp.float32)


def _qkt(q, k):
    """q @ k^T without materializing a transpose (contract last dims)."""
    return jax.lax.dot_general(
        q.astype(MATMUL_OPERAND_DTYPE), k.astype(MATMUL_OPERAND_DTYPE),
        dimension_numbers=(((1,), (1,)), ((), ())),
        preferred_element_type=jnp.float32)


def _build_fused_kernel(*, num_layers, nhead, head_dim, d_model,
                        batch, t_len, s_len,
                        causal_tgt, has_tmask, has_mmask, has_final_norm):
    D, H, HD = d_model, nhead, head_dim
    B, T, S = batch, t_len, s_len

    def kernel(*refs):
        i = 0
        tgt_ref = refs[i]; i += 1
        mem_ref = refs[i]; i += 1
        tmask_ref = mmask_ref = None
        if has_tmask:
            tmask_ref = refs[i]; i += 1
        if has_mmask:
            mmask_ref = refs[i]; i += 1
        (w_qkv, b_qkv, w_o, b_o, w1, b1, w2, b2, ln_g, ln_b) = refs[i:i + 10]
        i += 10
        if has_final_norm:
            fn_g, fn_b = refs[i], refs[i + 1]
            i += 2
        out_ref = refs[i]

        # Whole batch in one step; flatten leading dims so every projection /
        # FFN matmul is a single full-width MXU op over B*T (or B*S) rows.
        x = tgt_ref[...].astype(jnp.float32).reshape(B * T, D)
        mem = mem_ref[...].astype(jnp.float32).reshape(B * S, D)

        # ---- additive target mask, built once (no DMA for the causal case) ----
        if has_tmask:
            tmask = tmask_ref[...].astype(jnp.float32)
        elif causal_tgt:
            r = jax.lax.broadcasted_iota(jnp.int32, (T, T), 0)
            c = jax.lax.broadcasted_iota(jnp.int32, (T, T), 1)
            tmask = jnp.where(r >= c, 0.0, -1e9).astype(jnp.float32)
        else:
            tmask = None
        mmask = mmask_ref[...].astype(jnp.float32) if has_mmask else None

        def attention(xq_flat, xkv_flat, tq, tkv, mask, idx, fused_qkv):
            # idx = layer*2 + (0 self-attn | 1 cross-attn)
            W = w_qkv[idx]        # (D, 3D), 1/sqrt(HD) folded into the q columns
            bb = b_qkv[idx]       # (1, 3D)
            if fused_qkv:
                qkv = _mm(xq_flat, W) + bb                    # (B*tq, 3D)
                q, k, v = qkv[:, :D], qkv[:, D:2 * D], qkv[:, 2 * D:]
            else:
                q = _mm(xq_flat, W[:, :D]) + bb[:, :D]        # (B*tq, D)
                kv = _mm(xkv_flat, W[:, D:]) + bb[:, D:]      # (B*tkv, 2D)
                k, v = kv[:, :D], kv[:, D:]

            ctxs = []
            for b in range(B):                                # static unroll
                qb = q[b * tq:(b + 1) * tq]
                kb = k[b * tkv:(b + 1) * tkv]
                vb = v[b * tkv:(b + 1) * tkv]
                heads = []
                for h in range(H):                            # static unroll
                    qh = qb[:, h * HD:(h + 1) * HD]
                    kh = kb[:, h * HD:(h + 1) * HD]
                    vh = vb[:, h * HD:(h + 1) * HD]
                    s = _qkt(qh, kh)                          # (tq, tkv)
                    if mask is not None:
                        s = s + mask
                    heads.append(_mm(_softmax_rows(s), vh))   # (tq, HD)
                ctxs.append(jnp.concatenate(heads, axis=-1))  # (tq, D)
            ctx = jnp.concatenate(ctxs, axis=0)               # (B*tq, D)
            # single full-width output projection
            return _mm(ctx, w_o[idx]) + b_o[idx]

        # ---- the whole decoder stack, statically unrolled over layers ----
        for layer in range(num_layers):
            sa = attention(x, x, T, T, tmask, layer * 2 + 0, True)
            x = _layernorm(x + sa, ln_g[layer * 3 + 0], ln_b[layer * 3 + 0])

            ca = attention(x, mem, T, S, mmask, layer * 2 + 1, False)
            x = _layernorm(x + ca, ln_g[layer * 3 + 1], ln_b[layer * 3 + 1])

            hmid = jnp.maximum(_mm(x, w1[layer]) + b1[layer], 0.0)
            ff = _mm(hmid, w2[layer]) + b2[layer]
            x = _layernorm(x + ff, ln_g[layer * 3 + 2], ln_b[layer * 3 + 2])

        if has_final_norm:
            x = _layernorm(x, fn_g[...], fn_b[...])

        out_ref[...] = x.reshape(B, T, D).astype(out_ref.dtype)

    return kernel


# ------------------------------ weight packing --------------------------------
def _pack_params(layer_params, d_model, nhead):
    """Pack per-layer dicts into a few lane-dense stacked blobs.

    w_qkv: (L*2, D, 3D)  [Wq*scale | Wk | Wv]     b_qkv: (L*2, 1, 3D)
    w_o  : (L*2, D, D)                            b_o  : (L*2, 1, D)
    """
    hd = d_model // nhead
    scale = 1.0 / (hd ** 0.5)
    w_qkv, b_qkv, w_o, b_o = [], [], [], []
    for p in layer_params:
        for prefix in ("sa", "ca"):
            Wq = jnp.asarray(p[f"{prefix}_wq"], jnp.float32) * scale
            Wk = jnp.asarray(p[f"{prefix}_wk"], jnp.float32)
            Wv = jnp.asarray(p[f"{prefix}_wv"], jnp.float32)
            bq = jnp.asarray(p[f"{prefix}_bq"], jnp.float32).reshape(1, d_model) * scale
            bk = jnp.asarray(p[f"{prefix}_bk"], jnp.float32).reshape(1, d_model)
            bv = jnp.asarray(p[f"{prefix}_bv"], jnp.float32).reshape(1, d_model)
            w_qkv.append(jnp.concatenate([Wq, Wk, Wv], axis=1))     # (D, 3D)
            b_qkv.append(jnp.concatenate([bq, bk, bv], axis=1))     # (1, 3D)
            w_o.append(jnp.asarray(p[f"{prefix}_wo"], jnp.float32))  # (D, D)
            b_o.append(jnp.asarray(p[f"{prefix}_bo"], jnp.float32).reshape(1, d_model))

    w1 = jnp.stack([jnp.asarray(p["w1"], jnp.float32) for p in layer_params])
    b1 = jnp.stack([jnp.asarray(p["b1"], jnp.float32).reshape(1, -1) for p in layer_params])
    w2 = jnp.stack([jnp.asarray(p["w2"], jnp.float32) for p in layer_params])
    b2 = jnp.stack([jnp.asarray(p["b2"], jnp.float32).reshape(1, -1) for p in layer_params])
    ln_g = jnp.stack([jnp.asarray(p[f"g{i}"], jnp.float32).reshape(1, -1)
                      for p in layer_params for i in (1, 2, 3)])
    ln_b = jnp.stack([jnp.asarray(p[f"be{i}"], jnp.float32).reshape(1, -1)
                      for p in layer_params for i in (1, 2, 3)])

    return (jnp.stack(w_qkv), jnp.stack(b_qkv), jnp.stack(w_o), jnp.stack(b_o),
            w1, b1, w2, b2, ln_g, ln_b)


# ------------------------------ wrapper ---------------------------------------
def transformer_decoder(tgt, memory, layer_params, *, tgt_mask=None, memory_mask=None,
                        tgt_is_causal=False, final_norm_params=None):
    """Mirrors TransformerDecoder.forward (loop over layers + optional final norm),
    fused into a single pallas_call (one grid step over the whole batch).

    An explicit tgt_mask always takes precedence; tgt_is_causal only builds the
    causal additive mask in-kernel when tgt_mask is None.  memory_mask=None omits
    the add entirely."""
    B, T, D = tgt.shape
    S = memory.shape[1]
    L = len(layer_params)
    assert D % N_HEAD == 0

    packed = _pack_params(layer_params, D, N_HEAD)

    has_tmask = tgt_mask is not None
    causal_tgt = tgt_is_causal and not has_tmask
    has_mmask = memory_mask is not None
    has_final_norm = final_norm_params is not None

    kernel = _build_fused_kernel(
        num_layers=L, nhead=N_HEAD, head_dim=D // N_HEAD, d_model=D,
        batch=B, t_len=T, s_len=S,
        causal_tgt=causal_tgt, has_tmask=has_tmask,
        has_mmask=has_mmask, has_final_norm=has_final_norm)

    inputs = [tgt, memory]
    in_specs = [
        pl.BlockSpec((B, T, D), lambda i: (0, 0, 0)),
        pl.BlockSpec((B, S, D), lambda i: (0, 0, 0)),
    ]
    if has_tmask:
        inputs.append(tgt_mask.astype(jnp.float32))
        in_specs.append(pl.BlockSpec((T, T), lambda i: (0, 0)))
    if has_mmask:
        inputs.append(memory_mask.astype(jnp.float32))
        in_specs.append(pl.BlockSpec((T, S), lambda i: (0, 0)))
    for arr in packed:
        inputs.append(arr)
        in_specs.append(pl.BlockSpec(tuple(arr.shape),
                                     lambda i, n=arr.ndim: (0,) * n))
    if has_final_norm:
        g, bta = final_norm_params
        g = jnp.asarray(g, jnp.float32).reshape(1, D)
        bta = jnp.asarray(bta, jnp.float32).reshape(1, D)
        inputs += [g, bta]
        in_specs += [pl.BlockSpec((1, D), lambda i: (0, 0)),
                     pl.BlockSpec((1, D), lambda i: (0, 0))]

    # Single grid step: on single-TC v5e/v6e this removes B serial pipeline steps
    # and B copies of the unrolled body; on v7x, grid=(B,) + ("parallel",) can be
    # benchmarked as an alternative to split batch across the two TensorCores.
    return pl.pallas_call(
        kernel,
        out_shape=jax.ShapeDtypeStruct((B, T, D), tgt.dtype),
        grid=(1,),
        in_specs=in_specs,
        out_specs=pl.BlockSpec((B, T, D), lambda i: (0, 0, 0)),
        compiler_params=pltpu.CompilerParams(
            dimension_semantics=("arbitrary",)),
    )(*inputs)


# ------------------------------ params / reference ----------------------------
def init_layer_params(key):
    ks = jax.random.split(key, 16)
    n = lambda k, shape, s=0.1: (s * jax.random.normal(k, shape)).astype(jnp.float32)
    z2 = lambda shape: jnp.zeros(shape, jnp.float32)
    return {
        "sa_wq": n(ks[0], (D_MODEL, D_MODEL)), "sa_wk": n(ks[1], (D_MODEL, D_MODEL)),
        "sa_wv": n(ks[2], (D_MODEL, D_MODEL)), "sa_wo": n(ks[3], (D_MODEL, D_MODEL)),
        "sa_bq": z2((1, D_MODEL)), "sa_bk": z2((1, D_MODEL)),
        "sa_bv": z2((1, D_MODEL)), "sa_bo": z2((1, D_MODEL)),
        "ca_wq": n(ks[4], (D_MODEL, D_MODEL)), "ca_wk": n(ks[5], (D_MODEL, D_MODEL)),
        "ca_wv": n(ks[6], (D_MODEL, D_MODEL)), "ca_wo": n(ks[7], (D_MODEL, D_MODEL)),
        "ca_bq": z2((1, D_MODEL)), "ca_bk": z2((1, D_MODEL)),
        "ca_bv": z2((1, D_MODEL)), "ca_bo": z2((1, D_MODEL)),
        "w1": n(ks[8], (D_MODEL, D_FF)), "b1": n(ks[9], (1, D_FF)),
        "w2": n(ks[10], (D_FF, D_MODEL)), "b2": n(ks[11], (1, D_MODEL)),
        "g1": jnp.ones((1, D_MODEL), jnp.float32), "be1": z2((1, D_MODEL)),
        "g2": jnp.ones((1, D_MODEL), jnp.float32), "be2": z2((1, D_MODEL)),
        "g3": jnp.ones((1, D_MODEL), jnp.float32), "be3": z2((1, D_MODEL)),
    }


def _ref_layer_single(x, m, tmask, mmask, p):
    # pure-JAX reference for one (T, D) sample, same math as nn.TransformerDecoderLayer
    def mha(q_in, kv_in, mask, wq, wk, wv, bq, bk, bv, wo, bo):
        q = q_in @ wq + bq
        k = kv_in @ wk + bk
        v = kv_in @ wv + bv
        scale = 1.0 / (HEAD_DIM ** 0.5)
        outs = []
        for h in range(N_HEAD):
            sl = slice(h * HEAD_DIM, (h + 1) * HEAD_DIM)
            s = (q[:, sl] * scale) @ k[:, sl].T + mask
            outs.append(jax.nn.softmax(s, axis=-1) @ v[:, sl])
        return jnp.concatenate(outs, axis=-1) @ wo + bo

    def ln(y, g, b):
        mu = jnp.mean(y, -1, keepdims=True)
        var = jnp.mean((y - mu) ** 2, -1, keepdims=True)
        return (y - mu) / jnp.sqrt(var + EPS) * g + b

    sa = mha(x, x, tmask, p["sa_wq"], p["sa_wk"], p["sa_wv"],
             p["sa_bq"], p["sa_bk"], p["sa_bv"], p["sa_wo"], p["sa_bo"])
    x = ln(x + sa, p["g1"], p["be1"])
    ca = mha(x, m, mmask, p["ca_wq"], p["ca_wk"], p["ca_wv"],
             p["ca_bq"], p["ca_bk"], p["ca_bv"], p["ca_wo"], p["ca_bo"])
    x = ln(x + ca, p["g2"], p["be2"])
    ff = jnp.maximum(x @ p["w1"] + p["b1"], 0.0) @ p["w2"] + p["b2"]
    return ln(x + ff, p["g3"], p["be3"])


def reference_decoder(tgt, memory, tmask, mmask, layer_params, final_norm_params):
    out = tgt
    for p in layer_params:
        out = jax.vmap(lambda x, m: _ref_layer_single(x, m, tmask, mmask, p))(out, memory)
    if final_norm_params is not None:
        g, b = final_norm_params
        mu = jnp.mean(out, -1, keepdims=True)
        var = jnp.mean((out - mu) ** 2, -1, keepdims=True)
        out = (out - mu) / jnp.sqrt(var + EPS) * g + b
    return out


# ------------------------------ main ------------------------------------------
if __name__ == "__main__":
    B, T, S = 2, 8, 16
    key = jax.random.PRNGKey(0)
    k_tgt, k_mem, k_layers = jax.random.split(key, 3)

    tgt = jax.random.normal(k_tgt, (B, T, D_MODEL), dtype=jnp.float32)
    memory = jax.random.normal(k_mem, (B, S, D_MODEL), dtype=jnp.float32)

    layer_params = [init_layer_params(k)
                    for k in jax.random.split(k_layers, NUM_LAYERS)]
    final_norm_params = (jnp.ones((1, D_MODEL), jnp.float32),
                         jnp.zeros((1, D_MODEL), jnp.float32))

    @jax.jit
    def run(tgt, memory, layer_params, final_norm_params):
        # tgt_mask = causal (built in-kernel), memory_mask = None (omitted).
        return transformer_decoder(tgt, memory, layer_params,
                                   tgt_is_causal=True,
                                   final_norm_params=final_norm_params)

    out = jax.block_until_ready(run(tgt, memory, layer_params, final_norm_params))

    # pure-JAX reference with the equivalent explicit masks
    causal = jnp.where(
        jnp.arange(T)[:, None] >= jnp.arange(T)[None, :], 0.0, -1e9
    ).astype(jnp.float32)
    mem_mask = jnp.zeros((T, S), jnp.float32)
    ref = reference_decoder(tgt, memory, causal, mem_mask,
                            layer_params, final_norm_params)

    assert out.shape == (B, T, D_MODEL)
    assert jnp.allclose(out, ref, atol=1e-4, rtol=1e-4), "mismatch vs JAX reference"

    print("KERNEL_OK")
</pallas_src>

<mosaic_0001>
module attributes {stable_mosaic.version = 11 : i64} {
  func.func @kernel(%arg0: i32, %arg1: memref<2x8x32xf32, #tpu.memory_space<vmem>>, %arg2: memref<2x16x32xf32, #tpu.memory_space<vmem>>, %arg3: memref<4x32x96xf32, #tpu.memory_space<vmem>>, %arg4: memref<4x1x96xf32, #tpu.memory_space<vmem>>, %arg5: memref<4x32x32xf32, #tpu.memory_space<vmem>>, %arg6: memref<4x1x32xf32, #tpu.memory_space<vmem>>, %arg7: memref<2x32x64xf32, #tpu.memory_space<vmem>>, %arg8: memref<2x1x64xf32, #tpu.memory_space<vmem>>, %arg9: memref<2x64x32xf32, #tpu.memory_space<vmem>>, %arg10: memref<2x1x32xf32, #tpu.memory_space<vmem>>, %arg11: memref<6x1x32xf32, #tpu.memory_space<vmem>>, %arg12: memref<6x1x32xf32, #tpu.memory_space<vmem>>, %arg13: memref<1x32xf32, #tpu.memory_space<vmem>>, %arg14: memref<1x32xf32, #tpu.memory_space<vmem>>, %arg15: memref<2x8x32xf32, #tpu.memory_space<vmem>>) attributes {dimension_semantics = [#tpu.dimension_semantics<arbitrary>], iteration_bounds = array<i64: 1>, scalar_prefetch = 0 : i64, scratch_operands = 0 : i64, tpu.core_type = #tpu.core_type<tc>, window_params = [{pipeline_mode = #tpu.pipeline_mode<synchronous>, transform_indices = @transform_0, window_bounds = array<i64: 2, 8, 32>}, {pipeline_mode = #tpu.pipeline_mode<synchronous>, transform_indices = @transform_1, window_bounds = array<i64: 2, 16, 32>}, {pipeline_mode = #tpu.pipeline_mode<synchronous>, transform_indices = @transform_2, window_bounds = array<i64: 4, 32, 96>}, {pipeline_mode = #tpu.pipeline_mode<synchronous>, transform_indices = @transform_3, window_bounds = array<i64: 4, 1, 96>}, {pipeline_mode = #tpu.pipeline_mode<synchronous>, transform_indices = @transform_4, window_bounds = array<i64: 4, 32, 32>}, {pipeline_mode = #tpu.pipeline_mode<synchronous>, transform_indices = @transform_5, window_bounds = array<i64: 4, 1, 32>}, {pipeline_mode = #tpu.pipeline_mode<synchronous>, transform_indices = @transform_6, window_bounds = array<i64: 2, 32, 64>}, {pipeline_mode = #tpu.pipeline_mode<synchronous>, transform_indices = @transform_7, window_bounds = array<i64: 2, 1, 64>}, {pipeline_mode = #tpu.pipeline_mode<synchronous>, transform_indices = @transform_8, window_bounds = array<i64: 2, 64, 32>}, {pipeline_mode = #tpu.pipeline_mode<synchronous>, transform_indices = @transform_9, window_bounds = array<i64: 2, 1, 32>}, {pipeline_mode = #tpu.pipeline_mode<synchronous>, transform_indices = @transform_10, window_bounds = array<i64: 6, 1, 32>}, {pipeline_mode = #tpu.pipeline_mode<synchronous>, transform_indices = @transform_11, window_bounds = array<i64: 6, 1, 32>}, {pipeline_mode = #tpu.pipeline_mode<synchronous>, transform_indices = @transform_12, window_bounds = array<i64: 1, 32>}, {pipeline_mode = #tpu.pipeline_mode<synchronous>, transform_indices = @transform_13, window_bounds = array<i64: 1, 32>}, {pipeline_mode = #tpu.pipeline_mode<synchronous>, transform_indices = @transform_14, window_bounds = array<i64: 2, 8, 32>}]} {
    %c0 = arith.constant 0 : index
    %c0_0 = arith.constant 0 : index
    %c0_1 = arith.constant 0 : index
    %0 = vector.load %arg1[%c0, %c0_0, %c0_1] : memref<2x8x32xf32, #tpu.memory_space<vmem>>, vector<2x8x32xf32>
    %1 = vector.shape_cast %0 : vector<2x8x32xf32> to vector<16x32xf32>
    %c0_2 = arith.constant 0 : index
    %c0_3 = arith.constant 0 : index
    %c0_4 = arith.constant 0 : index
    %2 = vector.load %arg2[%c0_2, %c0_3, %c0_4] : memref<2x16x32xf32, #tpu.memory_space<vmem>>, vector<2x16x32xf32>
    %3 = vector.shape_cast %2 : vector<2x16x32xf32> to vector<32x32xf32>
    %4 = tpu.iota {dimensions = array<i32: 0>} : vector<8x8xi32>
    %5 = tpu.iota {dimensions = array<i32: 1>} : vector<8x8xi32>
    %6 = arith.cmpi sge, %4, %5 : vector<8x8xi32>
    %cst = arith.constant 0.000000e+00 : f32
    %cst_5 = arith.constant -1.000000e+09 : f32
    %7 = vector.broadcast %cst : f32 to vector<8x8xf32>
    %8 = vector.broadcast %cst_5 : f32 to vector<8x8xf32>
    %9 = arith.select %6, %7, %8 : vector<8x8xi1>, vector<8x8xf32>
    %c0_6 = arith.constant 0 : index
    %c0_7 = arith.constant 0 : index
    %c0_8 = arith.constant 0 : index
    %10 = vector.load %arg3[%c0_6, %c0_7, %c0_8] : memref<4x32x96xf32, #tpu.memory_space<vmem>>, vector<1x32x96xf32>
    %11 = vector.shape_cast %10 : vector<1x32x96xf32> to vector<32x96xf32>
    %c0_9 = arith.constant 0 : index
    %c0_10 = arith.constant 0 : index
    %c0_11 = arith.constant 0 : index
    %12 = vector.load %arg4[%c0_9, %c0_10, %c0_11] : memref<4x1x96xf32, #tpu.memory_space<vmem>>, vector<1x1x96xf32>
    %13 = vector.shape_cast %12 : vector<1x1x96xf32> to vector<1x96xf32>
    %cst_12 = arith.constant dense<0.000000e+00> : vector<16x96xf32>
    %14 = tpu.matmul %1, %11, %cst_12 {dimension_numbers = #tpu.dot_dimension_numbers<[1], [0], [0], [1], [0, 0, 1, 1], [], []>} : vector<16x32xf32>, vector<32x96xf32>, vector<16x96xf32> -> vector<16x96xf32>
    %15 = vector.broadcast %13 : vector<1x96xf32> to vector<16x96xf32>
    %16 = arith.addf %14, %15 : vector<16x96xf32>
    %17 = vector.extract_strided_slice %16 {offsets = [0, 0], sizes = [16, 32], strides = [1, 1]} : vector<16x96xf32> to vector<16x32xf32>
    %18 = vector.extract_strided_slice %16 {offsets = [0, 32], sizes = [16, 32], strides = [1, 1]} : vector<16x96xf32> to vector<16x32xf32>
    %19 = vector.extract_strided_slice %16 {offsets = [0, 64], sizes = [16, 32], strides = [1, 1]} : vector<16x96xf32> to vector<16x32xf32>
    %20 = vector.extract_strided_slice %17 {offsets = [0, 0], sizes = [8, 32], strides = [1, 1]} : vector<16x32xf32> to vector<8x32xf32>
    %21 = vector.extract_strided_slice %18 {offsets = [0, 0], sizes = [8, 32], strides = [1, 1]} : vector<16x32xf32> to vector<8x32xf32>
    %22 = vector.extract_strided_slice %19 {offsets = [0, 0], sizes = [8, 32], strides = [1, 1]} : vector<16x32xf32> to vector<8x32xf32>
    %23 = vector.extract_strided_slice %20 {offsets = [0, 0], sizes = [8, 8], strides = [1, 1]} : vector<8x32xf32> to vector<8x8xf32>
    %24 = vector.extract_strided_slice %21 {offsets = [0, 0], sizes = [8, 8], strides = [1, 1]} : vector<8x32xf32> to vector<8x8xf32>
    %25 = vector.extract_strided_slice %22 {offsets = [0, 0], sizes = [8, 8], strides = [1, 1]} : vector<8x32xf32> to vector<8x8xf32>
    %cst_13 = arith.constant dense<0.000000e+00> : vector<8x8xf32>
    %26 = tpu.matmul %23, %24, %cst_13 {dimension_numbers = #tpu.dot_dimension_numbers<[1], [1], [0], [0], [0, 0, 1, 0], [], []>} : vector<8x8xf32>, vector<8x8xf32>, vector<8x8xf32> -> vector<8x8xf32>
    %27 = arith.addf %26, %9 : vector<8x8xf32>
    %cst_14 = arith.constant dense<0xFF800000> : vector<8xf32>
    %28 = vector.multi_reduction <maximumf>, %27, %cst_14 [1] : vector<8x8xf32> to vector<8xf32>
    %29 = vector.shape_cast %28 : vector<8xf32> to vector<8x1xf32>
    %30 = vector.broadcast %29 : vector<8x1xf32> to vector<8x8xf32>
    %31 = arith.subf %27, %30 : vector<8x8xf32>
    %32 = math.exp %31 : vector<8x8xf32>
    %cst_15 = arith.constant dense<0.000000e+00> : vector<8xf32>
    %33 = vector.multi_reduction <add>, %32, %cst_15 [1] : vector<8x8xf32> to vector<8xf32>
    %34 = vector.shape_cast %33 : vector<8xf32> to vector<8x1xf32>
    %35 = vector.broadcast %34 : vector<8x1xf32> to vector<8x8xf32>
    %36 = arith.divf %32, %35 : vector<8x8xf32>
    %cst_16 = arith.constant dense<0.000000e+00> : vector<8x8xf32>
    %37 = tpu.matmul %36, %25, %cst_16 {dimension_numbers = #tpu.dot_dimension_numbers<[1], [0], [0], [1], [0, 0, 1, 1], [], []>} : vector<8x8xf32>, vector<8x8xf32>, vector<8x8xf32> -> vector<8x8xf32>
    %38 = vector.extract_strided_slice %20 {offsets = [0, 8], sizes = [8, 8], strides = [1, 1]} : vector<8x32xf32> to vector<8x8xf32>
    %39 = vector.extract_strided_slice %21 {offsets = [0, 8], sizes = [8, 8], strides = [1, 1]} : vector<8x32xf32> to vector<8x8xf32>
    %40 = vector.extract_strided_slice %22 {offsets = [0, 8], sizes = [8, 8], strides = [1, 1]} : vector<8x32xf32> to vector<8x8xf32>
    %cst_17 = arith.constant dense<0.000000e+00> : vector<8x8xf32>
    %41 = tpu.matmul %38, %39, %cst_17 {dimension_numbers = #tpu.dot_dimension_numbers<[1], [1], [0], [0], [0, 0, 1, 0], [], []>} : vector<8x8xf32>, vector<8x8xf32>, vector<8x8xf32> -> vector<8x8xf32>
    %42 = arith.addf %41, %9 : vector<8x8xf32>
    %cst_18 = arith.constant dense<0xFF800000> : vector<8xf32>
    %43 = vector.multi_reduction <maximumf>, %42, %cst_18 [1] : vector<8x8xf32> to vector<8xf32>
    %44 = vector.shape_cast %43 : vector<8xf32> to vector<8x1xf32>
    %45 = vector.broadcast %44 : vector<8x1xf32> to vector<8x8xf32>
    %46 = arith.subf %42, %45 : vector<8x8xf32>
    %47 = math.exp %46 : vector<8x8xf32>
    %cst_19 = arith.constant dense<0.000000e+00> : vector<8xf32>
    %48 = vector.multi_reduction <add>, %47, %cst_19 [1] : vector<8x8xf32> to vector<8xf32>
    %49 = vector.shape_cast %48 : vector<8xf32> to vector<8x1xf32>
    %50 = vector.broadcast %49 : vector<8x1xf32> to vector<8x8xf32>
    %51 = arith.divf %47, %50 : vector<8x8xf32>
    %cst_20 = arith.constant dense<0.000000e+00> : vector<8x8xf32>
    %52 = tpu.matmul %51, %40, %cst_20 {dimension_numbers = #tpu.dot_dimension_numbers<[1], [0], [0], [1], [0, 0, 1, 1], [], []>} : vector<8x8xf32>, vector<8x8xf32>, vector<8x8xf32> -> vector<8x8xf32>
    %53 = vector.extract_strided_slice %20 {offsets = [0, 16], sizes = [8, 8], strides = [1, 1]} : vector<8x32xf32> to vector<8x8xf32>
    %54 = vector.extract_strided_slice %21 {offsets = [0, 16], sizes = [8, 8], strides = [1, 1]} : vector<8x32xf32> to vector<8x8xf32>
    %55 = vector.extract_strided_slice %22 {offsets = [0, 16], sizes = [8, 8], strides = [1, 1]} : vector<8x32xf32> to vector<8x8xf32>
    %cst_21 = arith.constant dense<0.000000e+00> : vector<8x8xf32>
    %56 = tpu.matmul %53, %54, %cst_21 {dimension_numbers = #tpu.dot_dimension_numbers<[1], [1], [0], [0], [0, 0, 1, 0], [], []>} : vector<8x8xf32>, vector<8x8xf32>, vector<8x8xf32> -> vector<8x8xf32>
    %57 = arith.addf %56, %9 : vector<8x8xf32>
    %cst_22 = arith.constant dense<0xFF800000> : vector<8xf32>
    %58 = vector.multi_reduction <maximumf>, %57, %cst_22 [1] : vector<8x8xf32> to vector<8xf32>
    %59 = vector.shape_cast %58 : vector<8xf32> to vector<8x1xf32>
    %60 = vector.broadcast %59 : vector<8x1xf32> to vector<8x8xf32>
    %61 = arith.subf %57, %60 : vector<8x8xf32>
    %62 = math.exp %61 : vector<8x8xf32>
    %cst_23 = arith.constant dense<0.000000e+00> : vector<8xf32>
    %63 = vector.multi_reduction <add>, %62, %cst_23 [1] : vector<8x8xf32> to vector<8xf32>
    %64 = vector.shape_cast %63 : vector<8xf32> to vector<8x1xf32>
    %65 = vector.broadcast %64 : vector<8x1xf32> to vector<8x8xf32>
    %66 = arith.divf %62, %65 : vector<8x8xf32>
    %cst_24 = arith.constant dense<0.000000e+00> : vector<8x8xf32>
    %67 = tpu.matmul %66, %55, %cst_24 {dimension_numbers = #tpu.dot_dimension_numbers<[1], [0], [0], [1], [0, 0, 1, 1], [], []>} : vector<8x8xf32>, vector<8x8xf32>, vector<8x8xf32> -> vector<8x8xf32>
    %68 = vector.extract_strided_slice %20 {offsets = [0, 24], sizes = [8, 8], strides = [1, 1]} : vector<8x32xf32> to vector<8x8xf32>
    %69 = vector.extract_strided_slice %21 {offsets = [0, 24], sizes = [8, 8], strides = [1, 1]} : vector<8x32xf32> to vector<8x8xf32>
    %70 = vector.extract_strided_slice %22 {offsets = [0, 24], sizes = [8, 8], strides = [1, 1]} : vector<8x32xf32> to vector<8x8xf32>
    %cst_25 = arith.constant dense<0.000000e+00> : vector<8x8xf32>
    %71 = tpu.matmul %68, %69, %cst_25 {dimension_numbers = #tpu.dot_dimension_numbers<[1], [1], [0], [0], [0, 0, 1, 0], [], []>} : vector<8x8xf32>, vector<8x8xf32>, vector<8x8xf32> -> vector<8x8xf32>
    %72 = arith.addf %71, %9 : vector<8x8xf32>
    %cst_26 = arith.constant dense<0xFF800000> : vector<8xf32>
    %73 = vector.multi_reduction <maximumf>, %72, %cst_26 [1] : vector<8x8xf32> to vector<8xf32>
    %74 = vector.shape_cast %73 : vector<8xf32> to vector<8x1xf32>
    %75 = vector.broadcast %74 : vector<8x1xf32> to vector<8x8xf32>
    %76 = arith.subf %72, %75 : vector<8x8xf32>
    %77 = math.exp %76 : vector<8x8xf32>
    %cst_27 = arith.constant dense<0.000000e+00> : vector<8xf32>
    %78 = vector.multi_reduction <add>, %77, %cst_27 [1] : vector<8x8xf32> to vector<8xf32>
    %79 = vector.shape_cast %78 : vector<8xf32> to vector<8x1xf32>
    %80 = vector.broadcast %79 : vector<8x1xf32> to vector<8x8xf32>
    %81 = arith.divf %77, %80 : vector<8x8xf32>
    %cst_28 = arith.constant dense<0.000000e+00> : vector<8x8xf32>
    %82 = tpu.matmul %81, %70, %cst_28 {dimension_numbers = #tpu.dot_dimension_numbers<[1], [0], [0], [1], [0, 0, 1, 1], [], []>} : vector<8x8xf32>, vector<8x8xf32>, vector<8x8xf32> -> vector<8x8xf32>
    %83 = tpu.concatenate %37, %52, %67, %82 in 1 : vector<8x8xf32>, vector<8x8xf32>, vector<8x8xf32>, vector<8x8xf32> -> vector<8x32xf32>
    %84 = vector.extract_strided_slice %17 {offsets = [8, 0], sizes = [8, 32], strides = [1, 1]} : vector<16x32xf32> to vector<8x32xf32>
    %85 = vector.extract_strided_slice %18 {offsets = [8, 0], sizes = [8, 32], strides = [1, 1]} : vector<16x32xf32> to vector<8x32xf32>
    %86 = vector.extract_strided_slice %19 {offsets = [8, 0], sizes = [8, 32], strides = [1, 1]} : vector<16x32xf32> to vector<8x32xf32>
    %87 = vector.extract_strided_slice %84 {offsets = [0, 0], sizes = [8, 8], strides = [1, 1]} : vector<8x32xf32> to vector<8x8xf32>
    %88 = vector.extract_strided_slice %85 {offsets = [0, 0], sizes = [8, 8], strides = [1, 1]} : vector<8x32xf32> to vector<8x8xf32>
    %89 = vector.extract_strided_slice %86 {offsets = [0, 0], sizes = [8, 8], strides = [1, 1]} : vector<8x32xf32> to vector<8x8xf32>
    %cst_29 = arith.constant dense<0.000000e+00> : vector<8x8xf32>
    %90 = tpu.matmul %87, %88, %cst_29 {dimension_numbers = #tpu.dot_dimension_numbers<[1], [1], [0], [0], [0, 0, 1, 0], [], []>} : vector<8x8xf32>, vector<8x8xf32>, vector<8x8xf32> -> vector<8x8xf32>
    %91 = arith.addf %90, %9 : vector<8x8xf32>
    %cst_30 = arith.constant dense<0xFF800000> : vector<8xf32>
    %92 = vector.multi_reduction <maximumf>, %91, %cst_30 [1] : vector<8x8xf32> to vector<8xf32>
    %93 = vector.shape_cast %92 : vector<8xf32> to vector<8x1xf32>
    %94 = vector.broadcast %93 : vector<8x1xf32> to vector<8x8xf32>
    %95 = arith.subf %91, %94 : vector<8x8xf32>
    %96 = math.exp %95 : vector<8x8xf32>
    %cst_31 = arith.constant dense<0.000000e+00> : vector<8xf32>
    %97 = vector.multi_reduction <add>, %96, %cst_31 [1] : vector<8x8xf32> to vector<8xf32>
    %98 = vector.shape_cast %97 : vector<8xf32> to vector<8x1xf32>
    %99 = vector.broadcast %98 : vector<8x1xf32> to vector<8x8xf32>
    %100 = arith.divf %96, %99 : vector<8x8xf32>
    %cst_32 = arith.constant dense<0.000000e+00> : vector<8x8xf32>
    %101 = tpu.matmul %100, %89, %cst_32 {dimension_numbers = #tpu.dot_dimension_numbers<[1], [0], [0], [1], [0, 0, 1, 1], [], []>} : vector<8x8xf32>, vector<8x8xf32>, vector<8x8xf32> -> vector<8x8xf32>
    %102 = vector.extract_strided_slice %84 {offsets = [0, 8], sizes = [8, 8], strides = [1, 1]} : vector<8x32xf32> to vector<8x8xf32>
    %103 = vector.extract_strided_slice %85 {offsets = [0, 8], sizes = [8, 8], strides = [1, 1]} : vector<8x32xf32> to vector<8x8xf32>
    %104 = vector.extract_strided_slice %86 {offsets = [0, 8], sizes = [8, 8], strides = [1, 1]} : vector<8x32xf32> to vector<8x8xf32>
    %cst_33 = arith.constant dense<0.000000e+00> : vector<8x8xf32>
    %105 = tpu.matmul %102, %103, %cst_33 {dimension_numbers = #tpu.dot_dimension_numbers<[1], [1], [0], [0], [0, 0, 1, 0], [], []>} : vector<8x8xf32>, vector<8x8xf32>, vector<8x8xf32> -> vector<8x8xf32>
    %106 = arith.addf %105, %9 : vector<8x8xf32>
    %cst_34 = arith.constant dense<0xFF800000> : vector<8xf32>
    %107 = vector.multi_reduction <maximumf>, %106, %cst_34 [1] : vector<8x8xf32> to vector<8xf32>
    %108 = vector.shape_cast %107 : vector<8xf32> to vector<8x1xf32>
    %109 = vector.broadcast %108 : vector<8x1xf32> to vector<8x8xf32>
    %110 = arith.subf %106, %109 : vector<8x8xf32>
    %111 = math.exp %110 : vector<8x8xf32>
    %cst_35 = arith.constant dense<0.000000e+00> : vector<8xf32>
    %112 = vector.multi_reduction <add>, %111, %cst_35 [1] : vector<8x8xf32> to vector<8xf32>
    %113 = vector.shape_cast %112 : vector<8xf32> to vector<8x1xf32>
    %114 = vector.broadcast %113 : vector<8x1xf32> to vector<8x8xf32>
    %115 = arith.divf %111, %114 : vector<8x8xf32>
    %cst_36 = arith.constant dense<0.000000e+00> : vector<8x8xf32>
    %116 = tpu.matmul %115, %104, %cst_36 {dimension_numbers = #tpu.dot_dimension_numbers<[1], [0], [0], [1], [0, 0, 1, 1], [], []>} : vector<8x8xf32>, vector<8x8xf32>, vector<8x8xf32> -> vector<8x8xf32>
    %117 = vector.extract_strided_slice %84 {offsets = [0, 16], sizes = [8, 8], strides = [1, 1]} : vector<8x32xf32> to vector<8x8xf32>
    %118 = vector.extract_strided_slice %85 {offsets = [0, 16], sizes = [8, 8], strides = [1, 1]} : vector<8x32xf32> to vector<8x8xf32>
    %119 = vector.extract_strided_slice %86 {offsets = [0, 16], sizes = [8, 8], strides = [1, 1]} : vector<8x32xf32> to vector<8x8xf32>
    %cst_37 = arith.constant dense<0.000000e+00> : vector<8x8xf32>
    %120 = tpu.matmul %117, %118, %cst_37 {dimension_numbers = #tpu.dot_dimension_numbers<[1], [1], [0], [0], [0, 0, 1, 0], [], []>} : vector<8x8xf32>, vector<8x8xf32>, vector<8x8xf32> -> vector<8x8xf32>
    %121 = arith.addf %120, %9 : vector<8x8xf32>
    %cst_38 = arith.constant dense<0xFF800000> : vector<8xf32>
    %122 = vector.multi_reduction <maximumf>, %121, %cst_38 [1] : vector<8x8xf32> to vector<8xf32>
    %123 = vector.shape_cast %122 : vector<8xf32> to vector<8x1xf32>
    %124 = vector.broadcast %123 : vector<8x1xf32> to vector<8x8xf32>
    %125 = arith.subf %121, %124 : vector<8x8xf32>
    %126 = math.exp %125 : vector<8x8xf32>
    %cst_39 = arith.constant dense<0.000000e+00> : vector<8xf32>
    %127 = vector.multi_reduction <add>, %126, %cst_39 [1] : vector<8x8xf32> to vector<8xf32>
    %128 = vector.shape_cast %127 : vector<8xf32> to vector<8x1xf32>
    %129 = vector.broadcast %128 : vector<8x1xf32> to vector<8x8xf32>
    %130 = arith.divf %126, %129 : vector<8x8xf32>
    %cst_40 = arith.constant dense<0.000000e+00> : vector<8x8xf32>
    %131 = tpu.matmul %130, %119, %cst_40 {dimension_numbers = #tpu.dot_dimension_numbers<[1], [0], [0], [1], [0, 0, 1, 1], [], []>} : vector<8x8xf32>, vector<8x8xf32>, vector<8x8xf32> -> vector<8x8xf32>
    %132 = vector.extract_strided_slice %84 {offsets = [0, 24], sizes = [8, 8], strides = [1, 1]} : vector<8x32xf32> to vector<8x8xf32>
    %133 = vector.extract_strided_slice %85 {offsets = [0, 24], sizes = [8, 8], strides = [1, 1]} : vector<8x32xf32> to vector<8x8xf32>
    %134 = vector.extract_strided_slice %86 {offsets = [0, 24], sizes = [8, 8], strides = [1, 1]} : vector<8x32xf32> to vector<8x8xf32>
    %cst_41 = arith.constant dense<0.000000e+00> : vector<8x8xf32>
    %135 = tpu.matmul %132, %133, %cst_41 {dimension_numbers = #tpu.dot_dimension_numbers<[1], [1], [0], [0], [0, 0, 1, 0], [], []>} : vector<8x8xf32>, vector<8x8xf32>, vector<8x8xf32> -> vector<8x8xf32>
    %136 = arith.addf %135, %9 : vector<8x8xf32>
    %cst_42 = arith.constant dense<0xFF800000> : vector<8xf32>
    %137 = vector.multi_reduction <maximumf>, %136, %cst_42 [1] : vector<8x8xf32> to vector<8xf32>
    %138 = vector.shape_cast %137 : vector<8xf32> to vector<8x1xf32>
    %139 = vector.broadcast %138 : vector<8x1xf32> to vector<8x8xf32>
    %140 = arith.subf %136, %139 : vector<8x8xf32>
    %141 = math.exp %140 : vector<8x8xf32>
    %cst_43 = arith.constant dense<0.000000e+00> : vector<8xf32>
    %142 = vector.multi_reduction <add>, %141, %cst_43 [1] : vector<8x8xf32> to vector<8xf32>
    %143 = vector.shape_cast %142 : vector<8xf32> to vector<8x1xf32>
    %144 = vector.broadcast %143 : vector<8x1xf32> to vector<8x8xf32>
    %145 = arith.divf %141, %144 : vector<8x8xf32>
    %cst_44 = arith.constant dense<0.000000e+00> : vector<8x8xf32>
    %146 = tpu.matmul %145, %134, %cst_44 {dimension_numbers = #tpu.dot_dimension_numbers<[1], [0], [0], [1], [0, 0, 1, 1], [], []>} : vector<8x8xf32>, vector<8x8xf32>, vector<8x8xf32> -> vector<8x8xf32>
    %147 = tpu.concatenate %101, %116, %131, %146 in 1 : vector<8x8xf32>, vector<8x8xf32>, vector<8x8xf32>, vector<8x8xf32> -> vector<8x32xf32>
    %148 = tpu.concatenate %83, %147 in 0 : vector<8x32xf32>, vector<8x32xf32> -> vector<16x32xf32>
    %c0_45 = arith.constant 0 : index
    %c0_46 = arith.constant 0 : index
    %c0_47 = arith.constant 0 : index
    %149 = vector.load %arg5[%c0_45, %c0_46, %c0_47] : memref<4x32x32xf32, #tpu.memory_space<vmem>>, vector<1x32x32xf32>
    %150 = vector.shape_cast %149 : vector<1x32x32xf32> to vector<32x32xf32>
    %cst_48 = arith.constant dense<0.000000e+00> : vector<16x32xf32>
    %151 = tpu.matmul %148, %150, %cst_48 {dimension_numbers = #tpu.dot_dimension_numbers<[1], [0], [0], [1], [0, 0, 1, 1], [], []>} : vector<16x32xf32>, vector<32x32xf32>, vector<16x32xf32> -> vector<16x32xf32>
    %c0_49 = arith.constant 0 : index
    %c0_50 = arith.constant 0 : index
    %c0_51 = arith.constant 0 : index
    %152 = vector.load %arg6[%c0_49, %c0_50, %c0_51] : memref<4x1x32xf32, #tpu.memory_space<vmem>>, vector<1x1x32xf32>
    %153 = vector.shape_cast %152 : vector<1x1x32xf32> to vector<1x32xf32>
    %154 = vector.broadcast %153 : vector<1x32xf32> to vector<16x32xf32>
    %155 = arith.addf %151, %154 : vector<16x32xf32>
    %156 = arith.addf %1, %155 : vector<16x32xf32>
    %c0_52 = arith.constant 0 : index
    %c0_53 = arith.constant 0 : index
    %c0_54 = arith.constant 0 : index
    %157 = vector.load %arg11[%c0_52, %c0_53, %c0_54] : memref<6x1x32xf32, #tpu.memory_space<vmem>>, vector<1x1x32xf32>
    %158 = vector.shape_cast %157 : vector<1x1x32xf32> to vector<1x32xf32>
    %c0_55 = arith.constant 0 : index
    %c0_56 = arith.constant 0 : index
    %c0_57 = arith.constant 0 : index
    %159 = vector.load %arg12[%c0_55, %c0_56, %c0_57] : memref<6x1x32xf32, #tpu.memory_space<vmem>>, vector<1x1x32xf32>
    %160 = vector.shape_cast %159 : vector<1x1x32xf32> to vector<1x32xf32>
    %cst_58 = arith.constant dense<0.000000e+00> : vector<16xf32>
    %161 = vector.multi_reduction <add>, %156, %cst_58 [1] : vector<16x32xf32> to vector<16xf32>
    %162 = vector.shape_cast %161 : vector<16xf32> to vector<16x1xf32>
    %cst_59 = arith.constant 3.200000e+01 : f32
    %163 = vector.broadcast %cst_59 : f32 to vector<16x1xf32>
    %164 = arith.divf %162, %163 : vector<16x1xf32>
    %165 = vector.broadcast %164 : vector<16x1xf32> to vector<16x32xf32>
    %166 = arith.subf %156, %165 : vector<16x32xf32>
    %167 = arith.mulf %166, %166 : vector<16x32xf32>
    %cst_60 = arith.constant dense<0.000000e+00> : vector<16xf32>
    %168 = vector.multi_reduction <add>, %167, %cst_60 [1] : vector<16x32xf32> to vector<16xf32>
    %169 = vector.shape_cast %168 : vector<16xf32> to vector<16x1xf32>
    %cst_61 = arith.constant 3.200000e+01 : f32
    %170 = vector.broadcast %cst_61 : f32 to vector<16x1xf32>
    %171 = arith.divf %169, %170 : vector<16x1xf32>
    %172 = vector.broadcast %164 : vector<16x1xf32> to vector<16x32xf32>
    %173 = arith.subf %156, %172 : vector<16x32xf32>
    %cst_62 = arith.constant 9.99999974E-6 : f32
    %174 = vector.broadcast %cst_62 : f32 to vector<16x1xf32>
    %175 = arith.addf %171, %174 : vector<16x1xf32>
    %176 = math.rsqrt %175 : vector<16x1xf32>
    %177 = vector.broadcast %176 : vector<16x1xf32> to vector<16x32xf32>
    %178 = arith.mulf %173, %177 : vector<16x32xf32>
    %179 = vector.broadcast %158 : vector<1x32xf32> to vector<16x32xf32>
    %180 = arith.mulf %178, %179 : vector<16x32xf32>
    %181 = vector.broadcast %160 : vector<1x32xf32> to vector<16x32xf32>
    %182 = arith.addf %180, %181 : vector<16x32xf32>
    %c1 = arith.constant 1 : index
    %c0_63 = arith.constant 0 : index
    %c0_64 = arith.constant 0 : index
    %183 = vector.load %arg3[%c1, %c0_63, %c0_64] : memref<4x32x96xf32, #tpu.memory_space<vmem>>, vector<1x32x96xf32>
    %184 = vector.shape_cast %183 : vector<1x32x96xf32> to vector<32x96xf32>
    %c1_65 = arith.constant 1 : index
    %c0_66 = arith.constant 0 : index
    %c0_67 = arith.constant 0 : index
    %185 = vector.load %arg4[%c1_65, %c0_66, %c0_67] : memref<4x1x96xf32, #tpu.memory_space<vmem>>, vector<1x1x96xf32>
    %186 = vector.shape_cast %185 : vector<1x1x96xf32> to vector<1x96xf32>
    %187 = vector.extract_strided_slice %184 {offsets = [0, 0], sizes = [32, 32], strides = [1, 1]} : vector<32x96xf32> to vector<32x32xf32>
    %cst_68 = arith.constant dense<0.000000e+00> : vector<16x32xf32>
    %188 = tpu.matmul %182, %187, %cst_68 {dimension_numbers = #tpu.dot_dimension_numbers<[1], [0], [0], [1], [0, 0, 1, 1], [], []>} : vector<16x32xf32>, vector<32x32xf32>, vector<16x32xf32> -> vector<16x32xf32>
    %189 = vector.extract_strided_slice %186 {offsets = [0, 0], sizes = [1, 32], strides = [1, 1]} : vector<1x96xf32> to vector<1x32xf32>
    %190 = vector.broadcast %189 : vector<1x32xf32> to vector<16x32xf32>
    %191 = arith.addf %188, %190 : vector<16x32xf32>
    %192 = vector.extract_strided_slice %184 {offsets = [0, 32], sizes = [32, 64], strides = [1, 1]} : vector<32x96xf32> to vector<32x64xf32>
    %cst_69 = arith.constant dense<0.000000e+00> : vector<32x64xf32>
    %193 = tpu.matmul %3, %192, %cst_69 {dimension_numbers = #tpu.dot_dimension_numbers<[1], [0], [0], [1], [0, 0, 1, 1], [], []>} : vector<32x32xf32>, vector<32x64xf32>, vector<32x64xf32> -> vector<32x64xf32>
    %194 = vector.extract_strided_slice %186 {offsets = [0, 32], sizes = [1, 64], strides = [1, 1]} : vector<1x96xf32> to vector<1x64xf32>
    %195 = vector.broadcast %194 : vector<1x64xf32> to vector<32x64xf32>
    %196 = arith.addf %193, %195 : vector<32x64xf32>
    %197 = vector.extract_strided_slice %196 {offsets = [0, 0], sizes = [32, 32], strides = [1, 1]} : vector<32x64xf32> to vector<32x32xf32>
    %198 = vector.extract_strided_slice %196 {offsets = [0, 32], sizes = [32, 32], strides = [1, 1]} : vector<32x64xf32> to vector<32x32xf32>
    %199 = vector.extract_strided_slice %191 {offsets = [0, 0], sizes = [8, 32], strides = [1, 1]} : vector<16x32xf32> to vector<8x32xf32>
    %200 = vector.extract_strided_slice %197 {offsets = [0, 0], sizes = [16, 32], strides = [1, 1]} : vector<32x32xf32> to vector<16x32xf32>
    %201 = vector.extract_strided_slice %198 {offsets = [0, 0], sizes = [16, 32], strides = [1, 1]} : vector<32x32xf32> to vector<16x32xf32>
    %202 = vector.extract_strided_slice %199 {offsets = [0, 0], sizes = [8, 8], strides = [1, 1]} : vector<8x32xf32> to vector<8x8xf32>
    %203 = vector.extract_strided_slice %200 {offsets = [0, 0], sizes = [16, 8], strides = [1, 1]} : vector<16x32xf32> to vector<16x8xf32>
    %204 = vector.extract_strided_slice %201 {offsets = [0, 0], sizes = [16, 8], strides = [1, 1]} : vector<16x32xf32> to vector<16x8xf32>
    %cst_70 = arith.constant dense<0.000000e+00> : vector<8x16xf32>
    %205 = tpu.matmul %202, %203, %cst_70 {dimension_numbers = #tpu.dot_dimension_numbers<[1], [1], [0], [0], [0, 0, 1, 0], [], []>} : vector<8x8xf32>, vector<16x8xf32>, vector<8x16xf32> -> vector<8x16xf32>
    %cst_71 = arith.constant dense<0xFF800000> : vector<8xf32>
    %206 = vector.multi_reduction <maximumf>, %205, %cst_71 [1] : vector<8x16xf32> to vector<8xf32>
    %207 = vector.shape_cast %206 : vector<8xf32> to vector<8x1xf32>
    %208 = vector.broadcast %207 : vector<8x1xf32> to vector<8x16xf32>
    %209 = arith.subf %205, %208 : vector<8x16xf32>
    %210 = math.exp %209 : vector<8x16xf32>
    %cst_72 = arith.constant dense<0.000000e+00> : vector<8xf32>
    %211 = vector.multi_reduction <add>, %210, %cst_72 [1] : vector<8x16xf32> to vector<8xf32>
    %212 = vector.shape_cast %211 : vector<8xf32> to vector<8x1xf32>
    %213 = vector.broadcast %212 : vector<8x1xf32> to vector<8x16xf32>
    %214 = arith.divf %210, %213 : vector<8x16xf32>
    %cst_73 = arith.constant dense<0.000000e+00> : vector<8x8xf32>
    %215 = tpu.matmul %214, %204, %cst_73 {dimension_numbers = #tpu.dot_dimension_numbers<[1], [0], [0], [1], [0, 0, 1, 1], [], []>} : vector<8x16xf32>, vector<16x8xf32>, vector<8x8xf32> -> vector<8x8xf32>
    %216 = vector.extract_strided_slice %199 {offsets = [0, 8], sizes = [8, 8], strides = [1, 1]} : vector<8x32xf32> to vector<8x8xf32>
    %217 = vector.extract_strided_slice %200 {offsets = [0, 8], sizes = [16, 8], strides = [1, 1]} : vector<16x32xf32> to vector<16x8xf32>
    %218 = vector.extract_strided_slice %201 {offsets = [0, 8], sizes = [16, 8], strides = [1, 1]} : vector<16x32xf32> to vector<16x8xf32>
    %cst_74 = arith.constant dense<0.000000e+00> : vector<8x16xf32>
    %219 = tpu.matmul %216, %217, %cst_74 {dimension_numbers = #tpu.dot_dimension_numbers<[1], [1], [0], [0], [0, 0, 1, 0], [], []>} : vector<8x8xf32>, vector<16x8xf32>, vector<8x16xf32> -> vector<8x16xf32>
    %cst_75 = arith.constant dense<0xFF800000> : vector<8xf32>
    %220 = vector.multi_reduction <maximumf>, %219, %cst_75 [1] : vector<8x16xf32> to vector<8xf32>
    %221 = vector.shape_cast %220 : vector<8xf32> to vector<8x1xf32>
    %222 = vector.broadcast %221 : vector<8x1xf32> to vector<8x16xf32>
    %223 = arith.subf %219, %222 : vector<8x16xf32>
    %224 = math.exp %223 : vector<8x16xf32>
    %cst_76 = arith.constant dense<0.000000e+00> : vector<8xf32>
    %225 = vector.multi_reduction <add>, %224, %cst_76 [1] : vector<8x16xf32> to vector<8xf32>
    %226 = vector.shape_cast %225 : vector<8xf32> to vector<8x1xf32>
    %227 = vector.broadcast %226 : vector<8x1xf32> to vector<8x16xf32>
    %228 = arith.divf %224, %227 : vector<8x16xf32>
    %cst_77 = arith.constant dense<0.000000e+00> : vector<8x8xf32>
    %229 = tpu.matmul %228, %218, %cst_77 {dimension_numbers = #tpu.dot_dimension_numbers<[1], [0], [0], [1], [0, 0, 1, 1], [], []>} : vector<8x16xf32>, vector<16x8xf32>, vector<8x8xf32> -> vector<8x8xf32>
    %230 = vector.extract_strided_slice %199 {offsets = [0, 16], sizes = [8, 8], strides = [1, 1]} : vector<8x32xf32> to vector<8x8xf32>
    %231 = vector.extract_strided_slice %200 {offsets = [0, 16], sizes = [16, 8], strides = [1, 1]} : vector<16x32xf32> to vector<16x8xf32>
    %232 = vector.extract_strided_slice %201 {offsets = [0, 16], sizes = [16, 8], strides = [1, 1]} : vector<16x32xf32> to vector<16x8xf32>
    %cst_78 = arith.constant dense<0.000000e+00> : vector<8x16xf32>
    %233 = tpu.matmul %230, %231, %cst_78 {dimension_numbers = #tpu.dot_dimension_numbers<[1], [1], [0], [0], [0, 0, 1, 0], [], []>} : vector<8x8xf32>, vector<16x8xf32>, vector<8x16xf32> -> vector<8x16xf32>
    %cst_79 = arith.constant dense<0xFF800000> : vector<8xf32>
    %234 = vector.multi_reduction <maximumf>, %233, %cst_79 [1] : vector<8x16xf32> to vector<8xf32>
    %235 = vector.shape_cast %234 : vector<8xf32> to vector<8x1xf32>
    %236 = vector.broadcast %235 : vector<8x1xf32> to vector<8x16xf32>
    %237 = arith.subf %233, %236 : vector<8x16xf32>
    %238 = math.exp %237 : vector<8x16xf32>
    %cst_80 = arith.constant dense<0.000000e+00> : vector<8xf32>
    %239 = vector.multi_reduction <add>, %238, %cst_80 [1] : vector<8x16xf32> to vector<8xf32>
    %240 = vector.shape_cast %239 : vector<8xf32> to vector<8x1xf32>
    %241 = vector.broadcast %240 : vector<8x1xf32> to vector<8x16xf32>
    %242 = arith.divf %238, %241 : vector<8x16xf32>
    %cst_81 = arith.constant dense<0.000000e+00> : vector<8x8xf32>
    %243 = tpu.matmul %242, %232, %cst_81 {dimension_numbers = #tpu.dot_dimension_numbers<[1], [0], [0], [1], [0, 0, 1, 1], [], []>} : vector<8x16xf32>, vector<16x8xf32>, vector<8x8xf32> -> vector<8x8xf32>
    %244 = vector.extract_strided_slice %199 {offsets = [0, 24], sizes = [8, 8], strides = [1, 1]} : vector<8x32xf32> to vector<8x8xf32>
    %245 = vector.extract_strided_slice %200 {offsets = [0, 24], sizes = [16, 8], strides = [1, 1]} : vector<16x32xf32> to vector<16x8xf32>
    %246 = vector.extract_strided_slice %201 {offsets = [0, 24], sizes = [16, 8], strides = [1, 1]} : vector<16x32xf32> to vector<16x8xf32>
    %cst_82 = arith.constant dense<0.000000e+00> : vector<8x16xf32>
    %247 = tpu.matmul %244, %245, %cst_82 {dimension_numbers = #tpu.dot_dimension_numbers<[1], [1], [0], [0], [0, 0, 1, 0], [], []>} : vector<8x8xf32>, vector<16x8xf32>, vector<8x16xf32> -> vector<8x16xf32>
    %cst_83 = arith.constant dense<0xFF800000> : vector<8xf32>
    %248 = vector.multi_reduction <maximumf>, %247, %cst_83 [1] : vector<8x16xf32> to vector<8xf32>
    %249 = vector.shape_cast %248 : vector<8xf32> to vector<8x1xf32>
    %250 = vector.broadcast %249 : vector<8x1xf32> to vector<8x16xf32>
    %251 = arith.subf %247, %250 : vector<8x16xf32>
    %252 = math.exp %251 : vector<8x16xf32>
    %cst_84 = arith.constant dense<0.000000e+00> : vector<8xf32>
    %253 = vector.multi_reduction <add>, %252, %cst_84 [1] : vector<8x16xf32> to vector<8xf32>
    %254 = vector.shape_cast %253 : vector<8xf32> to vector<8x1xf32>
    %255 = vector.broadcast %254 : vector<8x1xf32> to vector<8x16xf32>
    %256 = arith.divf %252, %255 : vector<8x16xf32>
    %cst_85 = arith.constant dense<0.000000e+00> : vector<8x8xf32>
    %257 = tpu.matmul %256, %246, %cst_85 {dimension_numbers = #tpu.dot_dimension_numbers<[1], [0], [0], [1], [0, 0, 1, 1], [], []>} : vector<8x16xf32>, vector<16x8xf32>, vector<8x8xf32> -> vector<8x8xf32>
    %258 = tpu.concatenate %215, %229, %243, %257 in 1 : vector<8x8xf32>, vector<8x8xf32>, vector<8x8xf32>, vector<8x8xf32> -> vector<8x32xf32>
    %259 = vector.extract_strided_slice %191 {offsets = [8, 0], sizes = [8, 32], strides = [1, 1]} : vector<16x32xf32> to vector<8x32xf32>
    %260 = vector.extract_strided_slice %197 {offsets = [16, 0], sizes = [16, 32], strides = [1, 1]} : vector<32x32xf32> to vector<16x32xf32>
    %261 = vector.extract_strided_slice %198 {offsets = [16, 0], sizes = [16, 32], strides = [1, 1]} : vector<32x32xf32> to vector<16x32xf32>
    %262 = vector.extract_strided_slice %259 {offsets = [0, 0], sizes = [8, 8], strides = [1, 1]} : vector<8x32xf32> to vector<8x8xf32>
    %263 = vector.extract_strided_slice %260 {offsets = [0, 0], sizes = [16, 8], strides = [1, 1]} : vector<16x32xf32> to vector<16x8xf32>
    %264 = vector.extract_strided_slice %261 {offsets = [0, 0], sizes = [16, 8], strides = [1, 1]} : vector<16x32xf32> to vector<16x8xf32>
    %cst_86 = arith.constant dense<0.000000e+00> : vector<8x16xf32>
    %265 = tpu.matmul %262, %263, %cst_86 {dimension_numbers = #tpu.dot_dimension_numbers<[1], [1], [0], [0], [0, 0, 1, 0], [], []>} : vector<8x8xf32>, vector<16x8xf32>, vector<8x16xf32> -> vector<8x16xf32>
    %cst_87 = arith.constant dense<0xFF800000> : vector<8xf32>
    %266 = vector.multi_reduction <maximumf>, %265, %cst_87 [1] : vector<8x16xf32> to vector<8xf32>
    %267 = vector.shape_cast %266 : vector<8xf32> to vector<8x1xf32>
    %268 = vector.broadcast %267 : vector<8x1xf32> to vector<8x16xf32>
    %269 = arith.subf %265, %268 : vector<8x16xf32>
    %270 = math.exp %269 : vector<8x16xf32>
    %cst_88 = arith.constant dense<0.000000e+00> : vector<8xf32>
    %271 = vector.multi_reduction <add>, %270, %cst_88 [1] : vector<8x16xf32> to vector<8xf32>
    %272 = vector.shape_cast %271 : vector<8xf32> to vector<8x1xf32>
    %273 = vector.broadcast %272 : vector<8x1xf32> to vector<8x16xf32>
    %274 = arith.divf %270, %273 : vector<8x16xf32>
    %cst_89 = arith.constant dense<0.000000e+00> : vector<8x8xf32>
    %275 = tpu.matmul %274, %264, %cst_89 {dimension_numbers = #tpu.dot_dimension_numbers<[1], [0], [0], [1], [0, 0, 1, 1], [], []>} : vector<8x16xf32>, vector<16x8xf32>, vector<8x8xf32> -> vector<8x8xf32>
    %276 = vector.extract_strided_slice %259 {offsets = [0, 8], sizes = [8, 8], strides = [1, 1]} : vector<8x32xf32> to vector<8x8xf32>
    %277 = vector.extract_strided_slice %260 {offsets = [0, 8], sizes = [16, 8], strides = [1, 1]} : vector<16x32xf32> to vector<16x8xf32>
    %278 = vector.extract_strided_slice %261 {offsets = [0, 8], sizes = [16, 8], strides = [1, 1]} : vector<16x32xf32> to vector<16x8xf32>
    %cst_90 = arith.constant dense<0.000000e+00> : vector<8x16xf32>
    %279 = tpu.matmul %276, %277, %cst_90 {dimension_numbers = #tpu.dot_dimension_numbers<[1], [1], [0], [0], [0, 0, 1, 0], [], []>} : vector<8x8xf32>, vector<16x8xf32>, vector<8x16xf32> -> vector<8x16xf32>
    %cst_91 = arith.constant dense<0xFF800000> : vector<8xf32>
    %280 = vector.multi_reduction <maximumf>, %279, %cst_91 [1] : vector<8x16xf32> to vector<8xf32>
    %281 = vector.shape_cast %280 : vector<8xf32> to vector<8x1xf32>
    %282 = vector.broadcast %281 : vector<8x1xf32> to vector<8x16xf32>
    %283 = arith.subf %279, %282 : vector<8x16xf32>
    %284 = math.exp %283 : vector<8x16xf32>
    %cst_92 = arith.constant dense<0.000000e+00> : vector<8xf32>
    %285 = vector.multi_reduction <add>, %284, %cst_92 [1] : vector<8x16xf32> to vector<8xf32>
    %286 = vector.shape_cast %285 : vector<8xf32> to vector<8x1xf32>
    %287 = vector.broadcast %286 : vector<8x1xf32> to vector<8x16xf32>
    %288 = arith.divf %284, %287 : vector<8x16xf32>
    %cst_93 = arith.constant dense<0.000000e+00> : vector<8x8xf32>
    %289 = tpu.matmul %288, %278, %cst_93 {dimension_numbers = #tpu.dot_dimension_numbers<[1], [0], [0], [1], [0, 0, 1, 1], [], []>} : vector<8x16xf32>, vector<16x8xf32>, vector<8x8xf32> -> vector<8x8xf32>
    %290 = vector.extract_strided_slice %259 {offsets = [0, 16], sizes = [8, 8], strides = [1, 1]} : vector<8x32xf32> to vector<8x8xf32>
    %291 = vector.extract_strided_slice %260 {offsets = [0, 16], sizes = [16, 8], strides = [1, 1]} : vector<16x32xf32> to vector<16x8xf32>
    %292 = vector.extract_strided_slice %261 {offsets = [0, 16], sizes = [16, 8], strides = [1, 1]} : vector<16x32xf32> to vector<16x8xf32>
    %cst_94 = arith.constant dense<0.000000e+00> : vector<8x16xf32>
    %293 = tpu.matmul %290, %291, %cst_94 {dimension_numbers = #tpu.dot_dimension_numbers<[1], [1], [0], [0], [0, 0, 1, 0], [], []>} : vector<8x8xf32>, vector<16x8xf32>, vector<8x16xf32> -> vector<8x16xf32>
    %cst_95 = arith.constant dense<0xFF800000> : vector<8xf32>
    %294 = vector.multi_reduction <maximumf>, %293, %cst_95 [1] : vector<8x16xf32> to vector<8xf32>
    %295 = vector.shape_cast %294 : vector<8xf32> to vector<8x1xf32>
    %296 = vector.broadcast %295 : vector<8x1xf32> to vector<8x16xf32>
    %297 = arith.subf %293, %296 : vector<8x16xf32>
    %298 = math.exp %297 : vector<8x16xf32>
    %cst_96 = arith.constant dense<0.000000e+00> : vector<8xf32>
    %299 = vector.multi_reduction <add>, %298, %cst_96 [1] : vector<8x16xf32> to vector<8xf32>
    %300 = vector.shape_cast %299 : vector<8xf32> to vector<8x1xf32>
    %301 = vector.broadcast %300 : vector<8x1xf32> to vector<8x16xf32>
    %302 = arith.divf %298, %301 : vector<8x16xf32>
    %cst_97 = arith.constant dense<0.000000e+00> : vector<8x8xf32>
    %303 = tpu.matmul %302, %292, %cst_97 {dimension_numbers = #tpu.dot_dimension_numbers<[1], [0], [0], [1], [0, 0, 1, 1], [], []>} : vector<8x16xf32>, vector<16x8xf32>, vector<8x8xf32> -> vector<8x8xf32>
    %304 = vector.extract_strided_slice %259 {offsets = [0, 24], sizes = [8, 8], strides = [1, 1]} : vector<8x32xf32> to vector<8x8xf32>
    %305 = vector.extract_strided_slice %260 {offsets = [0, 24], sizes = [16, 8], strides = [1, 1]} : vector<16x32xf32> to vector<16x8xf32>
    %306 = vector.extract_strided_slice %261 {offsets = [0, 24], sizes = [16, 8], strides = [1, 1]} : vector<16x32xf32> to vector<16x8xf32>
    %cst_98 = arith.constant dense<0.000000e+00> : vector<8x16xf32>
    %307 = tpu.matmul %304, %305, %cst_98 {dimension_numbers = #tpu.dot_dimension_numbers<[1], [1], [0], [0], [0, 0, 1, 0], [], []>} : vector<8x8xf32>, vector<16x8xf32>, vector<8x16xf32> -> vector<8x16xf32>
    %cst_99 = arith.constant dense<0xFF800000> : vector<8xf32>
    %308 = vector.multi_reduction <maximumf>, %307, %cst_99 [1] : vector<8x16xf32> to vector<8xf32>
    %309 = vector.shape_cast %308 : vector<8xf32> to vector<8x1xf32>
    %310 = vector.broadcast %309 : vector<8x1xf32> to vector<8x16xf32>
    %311 = arith.subf %307, %310 : vector<8x16xf32>
    %312 = math.exp %311 : vector<8x16xf32>
    %cst_100 = arith.constant dense<0.000000e+00> : vector<8xf32>
    %313 = vector.multi_reduction <add>, %312, %cst_100 [1] : vector<8x16xf32> to vector<8xf32>
    %314 = vector.shape_cast %313 : vector<8xf32> to vector<8x1xf32>
    %315 = vector.broadcast %314 : vector<8x1xf32> to vector<8x16xf32>
    %316 = arith.divf %312, %315 : vector<8x16xf32>
    %cst_101 = arith.constant dense<0.000000e+00> : vector<8x8xf32>
    %317 = tpu.matmul %316, %306, %cst_101 {dimension_numbers = #tpu.dot_dimension_numbers<[1], [0], [0], [1], [0, 0, 1, 1], [], []>} : vector<8x16xf32>, vector<16x8xf32>, vector<8x8xf32> -> vector<8x8xf32>
    %318 = tpu.concatenate %275, %289, %303, %317 in 1 : vector<8x8xf32>, vector<8x8xf32>, vector<8x8xf32>, vector<8x8xf32> -> vector<8x32xf32>
    %319 = tpu.concatenate %258, %318 in 0 : vector<8x32xf32>, vector<8x32xf32> -> vector<16x32xf32>
    %c1_102 = arith.constant 1 : index
    %c0_103 = arith.constant 0 : index
    %c0_104 = arith.constant 0 : index
    %320 = vector.load %arg5[%c1_102, %c0_103, %c0_104] : memref<4x32x32xf32, #tpu.memory_space<vmem>>, vector<1x32x32xf32>
    %321 = vector.shape_cast %320 : vector<1x32x32xf32> to vector<32x32xf32>
    %cst_105 = arith.constant dense<0.000000e+00> : vector<16x32xf32>
    %322 = tpu.matmul %319, %321, %cst_105 {dimension_numbers = #tpu.dot_dimension_numbers<[1], [0], [0], [1], [0, 0, 1, 1], [], []>} : vector<16x32xf32>, vector<32x32xf32>, vector<16x32xf32> -> vector<16x32xf32>
    %c1_106 = arith.constant 1 : index
    %c0_107 = arith.constant 0 : index
    %c0_108 = arith.constant 0 : index
    %323 = vector.load %arg6[%c1_106, %c0_107, %c0_108] : memref<4x1x32xf32, #tpu.memory_space<vmem>>, vector<1x1x32xf32>
    %324 = vector.shape_cast %323 : vector<1x1x32xf32> to vector<1x32xf32>
    %325 = vector.broadcast %324 : vector<1x32xf32> to vector<16x32xf32>
    %326 = arith.addf %322, %325 : vector<16x32xf32>
    %327 = arith.addf %182, %326 : vector<16x32xf32>
    %c1_109 = arith.constant 1 : index
    %c0_110 = arith.constant 0 : index
    %c0_111 = arith.constant 0 : index
    %328 = vector.load %arg11[%c1_109, %c0_110, %c0_111] : memref<6x1x32xf32, #tpu.memory_space<vmem>>, vector<1x1x32xf32>
    %329 = vector.shape_cast %328 : vector<1x1x32xf32> to vector<1x32xf32>
    %c1_112 = arith.constant 1 : index
    %c0_113 = arith.constant 0 : index
    %c0_114 = arith.constant 0 : index
    %330 = vector.load %arg12[%c1_112, %c0_113, %c0_114] : memref<6x1x32xf32, #tpu.memory_space<vmem>>, vector<1x1x32xf32>
    %331 = vector.shape_cast %330 : vector<1x1x32xf32> to vector<1x32xf32>
    %cst_115 = arith.constant dense<0.000000e+00> : vector<16xf32>
    %332 = vector.multi_reduction <add>, %327, %cst_115 [1] : vector<16x32xf32> to vector<16xf32>
    %333 = vector.shape_cast %332 : vector<16xf32> to vector<16x1xf32>
    %cst_116 = arith.constant 3.200000e+01 : f32
    %334 = vector.broadcast %cst_116 : f32 to vector<16x1xf32>
    %335 = arith.divf %333, %334 : vector<16x1xf32>
    %336 = vector.broadcast %335 : vector<16x1xf32> to vector<16x32xf32>
    %337 = arith.subf %327, %336 : vector<16x32xf32>
    %338 = arith.mulf %337, %337 : vector<16x32xf32>
    %cst_117 = arith.constant dense<0.000000e+00> : vector<16xf32>
    %339 = vector.multi_reduction <add>, %338, %cst_117 [1] : vector<16x32xf32> to vector<16xf32>
    %340 = vector.shape_cast %339 : vector<16xf32> to vector<16x1xf32>
    %cst_118 = arith.constant 3.200000e+01 : f32
    %341 = vector.broadcast %cst_118 : f32 to vector<16x1xf32>
    %342 = arith.divf %340, %341 : vector<16x1xf32>
    %343 = vector.broadcast %335 : vector<16x1xf32> to vector<16x32xf32>
    %344 = arith.subf %327, %343 : vector<16x32xf32>
    %cst_119 = arith.constant 9.99999974E-6 : f32
    %345 = vector.broadcast %cst_119 : f32 to vector<16x1xf32>
    %346 = arith.addf %342, %345 : vector<16x1xf32>
    %347 = math.rsqrt %346 : vector<16x1xf32>
    %348 = vector.broadcast %347 : vector<16x1xf32> to vector<16x32xf32>
    %349 = arith.mulf %344, %348 : vector<16x32xf32>
    %350 = vector.broadcast %329 : vector<1x32xf32> to vector<16x32xf32>
    %351 = arith.mulf %349, %350 : vector<16x32xf32>
    %352 = vector.broadcast %331 : vector<1x32xf32> to vector<16x32xf32>
    %353 = arith.addf %351, %352 : vector<16x32xf32>
    %c0_120 = arith.constant 0 : index
    %c0_121 = arith.constant 0 : index
    %c0_122 = arith.constant 0 : index
    %354 = vector.load %arg7[%c0_120, %c0_121, %c0_122] : memref<2x32x64xf32, #tpu.memory_space<vmem>>, vector<1x32x64xf32>
    %355 = vector.shape_cast %354 : vector<1x32x64xf32> to vector<32x64xf32>
    %cst_123 = arith.constant dense<0.000000e+00> : vector<16x64xf32>
    %356 = tpu.matmul %353, %355, %cst_123 {dimension_numbers = #tpu.dot_dimension_numbers<[1], [0], [0], [1], [0, 0, 1, 1], [], []>} : vector<16x32xf32>, vector<32x64xf32>, vector<16x64xf32> -> vector<16x64xf32>
    %c0_124 = arith.constant 0 : index
    %c0_125 = arith.constant 0 : index
    %c0_126 = arith.constant 0 : index
    %357 = vector.load %arg8[%c0_124, %c0_125, %c0_126] : memref<2x1x64xf32, #tpu.memory_space<vmem>>, vector<1x1x64xf32>
    %358 = vector.shape_cast %357 : vector<1x1x64xf32> to vector<1x64xf32>
    %359 = vector.broadcast %358 : vector<1x64xf32> to vector<16x64xf32>
    %360 = arith.addf %356, %359 : vector<16x64xf32>
    %cst_127 = arith.constant 0.000000e+00 : f32
    %361 = vector.broadcast %cst_127 : f32 to vector<16x64xf32>
    %362 = arith.maximumf %360, %361 : vector<16x64xf32>
    %c0_128 = arith.constant 0 : index
    %c0_129 = arith.constant 0 : index
    %c0_130 = arith.constant 0 : index
    %363 = vector.load %arg9[%c0_128, %c0_129, %c0_130] : memref<2x64x32xf32, #tpu.memory_space<vmem>>, vector<1x64x32xf32>
    %364 = vector.shape_cast %363 : vector<1x64x32xf32> to vector<64x32xf32>
    %cst_131 = arith.constant dense<0.000000e+00> : vector<16x32xf32>
    %365 = tpu.matmul %362, %364, %cst_131 {dimension_numbers = #tpu.dot_dimension_numbers<[1], [0], [0], [1], [0, 0, 1, 1], [], []>} : vector<16x64xf32>, vector<64x32xf32>, vector<16x32xf32> -> vector<16x32xf32>
    %c0_132 = arith.constant 0 : index
    %c0_133 = arith.constant 0 : index
    %c0_134 = arith.constant 0 : index
    %366 = vector.load %arg10[%c0_132, %c0_133, %c0_134] : memref<2x1x32xf32, #tpu.memory_space<vmem>>, vector<1x1x32xf32>
    %367 = vector.shape_cast %366 : vector<1x1x32xf32> to vector<1x32xf32>
    %368 = vector.broadcast %367 : vector<1x32xf32> to vector<16x32xf32>
    %369 = arith.addf %365, %368 : vector<16x32xf32>
    %370 = arith.addf %353, %369 : vector<16x32xf32>
    %c2 = arith.constant 2 : index
    %c0_135 = arith.constant 0 : index
    %c0_136 = arith.constant 0 : index
    %371 = vector.load %arg11[%c2, %c0_135, %c0_136] : memref<6x1x32xf32, #tpu.memory_space<vmem>>, vector<1x1x32xf32>
    %372 = vector.shape_cast %371 : vector<1x1x32xf32> to vector<1x32xf32>
    %c2_137 = arith.constant 2 : index
    %c0_138 = arith.constant 0 : index
    %c0_139 = arith.constant 0 : index
    %373 = vector.load %arg12[%c2_137, %c0_138, %c0_139] : memref<6x1x32xf32, #tpu.memory_space<vmem>>, vector<1x1x32xf32>
    %374 = vector.shape_cast %373 : vector<1x1x32xf32> to vector<1x32xf32>
    %cst_140 = arith.constant dense<0.000000e+00> : vector<16xf32>
    %375 = vector.multi_reduction <add>, %370, %cst_140 [1] : vector<16x32xf32> to vector<16xf32>
    %376 = vector.shape_cast %375 : vector<16xf32> to vector<16x1xf32>
    %cst_141 = arith.constant 3.200000e+01 : f32
    %377 = vector.broadcast %cst_141 : f32 to vector<16x1xf32>
    %378 = arith.divf %376, %377 : vector<16x1xf32>
    %379 = vector.broadcast %378 : vector<16x1xf32> to vector<16x32xf32>
    %380 = arith.subf %370, %379 : vector<16x32xf32>
    %381 = arith.mulf %380, %380 : vector<16x32xf32>
    %cst_142 = arith.constant dense<0.000000e+00> : vector<16xf32>
    %382 = vector.multi_reduction <add>, %381, %cst_142 [1] : vector<16x32xf32> to vector<16xf32>
    %383 = vector.shape_cast %382 : vector<16xf32> to vector<16x1xf32>
    %cst_143 = arith.constant 3.200000e+01 : f32
    %384 = vector.broadcast %cst_143 : f32 to vector<16x1xf32>
    %385 = arith.divf %383, %384 : vector<16x1xf32>
    %386 = vector.broadcast %378 : vector<16x1xf32> to vector<16x32xf32>
    %387 = arith.subf %370, %386 : vector<16x32xf32>
    %cst_144 = arith.constant 9.99999974E-6 : f32
    %388 = vector.broadcast %cst_144 : f32 to vector<16x1xf32>
    %389 = arith.addf %385, %388 : vector<16x1xf32>
    %390 = math.rsqrt %389 : vector<16x1xf32>
    %391 = vector.broadcast %390 : vector<16x1xf32> to vector<16x32xf32>
    %392 = arith.mulf %387, %391 : vector<16x32xf32>
    %393 = vector.broadcast %372 : vector<1x32xf32> to vector<16x32xf32>
    %394 = arith.mulf %392, %393 : vector<16x32xf32>
    %395 = vector.broadcast %374 : vector<1x32xf32> to vector<16x32xf32>
    %396 = arith.addf %394, %395 : vector<16x32xf32>
    %c2_145 = arith.constant 2 : index
    %c0_146 = arith.constant 0 : index
    %c0_147 = arith.constant 0 : index
    %397 = vector.load %arg3[%c2_145, %c0_146, %c0_147] : memref<4x32x96xf32, #tpu.memory_space<vmem>>, vector<1x32x96xf32>
    %398 = vector.shape_cast %397 : vector<1x32x96xf32> to vector<32x96xf32>
    %c2_148 = arith.constant 2 : index
    %c0_149 = arith.constant 0 : index
    %c0_150 = arith.constant 0 : index
    %399 = vector.load %arg4[%c2_148, %c0_149, %c0_150] : memref<4x1x96xf32, #tpu.memory_space<vmem>>, vector<1x1x96xf32>
    %400 = vector.shape_cast %399 : vector<1x1x96xf32> to vector<1x96xf32>
    %cst_151 = arith.constant dense<0.000000e+00> : vector<16x96xf32>
    %401 = tpu.matmul %396, %398, %cst_151 {dimension_numbers = #tpu.dot_dimension_numbers<[1], [0], [0], [1], [0, 0, 1, 1], [], []>} : vector<16x32xf32>, vector<32x96xf32>, vector<16x96xf32> -> vector<16x96xf32>
    %402 = vector.broadcast %400 : vector<1x96xf32> to vector<16x96xf32>
    %403 = arith.addf %401, %402 : vector<16x96xf32>
    %404 = vector.extract_strided_slice %403 {offsets = [0, 0], sizes = [16, 32], strides = [1, 1]} : vector<16x96xf32> to vector<16x32xf32>
    %405 = vector.extract_strided_slice %403 {offsets = [0, 32], sizes = [16, 32], strides = [1, 1]} : vector<16x96xf32> to vector<16x32xf32>
    %406 = vector.extract_strided_slice %403 {offsets = [0, 64], sizes = [16, 32], strides = [1, 1]} : vector<16x96xf32> to vector<16x32xf32>
    %407 = vector.extract_strided_slice %404 {offsets = [0, 0], sizes = [8, 32], strides = [1, 1]} : vector<16x32xf32> to vector<8x32xf32>
    %408 = vector.extract_strided_slice %405 {offsets = [0, 0], sizes = [8, 32], strides = [1, 1]} : vector<16x32xf32> to vector<8x32xf32>
    %409 = vector.extract_strided_slice %406 {offsets = [0, 0], sizes = [8, 32], strides = [1, 1]} : vector<16x32xf32> to vector<8x32xf32>
    %410 = vector.extract_strided_slice %407 {offsets = [0, 0], sizes = [8, 8], strides = [1, 1]} : vector<8x32xf32> to vector<8x8xf32>
    %411 = vector.extract_strided_slice %408 {offsets = [0, 0], sizes = [8, 8], strides = [1, 1]} : vector<8x32xf32> to vector<8x8xf32>
    %412 = vector.extract_strided_slice %409 {offsets = [0, 0], sizes = [8, 8], strides = [1, 1]} : vector<8x32xf32> to vector<8x8xf32>
    %cst_152 = arith.constant dense<0.000000e+00> : vector<8x8xf32>
    %413 = tpu.matmul %410, %411, %cst_152 {dimension_numbers = #tpu.dot_dimension_numbers<[1], [1], [0], [0], [0, 0, 1, 0], [], []>} : vector<8x8xf32>, vector<8x8xf32>, vector<8x8xf32> -> vector<8x8xf32>
    %414 = arith.addf %413, %9 : vector<8x8xf32>
    %cst_153 = arith.constant dense<0xFF800000> : vector<8xf32>
    %415 = vector.multi_reduction <maximumf>, %414, %cst_153 [1] : vector<8x8xf32> to vector<8xf32>
    %416 = vector.shape_cast %415 : vector<8xf32> to vector<8x1xf32>
    %417 = vector.broadcast %416 : vector<8x1xf32> to vector<8x8xf32>
    %418 = arith.subf %414, %417 : vector<8x8xf32>
    %419 = math.exp %418 : vector<8x8xf32>
    %cst_154 = arith.constant dense<0.000000e+00> : vector<8xf32>
    %420 = vector.multi_reduction <add>, %419, %cst_154 [1] : vector<8x8xf32> to vector<8xf32>
    %421 = vector.shape_cast %420 : vector<8xf32> to vector<8x1xf32>
    %422 = vector.broadcast %421 : vector<8x1xf32> to vector<8x8xf32>
    %423 = arith.divf %419, %422 : vector<8x8xf32>
    %cst_155 = arith.constant dense<0.000000e+00> : vector<8x8xf32>
    %424 = tpu.matmul %423, %412, %cst_155 {dimension_numbers = #tpu.dot_dimension_numbers<[1], [0], [0], [1], [0, 0, 1, 1], [], []>} : vector<8x8xf32>, vector<8x8xf32>, vector<8x8xf32> -> vector<8x8xf32>
    %425 = vector.extract_strided_slice %407 {offsets = [0, 8], sizes = [8, 8], strides = [1, 1]} : vector<8x32xf32> to vector<8x8xf32>
    %426 = vector.extract_strided_slice %408 {offsets = [0, 8], sizes = [8, 8], strides = [1, 1]} : vector<8x32xf32> to vector<8x8xf32>
    %427 = vector.extract_strided_slice %409 {offsets = [0, 8], sizes = [8, 8], strides = [1, 1]} : vector<8x32xf32> to vector<8x8xf32>
    %cst_156 = arith.constant dense<0.000000e+00> : vector<8x8xf32>
    %428 = tpu.matmul %425, %426, %cst_156 {dimension_numbers = #tpu.dot_dimension_numbers<[1], [1], [0], [0], [0, 0, 1, 0], [], []>} : vector<8x8xf32>, vector<8x8xf32>, vector<8x8xf32> -> vector<8x8xf32>
    %429 = arith.addf %428, %9 : vector<8x8xf32>
    %cst_157 = arith.constant dense<0xFF800000> : vector<8xf32>
    %430 = vector.multi_reduction <maximumf>, %429, %cst_157 [1] : vector<8x8xf32> to vector<8xf32>
    %431 = vector.shape_cast %430 : vector<8xf32> to vector<8x1xf32>
    %432 = vector.broadcast %431 : vector<8x1xf32> to vector<8x8xf32>
    %433 = arith.subf %429, %432 : vector<8x8xf32>
    %434 = math.exp %433 : vector<8x8xf32>
    %cst_158 = arith.constant dense<0.000000e+00> : vector<8xf32>
    %435 = vector.multi_reduction <add>, %434, %cst_158 [1] : vector<8x8xf32> to vector<8xf32>
    %436 = vector.shape_cast %435 : vector<8xf32> to vector<8x1xf32>
    %437 = vector.broadcast %436 : vector<8x1xf32> to vector<8x8xf32>
    %438 = arith.divf %434, %437 : vector<8x8xf32>
    %cst_159 = arith.constant dense<0.000000e+00> : vector<8x8xf32>
    %439 = tpu.matmul %438, %427, %cst_159 {dimension_numbers = #tpu.dot_dimension_numbers<[1], [0], [0], [1], [0, 0, 1, 1], [], []>} : vector<8x8xf32>, vector<8x8xf32>, vector<8x8xf32> -> vector<8x8xf32>
    %440 = vector.extract_strided_slice %407 {offsets = [0, 16], sizes = [8, 8], strides = [1, 1]} : vector<8x32xf32> to vector<8x8xf32>
    %441 = vector.extract_strided_slice %408 {offsets = [0, 16], sizes = [8, 8], strides = [1, 1]} : vector<8x32xf32> to vector<8x8xf32>
    %442 = vector.extract_strided_slice %409 {offsets = [0, 16], sizes = [8, 8], strides = [1, 1]} : vector<8x32xf32> to vector<8x8xf32>
    %cst_160 = arith.constant dense<0.000000e+00> : vector<8x8xf32>
    %443 = tpu.matmul %440, %441, %cst_160 {dimension_numbers = #tpu.dot_dimension_numbers<[1], [1], [0], [0], [0, 0, 1, 0], [], []>} : vector<8x8xf32>, vector<8x8xf32>, vector<8x8xf32> -> vector<8x8xf32>
    %444 = arith.addf %443, %9 : vector<8x8xf32>
    %cst_161 = arith.constant dense<0xFF800000> : vector<8xf32>
    %445 = vector.multi_reduction <maximumf>, %444, %cst_161 [1] : vector<8x8xf32> to vector<8xf32>
    %446 = vector.shape_cast %445 : vector<8xf32> to vector<8x1xf32>
    %447 = vector.broadcast %446 : vector<8x1xf32> to vector<8x8xf32>
    %448 = arith.subf %444, %447 : vector<8x8xf32>
    %449 = math.exp %448 : vector<8x8xf32>
    %cst_162 = arith.constant dense<0.000000e+00> : vector<8xf32>
    %450 = vector.multi_reduction <add>, %449, %cst_162 [1] : vector<8x8xf32> to vector<8xf32>
    %451 = vector.shape_cast %450 : vector<8xf32> to vector<8x1xf32>
    %452 = vector.broadcast %451 : vector<8x1xf32> to vector<8x8xf32>
    %453 = arith.divf %449, %452 : vector<8x8xf32>
    %cst_163 = arith.constant dense<0.000000e+00> : vector<8x8xf32>
    %454 = tpu.matmul %453, %442, %cst_163 {dimension_numbers = #tpu.dot_dimension_numbers<[1], [0], [0], [1], [0, 0, 1, 1], [], []>} : vector<8x8xf32>, vector<8x8xf32>, vector<8x8xf32> -> vector<8x8xf32>
    %455 = vector.extract_strided_slice %407 {offsets = [0, 24], sizes = [8, 8], strides = [1, 1]} : vector<8x32xf32> to vector<8x8xf32>
    %456 = vector.extract_strided_slice %408 {offsets = [0, 24], sizes = [8, 8], strides = [1, 1]} : vector<8x32xf32> to vector<8x8xf32>
    %457 = vector.extract_strided_slice %409 {offsets = [0, 24], sizes = [8, 8], strides = [1, 1]} : vector<8x32xf32> to vector<8x8xf32>
    %cst_164 = arith.constant dense<0.000000e+00> : vector<8x8xf32>
    %458 = tpu.matmul %455, %456, %cst_164 {dimension_numbers = #tpu.dot_dimension_numbers<[1], [1], [0], [0], [0, 0, 1, 0], [], []>} : vector<8x8xf32>, vector<8x8xf32>, vector<8x8xf32> -> vector<8x8xf32>
    %459 = arith.addf %458, %9 : vector<8x8xf32>
    %cst_165 = arith.constant dense<0xFF800000> : vector<8xf32>
    %460 = vector.multi_reduction <maximumf>, %459, %cst_165 [1] : vector<8x8xf32> to vector<8xf32>
    %461 = vector.shape_cast %460 : vector<8xf32> to vector<8x1xf32>
    %462 = vector.broadcast %461 : vector<8x1xf32> to vector<8x8xf32>
    %463 = arith.subf %459, %462 : vector<8x8xf32>
    %464 = math.exp %463 : vector<8x8xf32>
    %cst_166 = arith.constant dense<0.000000e+00> : vector<8xf32>
    %465 = vector.multi_reduction <add>, %464, %cst_166 [1] : vector<8x8xf32> to vector<8xf32>
    %466 = vector.shape_cast %465 : vector<8xf32> to vector<8x1xf32>
    %467 = vector.broadcast %466 : vector<8x1xf32> to vector<8x8xf32>
    %468 = arith.divf %464, %467 : vector<8x8xf32>
    %cst_167 = arith.constant dense<0.000000e+00> : vector<8x8xf32>
    %469 = tpu.matmul %468, %457, %cst_167 {dimension_numbers = #tpu.dot_dimension_numbers<[1], [0], [0], [1], [0, 0, 1, 1], [], []>} : vector<8x8xf32>, vector<8x8xf32>, vector<8x8xf32> -> vector<8x8xf32>
    %470 = tpu.concatenate %424, %439, %454, %469 in 1 : vector<8x8xf32>, vector<8x8xf32>, vector<8x8xf32>, vector<8x8xf32> -> vector<8x32xf32>
    %471 = vector.extract_strided_slice %404 {offsets = [8, 0], sizes = [8, 32], strides = [1, 1]} : vector<16x32xf32> to vector<8x32xf32>
    %472 = vector.extract_strided_slice %405 {offsets = [8, 0], sizes = [8, 32], strides = [1, 1]} : vector<16x32xf32> to vector<8x32xf32>
    %473 = vector.extract_strided_slice %406 {offsets = [8, 0], sizes = [8, 32], strides = [1, 1]} : vector<16x32xf32> to vector<8x32xf32>
    %474 = vector.extract_strided_slice %471 {offsets = [0, 0], sizes = [8, 8], strides = [1, 1]} : vector<8x32xf32> to vector<8x8xf32>
    %475 = vector.extract_strided_slice %472 {offsets = [0, 0], sizes = [8, 8], strides = [1, 1]} : vector<8x32xf32> to vector<8x8xf32>
    %476 = vector.extract_strided_slice %473 {offsets = [0, 0], sizes = [8, 8], strides = [1, 1]} : vector<8x32xf32> to vector<8x8xf32>
    %cst_168 = arith.constant dense<0.000000e+00> : vector<8x8xf32>
    %477 = tpu.matmul %474, %475, %cst_168 {dimension_numbers = #tpu.dot_dimension_numbers<[1], [1], [0], [0], [0, 0, 1, 0], [], []>} : vector<8x8xf32>, vector<8x8xf32>, vector<8x8xf32> -> vector<8x8xf32>
    %478 = arith.addf %477, %9 : vector<8x8xf32>
    %cst_169 = arith.constant dense<0xFF800000> : vector<8xf32>
    %479 = vector.multi_reduction <maximumf>, %478, %cst_169 [1] : vector<8x8xf32> to vector<8xf32>
    %480 = vector.shape_cast %479 : vector<8xf32> to vector<8x1xf32>
    %481 = vector.broadcast %480 : vector<8x1xf32> to vector<8x8xf32>
    %482 = arith.subf %478, %481 : vector<8x8xf32>
    %483 = math.exp %482 : vector<8x8xf32>
    %cst_170 = arith.constant dense<0.000000e+00> : vector<8xf32>
    %484 = vector.multi_reduction <add>, %483, %cst_170 [1] : vector<8x8xf32> to vector<8xf32>
    %485 = vector.shape_cast %484 : vector<8xf32> to vector<8x1xf32>
    %486 = vector.broadcast %485 : vector<8x1xf32> to vector<8x8xf32>
    %487 = arith.divf %483, %486 : vector<8x8xf32>
    %cst_171 = arith.constant dense<0.000000e+00> : vector<8x8xf32>
    %488 = tpu.matmul %487, %476, %cst_171 {dimension_numbers = #tpu.dot_dimension_numbers<[1], [0], [0], [1], [0, 0, 1, 1], [], []>} : vector<8x8xf32>, vector<8x8xf32>, vector<8x8xf32> -> vector<8x8xf32>
    %489 = vector.extract_strided_slice %471 {offsets = [0, 8], sizes = [8, 8], strides = [1, 1]} : vector<8x32xf32> to vector<8x8xf32>
    %490 = vector.extract_strided_slice %472 {offsets = [0, 8], sizes = [8, 8], strides = [1, 1]} : vector<8x32xf32> to vector<8x8xf32>
    %491 = vector.extract_strided_slice %473 {offsets = [0, 8], sizes = [8, 8], strides = [1, 1]} : vector<8x32xf32> to vector<8x8xf32>
    %cst_172 = arith.constant dense<0.000000e+00> : vector<8x8xf32>
    %492 = tpu.matmul %489, %490, %cst_172 {dimension_numbers = #tpu.dot_dimension_numbers<[1], [1], [0], [0], [0, 0, 1, 0], [], []>} : vector<8x8xf32>, vector<8x8xf32>, vector<8x8xf32> -> vector<8x8xf32>
    %493 = arith.addf %492, %9 : vector<8x8xf32>
    %cst_173 = arith.constant dense<0xFF800000> : vector<8xf32>
    %494 = vector.multi_reduction <maximumf>, %493, %cst_173 [1] : vector<8x8xf32> to vector<8xf32>
    %495 = vector.shape_cast %494 : vector<8xf32> to vector<8x1xf32>
    %496 = vector.broadcast %495 : vector<8x1xf32> to vector<8x8xf32>
    %497 = arith.subf %493, %496 : vector<8x8xf32>
    %498 = math.exp %497 : vector<8x8xf32>
    %cst_174 = arith.constant dense<0.000000e+00> : vector<8xf32>
    %499 = vector.multi_reduction <add>, %498, %cst_174 [1] : vector<8x8xf32> to vector<8xf32>
    %500 = vector.shape_cast %499 : vector<8xf32> to vector<8x1xf32>
    %501 = vector.broadcast %500 : vector<8x1xf32> to vector<8x8xf32>
    %502 = arith.divf %498, %501 : vector<8x8xf32>
    %cst_175 = arith.constant dense<0.000000e+00> : vector<8x8xf32>
    %503 = tpu.matmul %502, %491, %cst_175 {dimension_numbers = #tpu.dot_dimension_numbers<[1], [0], [0], [1], [0, 0, 1, 1], [], []>} : vector<8x8xf32>, vector<8x8xf32>, vector<8x8xf32> -> vector<8x8xf32>
    %504 = vector.extract_strided_slice %471 {offsets = [0, 16], sizes = [8, 8], strides = [1, 1]} : vector<8x32xf32> to vector<8x8xf32>
    %505 = vector.extract_strided_slice %472 {offsets = [0, 16], sizes = [8, 8], strides = [1, 1]} : vector<8x32xf32> to vector<8x8xf32>
    %506 = vector.extract_strided_slice %473 {offsets = [0, 16], sizes = [8, 8], strides = [1, 1]} : vector<8x32xf32> to vector<8x8xf32>
    %cst_176 = arith.constant dense<0.000000e+00> : vector<8x8xf32>
    %507 = tpu.matmul %504, %505, %cst_176 {dimension_numbers = #tpu.dot_dimension_numbers<[1], [1], [0], [0], [0, 0, 1, 0], [], []>} : vector<8x8xf32>, vector<8x8xf32>, vector<8x8xf32> -> vector<8x8xf32>
    %508 = arith.addf %507, %9 : vector<8x8xf32>
    %cst_177 = arith.constant dense<0xFF800000> : vector<8xf32>
    %509 = vector.multi_reduction <maximumf>, %508, %cst_177 [1] : vector<8x8xf32> to vector<8xf32>
    %510 = vector.shape_cast %509 : vector<8xf32> to vector<8x1xf32>
    %511 = vector.broadcast %510 : vector<8x1xf32> to vector<8x8xf32>
    %512 = arith.subf %508, %511 : vector<8x8xf32>
    %513 = math.exp %512 : vector<8x8xf32>
    %cst_178 = arith.constant dense<0.000000e+00> : vector<8xf32>
    %514 = vector.multi_reduction <add>, %513, %cst_178 [1] : vector<8x8xf32> to vector<8xf32>
    %515 = vector.shape_cast %514 : vector<8xf32> to vector<8x1xf32>
    %516 = vector.broadcast %515 : vector<8x1xf32> to vector<8x8xf32>
    %517 = arith.divf %513, %516 : vector<8x8xf32>
    %cst_179 = arith.constant dense<0.000000e+00> : vector<8x8xf32>
    %518 = tpu.matmul %517, %506, %cst_179 {dimension_numbers = #tpu.dot_dimension_numbers<[1], [0], [0], [1], [0, 0, 1, 1], [], []>} : vector<8x8xf32>, vector<8x8xf32>, vector<8x8xf32> -> vector<8x8xf32>
    %519 = vector.extract_strided_slice %471 {offsets = [0, 24], sizes = [8, 8], strides = [1, 1]} : vector<8x32xf32> to vector<8x8xf32>
    %520 = vector.extract_strided_slice %472 {offsets = [0, 24], sizes = [8, 8], strides = [1, 1]} : vector<8x32xf32> to vector<8x8xf32>
    %521 = vector.extract_strided_slice %473 {offsets = [0, 24], sizes = [8, 8], strides = [1, 1]} : vector<8x32xf32> to vector<8x8xf32>
    %cst_180 = arith.constant dense<0.000000e+00> : vector<8x8xf32>
    %522 = tpu.matmul %519, %520, %cst_180 {dimension_numbers = #tpu.dot_dimension_numbers<[1], [1], [0], [0], [0, 0, 1, 0], [], []>} : vector<8x8xf32>, vector<8x8xf32>, vector<8x8xf32> -> vector<8x8xf32>
    %523 = arith.addf %522, %9 : vector<8x8xf32>
    %cst_181 = arith.constant dense<0xFF800000> : vector<8xf32>
    %524 = vector.multi_reduction <maximumf>, %523, %cst_181 [1] : vector<8x8xf32> to vector<8xf32>
    %525 = vector.shape_cast %524 : vector<8xf32> to vector<8x1xf32>
    %526 = vector.broadcast %525 : vector<8x1xf32> to vector<8x8xf32>
    %527 = arith.subf %523, %526 : vector<8x8xf32>
    %528 = math.exp %527 : vector<8x8xf32>
    %cst_182 = arith.constant dense<0.000000e+00> : vector<8xf32>
    %529 = vector.multi_reduction <add>, %528, %cst_182 [1] : vector<8x8xf32> to vector<8xf32>
    %530 = vector.shape_cast %529 : vector<8xf32> to vector<8x1xf32>
    %531 = vector.broadcast %530 : vector<8x1xf32> to vector<8x8xf32>
    %532 = arith.divf %528, %531 : vector<8x8xf32>
    %cst_183 = arith.constant dense<0.000000e+00> : vector<8x8xf32>
    %533 = tpu.matmul %532, %521, %cst_183 {dimension_numbers = #tpu.dot_dimension_numbers<[1], [0], [0], [1], [0, 0, 1, 1], [], []>} : vector<8x8xf32>, vector<8x8xf32>, vector<8x8xf32> -> vector<8x8xf32>
    %534 = tpu.concatenate %488, %503, %518, %533 in 1 : vector<8x8xf32>, vector<8x8xf32>, vector<8x8xf32>, vector<8x8xf32> -> vector<8x32xf32>
    %535 = tpu.concatenate %470, %534 in 0 : vector<8x32xf32>, vector<8x32xf32> -> vector<16x32xf32>
    %c2_184 = arith.constant 2 : index
    %c0_185 = arith.constant 0 : index
    %c0_186 = arith.constant 0 : index
    %536 = vector.load %arg5[%c2_184, %c0_185, %c0_186] : memref<4x32x32xf32, #tpu.memory_space<vmem>>, vector<1x32x32xf32>
    %537 = vector.shape_cast %536 : vector<1x32x32xf32> to vector<32x32xf32>
    %cst_187 = arith.constant dense<0.000000e+00> : vector<16x32xf32>
    %538 = tpu.matmul %535, %537, %cst_187 {dimension_numbers = #tpu.dot_dimension_numbers<[1], [0], [0], [1], [0, 0, 1, 1], [], []>} : vector<16x32xf32>, vector<32x32xf32>, vector<16x32xf32> -> vector<16x32xf32>
    %c2_188 = arith.constant 2 : index
    %c0_189 = arith.constant 0 : index
    %c0_190 = arith.constant 0 : index
    %539 = vector.load %arg6[%c2_188, %c0_189, %c0_190] : memref<4x1x32xf32, #tpu.memory_space<vmem>>, vector<1x1x32xf32>
    %540 = vector.shape_cast %539 : vector<1x1x32xf32> to vector<1x32xf32>
    %541 = vector.broadcast %540 : vector<1x32xf32> to vector<16x32xf32>
    %542 = arith.addf %538, %541 : vector<16x32xf32>
    %543 = arith.addf %396, %542 : vector<16x32xf32>
    %c3 = arith.constant 3 : index
    %c0_191 = arith.constant 0 : index
    %c0_192 = arith.constant 0 : index
    %544 = vector.load %arg11[%c3, %c0_191, %c0_192] : memref<6x1x32xf32, #tpu.memory_space<vmem>>, vector<1x1x32xf32>
    %545 = vector.shape_cast %544 : vector<1x1x32xf32> to vector<1x32xf32>
    %c3_193 = arith.constant 3 : index
    %c0_194 = arith.constant 0 : index
    %c0_195 = arith.constant 0 : index
    %546 = vector.load %arg12[%c3_193, %c0_194, %c0_195] : memref<6x1x32xf32, #tpu.memory_space<vmem>>, vector<1x1x32xf32>
    %547 = vector.shape_cast %546 : vector<1x1x32xf32> to vector<1x32xf32>
    %cst_196 = arith.constant dense<0.000000e+00> : vector<16xf32>
    %548 = vector.multi_reduction <add>, %543, %cst_196 [1] : vector<16x32xf32> to vector<16xf32>
    %549 = vector.shape_cast %548 : vector<16xf32> to vector<16x1xf32>
    %cst_197 = arith.constant 3.200000e+01 : f32
    %550 = vector.broadcast %cst_197 : f32 to vector<16x1xf32>
    %551 = arith.divf %549, %550 : vector<16x1xf32>
    %552 = vector.broadcast %551 : vector<16x1xf32> to vector<16x32xf32>
    %553 = arith.subf %543, %552 : vector<16x32xf32>
    %554 = arith.mulf %553, %553 : vector<16x32xf32>
    %cst_198 = arith.constant dense<0.000000e+00> : vector<16xf32>
    %555 = vector.multi_reduction <add>, %554, %cst_198 [1] : vector<16x32xf32> to vector<16xf32>
    %556 = vector.shape_cast %555 : vector<16xf32> to vector<16x1xf32>
    %cst_199 = arith.constant 3.200000e+01 : f32
    %557 = vector.broadcast %cst_199 : f32 to vector<16x1xf32>
    %558 = arith.divf %556, %557 : vector<16x1xf32>
    %559 = vector.broadcast %551 : vector<16x1xf32> to vector<16x32xf32>
    %560 = arith.subf %543, %559 : vector<16x32xf32>
    %cst_200 = arith.constant 9.99999974E-6 : f32
    %561 = vector.broadcast %cst_200 : f32 to vector<16x1xf32>
    %562 = arith.addf %558, %561 : vector<16x1xf32>
    %563 = math.rsqrt %562 : vector<16x1xf32>
    %564 = vector.broadcast %563 : vector<16x1xf32> to vector<16x32xf32>
    %565 = arith.mulf %560, %564 : vector<16x32xf32>
    %566 = vector.broadcast %545 : vector<1x32xf32> to vector<16x32xf32>
    %567 = arith.mulf %565, %566 : vector<16x32xf32>
    %568 = vector.broadcast %547 : vector<1x32xf32> to vector<16x32xf32>
    %569 = arith.addf %567, %568 : vector<16x32xf32>
    %c3_201 = arith.constant 3 : index
    %c0_202 = arith.constant 0 : index
    %c0_203 = arith.constant 0 : index
    %570 = vector.load %arg3[%c3_201, %c0_202, %c0_203] : memref<4x32x96xf32, #tpu.memory_space<vmem>>, vector<1x32x96xf32>
    %571 = vector.shape_cast %570 : vector<1x32x96xf32> to vector<32x96xf32>
    %c3_204 = arith.constant 3 : index
    %c0_205 = arith.constant 0 : index
    %c0_206 = arith.constant 0 : index
    %572 = vector.load %arg4[%c3_204, %c0_205, %c0_206] : memref<4x1x96xf32, #tpu.memory_space<vmem>>, vector<1x1x96xf32>
    %573 = vector.shape_cast %572 : vector<1x1x96xf32> to vector<1x96xf32>
    %574 = vector.extract_strided_slice %571 {offsets = [0, 0], sizes = [32, 32], strides = [1, 1]} : vector<32x96xf32> to vector<32x32xf32>
    %cst_207 = arith.constant dense<0.000000e+00> : vector<16x32xf32>
    %575 = tpu.matmul %569, %574, %cst_207 {dimension_numbers = #tpu.dot_dimension_numbers<[1], [0], [0], [1], [0, 0, 1, 1], [], []>} : vector<16x32xf32>, vector<32x32xf32>, vector<16x32xf32> -> vector<16x32xf32>
    %576 = vector.extract_strided_slice %573 {offsets = [0, 0], sizes = [1, 32], strides = [1, 1]} : vector<1x96xf32> to vector<1x32xf32>
    %577 = vector.broadcast %576 : vector<1x32xf32> to vector<16x32xf32>
    %578 = arith.addf %575, %577 : vector<16x32xf32>
    %579 = vector.extract_strided_slice %571 {offsets = [0, 32], sizes = [32, 64], strides = [1, 1]} : vector<32x96xf32> to vector<32x64xf32>
    %cst_208 = arith.constant dense<0.000000e+00> : vector<32x64xf32>
    %580 = tpu.matmul %3, %579, %cst_208 {dimension_numbers = #tpu.dot_dimension_numbers<[1], [0], [0], [1], [0, 0, 1, 1], [], []>} : vector<32x32xf32>, vector<32x64xf32>, vector<32x64xf32> -> vector<32x64xf32>
    %581 = vector.extract_strided_slice %573 {offsets = [0, 32], sizes = [1, 64], strides = [1, 1]} : vector<1x96xf32> to vector<1x64xf32>
    %582 = vector.broadcast %581 : vector<1x64xf32> to vector<32x64xf32>
    %583 = arith.addf %580, %582 : vector<32x64xf32>
    %584 = vector.extract_strided_slice %583 {offsets = [0, 0], sizes = [32, 32], strides = [1, 1]} : vector<32x64xf32> to vector<32x32xf32>
    %585 = vector.extract_strided_slice %583 {offsets = [0, 32], sizes = [32, 32], strides = [1, 1]} : vector<32x64xf32> to vector<32x32xf32>
    %586 = vector.extract_strided_slice %578 {offsets = [0, 0], sizes = [8, 32], strides = [1, 1]} : vector<16x32xf32> to vector<8x32xf32>
    %587 = vector.extract_strided_slice %584 {offsets = [0, 0], sizes = [16, 32], strides = [1, 1]} : vector<32x32xf32> to vector<16x32xf32>
    %588 = vector.extract_strided_slice %585 {offsets = [0, 0], sizes = [16, 32], strides = [1, 1]} : vector<32x32xf32> to vector<16x32xf32>
    %589 = vector.extract_strided_slice %586 {offsets = [0, 0], sizes = [8, 8], strides = [1, 1]} : vector<8x32xf32> to vector<8x8xf32>
    %590 = vector.extract_strided_slice %587 {offsets = [0, 0], sizes = [16, 8], strides = [1, 1]} : vector<16x32xf32> to vector<16x8xf32>
    %591 = vector.extract_strided_slice %588 {offsets = [0, 0], sizes = [16, 8], strides = [1, 1]} : vector<16x32xf32> to vector<16x8xf32>
    %cst_209 = arith.constant dense<0.000000e+00> : vector<8x16xf32>
    %592 = tpu.matmul %589, %590, %cst_209 {dimension_numbers = #tpu.dot_dimension_numbers<[1], [1], [0], [0], [0, 0, 1, 0], [], []>} : vector<8x8xf32>, vector<16x8xf32>, vector<8x16xf32> -> vector<8x16xf32>
    %cst_210 = arith.constant dense<0xFF800000> : vector<8xf32>
    %593 = vector.multi_reduction <maximumf>, %592, %cst_210 [1] : vector<8x16xf32> to vector<8xf32>
    %594 = vector.shape_cast %593 : vector<8xf32> to vector<8x1xf32>
    %595 = vector.broadcast %594 : vector<8x1xf32> to vector<8x16xf32>
    %596 = arith.subf %592, %595 : vector<8x16xf32>
    %597 = math.exp %596 : vector<8x16xf32>
    %cst_211 = arith.constant dense<0.000000e+00> : vector<8xf32>
    %598 = vector.multi_reduction <add>, %597, %cst_211 [1] : vector<8x16xf32> to vector<8xf32>
    %599 = vector.shape_cast %598 : vector<8xf32> to vector<8x1xf32>
    %600 = vector.broadcast %599 : vector<8x1xf32> to vector<8x16xf32>
    %601 = arith.divf %597, %600 : vector<8x16xf32>
    %cst_212 = arith.constant dense<0.000000e+00> : vector<8x8xf32>
    %602 = tpu.matmul %601, %591, %cst_212 {dimension_numbers = #tpu.dot_dimension_numbers<[1], [0], [0], [1], [0, 0, 1, 1], [], []>} : vector<8x16xf32>, vector<16x8xf32>, vector<8x8xf32> -> vector<8x8xf32>
    %603 = vector.extract_strided_slice %586 {offsets = [0, 8], sizes = [8, 8], strides = [1, 1]} : vector<8x32xf32> to vector<8x8xf32>
    %604 = vector.extract_strided_slice %587 {offsets = [0, 8], sizes = [16, 8], strides = [1, 1]} : vector<16x32xf32> to vector<16x8xf32>
    %605 = vector.extract_strided_slice %588 {offsets = [0, 8], sizes = [16, 8], strides = [1, 1]} : vector<16x32xf32> to vector<16x8xf32>
    %cst_213 = arith.constant dense<0.000000e+00> : vector<8x16xf32>
    %606 = tpu.matmul %603, %604, %cst_213 {dimension_numbers = #tpu.dot_dimension_numbers<[1], [1], [0], [0], [0, 0, 1, 0], [], []>} : vector<8x8xf32>, vector<16x8xf32>, vector<8x16xf32> -> vector<8x16xf32>
    %cst_214 = arith.constant dense<0xFF800000> : vector<8xf32>
    %607 = vector.multi_reduction <maximumf>, %606, %cst_214 [1] : vector<8x16xf32> to vector<8xf32>
    %608 = vector.shape_cast %607 : vector<8xf32> to vector<8x1xf32>
    %609 = vector.broadcast %608 : vector<8x1xf32> to vector<8x16xf32>
    %610 = arith.subf %606, %609 : vector<8x16xf32>
    %611 = math.exp %610 : vector<8x16xf32>
    %cst_215 = arith.constant dense<0.000000e+00> : vector<8xf32>
    %612 = vector.multi_reduction <add>, %611, %cst_215 [1] : vector<8x16xf32> to vector<8xf32>
    %613 = vector.shape_cast %612 : vector<8xf32> to vector<8x1xf32>
    %614 = vector.broadcast %613 : vector<8x1xf32> to vector<8x16xf32>
    %615 = arith.divf %611, %614 : vector<8x16xf32>
    %cst_216 = arith.constant dense<0.000000e+00> : vector<8x8xf32>
    %616 = tpu.matmul %615, %605, %cst_216 {dimension_numbers = #tpu.dot_dimension_numbers<[1], [0], [0], [1], [0, 0, 1, 1], [], []>} : vector<8x16xf32>, vector<16x8xf32>, vector<8x8xf32> -> vector<8x8xf32>
    %617 = vector.extract_strided_slice %586 {offsets = [0, 16], sizes = [8, 8], strides = [1, 1]} : vector<8x32xf32> to vector<8x8xf32>
    %618 = vector.extract_strided_slice %587 {offsets = [0, 16], sizes = [16, 8], strides = [1, 1]} : vector<16x32xf32> to vector<16x8xf32>
    %619 = vector.extract_strided_slice %588 {offsets = [0, 16], sizes = [16, 8], strides = [1, 1]} : vector<16x32xf32> to vector<16x8xf32>
    %cst_217 = arith.constant dense<0.000000e+00> : vector<8x16xf32>
    %620 = tpu.matmul %617, %618, %cst_217 {dimension_numbers = #tpu.dot_dimension_numbers<[1], [1], [0], [0], [0, 0, 1, 0], [], []>} : vector<8x8xf32>, vector<16x8xf32>, vector<8x16xf32> -> vector<8x16xf32>
    %cst_218 = arith.constant dense<0xFF800000> : vector<8xf32>
    %621 = vector.multi_reduction <maximumf>, %620, %cst_218 [1] : vector<8x16xf32> to vector<8xf32>
    %622 = vector.shape_cast %621 : vector<8xf32> to vector<8x1xf32>
    %623 = vector.broadcast %622 : vector<8x1xf32> to vector<8x16xf32>
    %624 = arith.subf %620, %623 : vector<8x16xf32>
    %625 = math.exp %624 : vector<8x16xf32>
    %cst_219 = arith.constant dense<0.000000e+00> : vector<8xf32>
    %626 = vector.multi_reduction <add>, %625, %cst_219 [1] : vector<8x16xf32> to vector<8xf32>
    %627 = vector.shape_cast %626 : vector<8xf32> to vector<8x1xf32>
    %628 = vector.broadcast %627 : vector<8x1xf32> to vector<8x16xf32>
    %629 = arith.divf %625, %628 : vector<8x16xf32>
    %cst_220 = arith.constant dense<0.000000e+00> : vector<8x8xf32>
    %630 = tpu.matmul %629, %619, %cst_220 {dimension_numbers = #tpu.dot_dimension_numbers<[1], [0], [0], [1], [0, 0, 1, 1], [], []>} : vector<8x16xf32>, vector<16x8xf32>, vector<8x8xf32> -> vector<8x8xf32>
    %631 = vector.extract_strided_slice %586 {offsets = [0, 24], sizes = [8, 8], strides = [1, 1]} : vector<8x32xf32> to vector<8x8xf32>
    %632 = vector.extract_strided_slice %587 {offsets = [0, 24], sizes = [16, 8], strides = [1, 1]} : vector<16x32xf32> to vector<16x8xf32>
    %633 = vector.extract_strided_slice %588 {offsets = [0, 24], sizes = [16, 8], strides = [1, 1]} : vector<16x32xf32> to vector<16x8xf32>
    %cst_221 = arith.constant dense<0.000000e+00> : vector<8x16xf32>
    %634 = tpu.matmul %631, %632, %cst_221 {dimension_numbers = #tpu.dot_dimension_numbers<[1], [1], [0], [0], [0, 0, 1, 0], [], []>} : vector<8x8xf32>, vector<16x8xf32>, vector<8x16xf32> -> vector<8x16xf32>
    %cst_222 = arith.constant dense<0xFF800000> : vector<8xf32>
    %635 = vector.multi_reduction <maximumf>, %634, %cst_222 [1] : vector<8x16xf32> to vector<8xf32>
    %636 = vector.shape_cast %635 : vector<8xf32> to vector<8x1xf32>
    %637 = vector.broadcast %636 : vector<8x1xf32> to vector<8x16xf32>
    %638 = arith.subf %634, %637 : vector<8x16xf32>
    %639 = math.exp %638 : vector<8x16xf32>
    %cst_223 = arith.constant dense<0.000000e+00> : vector<8xf32>
    %640 = vector.multi_reduction <add>, %639, %cst_223 [1] : vector<8x16xf32> to vector<8xf32>
    %641 = vector.shape_cast %640 : vector<8xf32> to vector<8x1xf32>
    %642 = vector.broadcast %641 : vector<8x1xf32> to vector<8x16xf32>
    %643 = arith.divf %639, %642 : vector<8x16xf32>
    %cst_224 = arith.constant dense<0.000000e+00> : vector<8x8xf32>
    %644 = tpu.matmul %643, %633, %cst_224 {dimension_numbers = #tpu.dot_dimension_numbers<[1], [0], [0], [1], [0, 0, 1, 1], [], []>} : vector<8x16xf32>, vector<16x8xf32>, vector<8x8xf32> -> vector<8x8xf32>
    %645 = tpu.concatenate %602, %616, %630, %644 in 1 : vector<8x8xf32>, vector<8x8xf32>, vector<8x8xf32>, vector<8x8xf32> -> vector<8x32xf32>
    %646 = vector.extract_strided_slice %578 {offsets = [8, 0], sizes = [8, 32], strides = [1, 1]} : vector<16x32xf32> to vector<8x32xf32>
    %647 = vector.extract_strided_slice %584 {offsets = [16, 0], sizes = [16, 32], strides = [1, 1]} : vector<32x32xf32> to vector<16x32xf32>
    %648 = vector.extract_strided_slice %585 {offsets = [16, 0], sizes = [16, 32], strides = [1, 1]} : vector<32x32xf32> to vector<16x32xf32>
    %649 = vector.extract_strided_slice %646 {offsets = [0, 0], sizes = [8, 8], strides = [1, 1]} : vector<8x32xf32> to vector<8x8xf32>
    %650 = vector.extract_strided_slice %647 {offsets = [0, 0], sizes = [16, 8], strides = [1, 1]} : vector<16x32xf32> to vector<16x8xf32>
    %651 = vector.extract_strided_slice %648 {offsets = [0, 0], sizes = [16, 8], strides = [1, 1]} : vector<16x32xf32> to vector<16x8xf32>
    %cst_225 = arith.constant dense<0.000000e+00> : vector<8x16xf32>
    %652 = tpu.matmul %649, %650, %cst_225 {dimension_numbers = #tpu.dot_dimension_numbers<[1], [1], [0], [0], [0, 0, 1, 0], [], []>} : vector<8x8xf32>, vector<16x8xf32>, vector<8x16xf32> -> vector<8x16xf32>
    %cst_226 = arith.constant dense<0xFF800000> : vector<8xf32>
    %653 = vector.multi_reduction <maximumf>, %652, %cst_226 [1] : vector<8x16xf32> to vector<8xf32>
    %654 = vector.shape_cast %653 : vector<8xf32> to vector<8x1xf32>
    %655 = vector.broadcast %654 : vector<8x1xf32> to vector<8x16xf32>
    %656 = arith.subf %652, %655 : vector<8x16xf32>
    %657 = math.exp %656 : vector<8x16xf32>
    %cst_227 = arith.constant dense<0.000000e+00> : vector<8xf32>
    %658 = vector.multi_reduction <add>, %657, %cst_227 [1] : vector<8x16xf32> to vector<8xf32>
    %659 = vector.shape_cast %658 : vector<8xf32> to vector<8x1xf32>
    %660 = vector.broadcast %659 : vector<8x1xf32> to vector<8x16xf32>
    %661 = arith.divf %657, %660 : vector<8x16xf32>
    %cst_228 = arith.constant dense<0.000000e+00> : vector<8x8xf32>
    %662 = tpu.matmul %661, %651, %cst_228 {dimension_numbers = #tpu.dot_dimension_numbers<[1], [0], [0], [1], [0, 0, 1, 1], [], []>} : vector<8x16xf32>, vector<16x8xf32>, vector<8x8xf32> -> vector<8x8xf32>
    %663 = vector.extract_strided_slice %646 {offsets = [0, 8], sizes = [8, 8], strides = [1, 1]} : vector<8x32xf32> to vector<8x8xf32>
    %664 = vector.extract_strided_slice %647 {offsets = [0, 8], sizes = [16, 8], strides = [1, 1]} : vector<16x32xf32> to vector<16x8xf32>
    %665 = vector.extract_strided_slice %648 {offsets = [0, 8], sizes = [16, 8], strides = [1, 1]} : vector<16x32xf32> to vector<16x8xf32>
    %cst_229 = arith.constant dense<0.000000e+00> : vector<8x16xf32>
    %666 = tpu.matmul %663, %664, %cst_229 {dimension_numbers = #tpu.dot_dimension_numbers<[1], [1], [0], [0], [0, 0, 1, 0], [], []>} : vector<8x8xf32>, vector<16x8xf32>, vector<8x16xf32> -> vector<8x16xf32>
    %cst_230 = arith.constant dense<0xFF800000> : vector<8xf32>
    %667 = vector.multi_reduction <maximumf>, %666, %cst_230 [1] : vector<8x16xf32> to vector<8xf32>
    %668 = vector.shape_cast %667 : vector<8xf32> to vector<8x1xf32>
    %669 = vector.broadcast %668 : vector<8x1xf32> to vector<8x16xf32>
    %670 = arith.subf %666, %669 : vector<8x16xf32>
    %671 = math.exp %670 : vector<8x16xf32>
    %cst_231 = arith.constant dense<0.000000e+00> : vector<8xf32>
    %672 = vector.multi_reduction <add>, %671, %cst_231 [1] : vector<8x16xf32> to vector<8xf32>
    %673 = vector.shape_cast %672 : vector<8xf32> to vector<8x1xf32>
    %674 = vector.broadcast %673 : vector<8x1xf32> to vector<8x16xf32>
    %675 = arith.divf %671, %674 : vector<8x16xf32>
    %cst_232 = arith.constant dense<0.000000e+00> : vector<8x8xf32>
    %676 = tpu.matmul %675, %665, %cst_232 {dimension_numbers = #tpu.dot_dimension_numbers<[1], [0], [0], [1], [0, 0, 1, 1], [], []>} : vector<8x16xf32>, vector<16x8xf32>, vector<8x8xf32> -> vector<8x8xf32>
    %677 = vector.extract_strided_slice %646 {offsets = [0, 16], sizes = [8, 8], strides = [1, 1]} : vector<8x32xf32> to vector<8x8xf32>
    %678 = vector.extract_strided_slice %647 {offsets = [0, 16], sizes = [16, 8], strides = [1, 1]} : vector<16x32xf32> to vector<16x8xf32>
    %679 = vector.extract_strided_slice %648 {offsets = [0, 16], sizes = [16, 8], strides = [1, 1]} : vector<16x32xf32> to vector<16x8xf32>
    %cst_233 = arith.constant dense<0.000000e+00> : vector<8x16xf32>
    %680 = tpu.matmul %677, %678, %cst_233 {dimension_numbers = #tpu.dot_dimension_numbers<[1], [1], [0], [0], [0, 0, 1, 0], [], []>} : vector<8x8xf32>, vector<16x8xf32>, vector<8x16xf32> -> vector<8x16xf32>
    %cst_234 = arith.constant dense<0xFF800000> : vector<8xf32>
    %681 = vector.multi_reduction <maximumf>, %680, %cst_234 [1] : vector<8x16xf32> to vector<8xf32>
    %682 = vector.shape_cast %681 : vector<8xf32> to vector<8x1xf32>
    %683 = vector.broadcast %682 : vector<8x1xf32> to vector<8x16xf32>
    %684 = arith.subf %680, %683 : vector<8x16xf32>
    %685 = math.exp %684 : vector<8x16xf32>
    %cst_235 = arith.constant dense<0.000000e+00> : vector<8xf32>
    %686 = vector.multi_reduction <add>, %685, %cst_235 [1] : vector<8x16xf32> to vector<8xf32>
    %687 = vector.shape_cast %686 : vector<8xf32> to vector<8x1xf32>
    %688 = vector.broadcast %687 : vector<8x1xf32> to vector<8x16xf32>
    %689 = arith.divf %685, %688 : vector<8x16xf32>
    %cst_236 = arith.constant dense<0.000000e+00> : vector<8x8xf32>
    %690 = tpu.matmul %689, %679, %cst_236 {dimension_numbers = #tpu.dot_dimension_numbers<[1], [0], [0], [1], [0, 0, 1, 1], [], []>} : vector<8x16xf32>, vector<16x8xf32>, vector<8x8xf32> -> vector<8x8xf32>
    %691 = vector.extract_strided_slice %646 {offsets = [0, 24], sizes = [8, 8], strides = [1, 1]} : vector<8x32xf32> to vector<8x8xf32>
    %692 = vector.extract_strided_slice %647 {offsets = [0, 24], sizes = [16, 8], strides = [1, 1]} : vector<16x32xf32> to vector<16x8xf32>
    %693 = vector.extract_strided_slice %648 {offsets = [0, 24], sizes = [16, 8], strides = [1, 1]} : vector<16x32xf32> to vector<16x8xf32>
    %cst_237 = arith.constant dense<0.000000e+00> : vector<8x16xf32>
    %694 = tpu.matmul %691, %692, %cst_237 {dimension_numbers = #tpu.dot_dimension_numbers<[1], [1], [0], [0], [0, 0, 1, 0], [], []>} : vector<8x8xf32>, vector<16x8xf32>, vector<8x16xf32> -> vector<8x16xf32>
    %cst_238 = arith.constant dense<0xFF800000> : vector<8xf32>
    %695 = vector.multi_reduction <maximumf>, %694, %cst_238 [1] : vector<8x16xf32> to vector<8xf32>
    %696 = vector.shape_cast %695 : vector<8xf32> to vector<8x1xf32>
    %697 = vector.broadcast %696 : vector<8x1xf32> to vector<8x16xf32>
    %698 = arith.subf %694, %697 : vector<8x16xf32>
    %699 = math.exp %698 : vector<8x16xf32>
    %cst_239 = arith.constant dense<0.000000e+00> : vector<8xf32>
    %700 = vector.multi_reduction <add>, %699, %cst_239 [1] : vector<8x16xf32> to vector<8xf32>
    %701 = vector.shape_cast %700 : vector<8xf32> to vector<8x1xf32>
    %702 = vector.broadcast %701 : vector<8x1xf32> to vector<8x16xf32>
    %703 = arith.divf %699, %702 : vector<8x16xf32>
    %cst_240 = arith.constant dense<0.000000e+00> : vector<8x8xf32>
    %704 = tpu.matmul %703, %693, %cst_240 {dimension_numbers = #tpu.dot_dimension_numbers<[1], [0], [0], [1], [0, 0, 1, 1], [], []>} : vector<8x16xf32>, vector<16x8xf32>, vector<8x8xf32> -> vector<8x8xf32>
    %705 = tpu.concatenate %662, %676, %690, %704 in 1 : vector<8x8xf32>, vector<8x8xf32>, vector<8x8xf32>, vector<8x8xf32> -> vector<8x32xf32>
    %706 = tpu.concatenate %645, %705 in 0 : vector<8x32xf32>, vector<8x32xf32> -> vector<16x32xf32>
    %c3_241 = arith.constant 3 : index
    %c0_242 = arith.constant 0 : index
    %c0_243 = arith.constant 0 : index
    %707 = vector.load %arg5[%c3_241, %c0_242, %c0_243] : memref<4x32x32xf32, #tpu.memory_space<vmem>>, vector<1x32x32xf32>
    %708 = vector.shape_cast %707 : vector<1x32x32xf32> to vector<32x32xf32>
    %cst_244 = arith.constant dense<0.000000e+00> : vector<16x32xf32>
    %709 = tpu.matmul %706, %708, %cst_244 {dimension_numbers = #tpu.dot_dimension_numbers<[1], [0], [0], [1], [0, 0, 1, 1], [], []>} : vector<16x32xf32>, vector<32x32xf32>, vector<16x32xf32> -> vector<16x32xf32>
    %c3_245 = arith.constant 3 : index
    %c0_246 = arith.constant 0 : index
    %c0_247 = arith.constant 0 : index
    %710 = vector.load %arg6[%c3_245, %c0_246, %c0_247] : memref<4x1x32xf32, #tpu.memory_space<vmem>>, vector<1x1x32xf32>
    %711 = vector.shape_cast %710 : vector<1x1x32xf32> to vector<1x32xf32>
    %712 = vector.broadcast %711 : vector<1x32xf32> to vector<16x32xf32>
    %713 = arith.addf %709, %712 : vector<16x32xf32>
    %714 = arith.addf %569, %713 : vector<16x32xf32>
    %c4 = arith.constant 4 : index
    %c0_248 = arith.constant 0 : index
    %c0_249 = arith.constant 0 : index
    %715 = vector.load %arg11[%c4, %c0_248, %c0_249] : memref<6x1x32xf32, #tpu.memory_space<vmem>>, vector<1x1x32xf32>
    %716 = vector.shape_cast %715 : vector<1x1x32xf32> to vector<1x32xf32>
    %c4_250 = arith.constant 4 : index
    %c0_251 = arith.constant 0 : index
    %c0_252 = arith.constant 0 : index
    %717 = vector.load %arg12[%c4_250, %c0_251, %c0_252] : memref<6x1x32xf32, #tpu.memory_space<vmem>>, vector<1x1x32xf32>
    %718 = vector.shape_cast %717 : vector<1x1x32xf32> to vector<1x32xf32>
    %cst_253 = arith.constant dense<0.000000e+00> : vector<16xf32>
    %719 = vector.multi_reduction <add>, %714, %cst_253 [1] : vector<16x32xf32> to vector<16xf32>
    %720 = vector.shape_cast %719 : vector<16xf32> to vector<16x1xf32>
    %cst_254 = arith.constant 3.200000e+01 : f32
    %721 = vector.broadcast %cst_254 : f32 to vector<16x1xf32>
    %722 = arith.divf %720, %721 : vector<16x1xf32>
    %723 = vector.broadcast %722 : vector<16x1xf32> to vector<16x32xf32>
    %724 = arith.subf %714, %723 : vector<16x32xf32>
    %725 = arith.mulf %724, %724 : vector<16x32xf32>
    %cst_255 = arith.constant dense<0.000000e+00> : vector<16xf32>
    %726 = vector.multi_reduction <add>, %725, %cst_255 [1] : vector<16x32xf32> to vector<16xf32>
    %727 = vector.shape_cast %726 : vector<16xf32> to vector<16x1xf32>
    %cst_256 = arith.constant 3.200000e+01 : f32
    %728 = vector.broadcast %cst_256 : f32 to vector<16x1xf32>
    %729 = arith.divf %727, %728 : vector<16x1xf32>
    %730 = vector.broadcast %722 : vector<16x1xf32> to vector<16x32xf32>
    %731 = arith.subf %714, %730 : vector<16x32xf32>
    %cst_257 = arith.constant 9.99999974E-6 : f32
    %732 = vector.broadcast %cst_257 : f32 to vector<16x1xf32>
    %733 = arith.addf %729, %732 : vector<16x1xf32>
    %734 = math.rsqrt %733 : vector<16x1xf32>
    %735 = vector.broadcast %734 : vector<16x1xf32> to vector<16x32xf32>
    %736 = arith.mulf %731, %735 : vector<16x32xf32>
    %737 = vector.broadcast %716 : vector<1x32xf32> to vector<16x32xf32>
    %738 = arith.mulf %736, %737 : vector<16x32xf32>
    %739 = vector.broadcast %718 : vector<1x32xf32> to vector<16x32xf32>
    %740 = arith.addf %738, %739 : vector<16x32xf32>
    %c1_258 = arith.constant 1 : index
    %c0_259 = arith.constant 0 : index
    %c0_260 = arith.constant 0 : index
    %741 = vector.load %arg7[%c1_258, %c0_259, %c0_260] : memref<2x32x64xf32, #tpu.memory_space<vmem>>, vector<1x32x64xf32>
    %742 = vector.shape_cast %741 : vector<1x32x64xf32> to vector<32x64xf32>
    %cst_261 = arith.constant dense<0.000000e+00> : vector<16x64xf32>
    %743 = tpu.matmul %740, %742, %cst_261 {dimension_numbers = #tpu.dot_dimension_numbers<[1], [0], [0], [1], [0, 0, 1, 1], [], []>} : vector<16x32xf32>, vector<32x64xf32>, vector<16x64xf32> -> vector<16x64xf32>
    %c1_262 = arith.constant 1 : index
    %c0_263 = arith.constant 0 : index
    %c0_264 = arith.constant 0 : index
    %744 = vector.load %arg8[%c1_262, %c0_263, %c0_264] : memref<2x1x64xf32, #tpu.memory_space<vmem>>, vector<1x1x64xf32>
    %745 = vector.shape_cast %744 : vector<1x1x64xf32> to vector<1x64xf32>
    %746 = vector.broadcast %745 : vector<1x64xf32> to vector<16x64xf32>
    %747 = arith.addf %743, %746 : vector<16x64xf32>
    %cst_265 = arith.constant 0.000000e+00 : f32
    %748 = vector.broadcast %cst_265 : f32 to vector<16x64xf32>
    %749 = arith.maximumf %747, %748 : vector<16x64xf32>
    %c1_266 = arith.constant 1 : index
    %c0_267 = arith.constant 0 : index
    %c0_268 = arith.constant 0 : index
    %750 = vector.load %arg9[%c1_266, %c0_267, %c0_268] : memref<2x64x32xf32, #tpu.memory_space<vmem>>, vector<1x64x32xf32>
    %751 = vector.shape_cast %750 : vector<1x64x32xf32> to vector<64x32xf32>
    %cst_269 = arith.constant dense<0.000000e+00> : vector<16x32xf32>
    %752 = tpu.matmul %749, %751, %cst_269 {dimension_numbers = #tpu.dot_dimension_numbers<[1], [0], [0], [1], [0, 0, 1, 1], [], []>} : vector<16x64xf32>, vector<64x32xf32>, vector<16x32xf32> -> vector<16x32xf32>
    %c1_270 = arith.constant 1 : index
    %c0_271 = arith.constant 0 : index
    %c0_272 = arith.constant 0 : index
    %753 = vector.load %arg10[%c1_270, %c0_271, %c0_272] : memref<2x1x32xf32, #tpu.memory_space<vmem>>, vector<1x1x32xf32>
    %754 = vector.shape_cast %753 : vector<1x1x32xf32> to vector<1x32xf32>
    %755 = vector.broadcast %754 : vector<1x32xf32> to vector<16x32xf32>
    %756 = arith.addf %752, %755 : vector<16x32xf32>
    %757 = arith.addf %740, %756 : vector<16x32xf32>
    %c5 = arith.constant 5 : index
    %c0_273 = arith.constant 0 : index
    %c0_274 = arith.constant 0 : index
    %758 = vector.load %arg11[%c5, %c0_273, %c0_274] : memref<6x1x32xf32, #tpu.memory_space<vmem>>, vector<1x1x32xf32>
    %759 = vector.shape_cast %758 : vector<1x1x32xf32> to vector<1x32xf32>
    %c5_275 = arith.constant 5 : index
    %c0_276 = arith.constant 0 : index
    %c0_277 = arith.constant 0 : index
    %760 = vector.load %arg12[%c5_275, %c0_276, %c0_277] : memref<6x1x32xf32, #tpu.memory_space<vmem>>, vector<1x1x32xf32>
    %761 = vector.shape_cast %760 : vector<1x1x32xf32> to vector<1x32xf32>
    %cst_278 = arith.constant dense<0.000000e+00> : vector<16xf32>
    %762 = vector.multi_reduction <add>, %757, %cst_278 [1] : vector<16x32xf32> to vector<16xf32>
    %763 = vector.shape_cast %762 : vector<16xf32> to vector<16x1xf32>
    %cst_279 = arith.constant 3.200000e+01 : f32
    %764 = vector.broadcast %cst_279 : f32 to vector<16x1xf32>
    %765 = arith.divf %763, %764 : vector<16x1xf32>
    %766 = vector.broadcast %765 : vector<16x1xf32> to vector<16x32xf32>
    %767 = arith.subf %757, %766 : vector<16x32xf32>
    %768 = arith.mulf %767, %767 : vector<16x32xf32>
    %cst_280 = arith.constant dense<0.000000e+00> : vector<16xf32>
    %769 = vector.multi_reduction <add>, %768, %cst_280 [1] : vector<16x32xf32> to vector<16xf32>
    %770 = vector.shape_cast %769 : vector<16xf32> to vector<16x1xf32>
    %cst_281 = arith.constant 3.200000e+01 : f32
    %771 = vector.broadcast %cst_281 : f32 to vector<16x1xf32>
    %772 = arith.divf %770, %771 : vector<16x1xf32>
    %773 = vector.broadcast %765 : vector<16x1xf32> to vector<16x32xf32>
    %774 = arith.subf %757, %773 : vector<16x32xf32>
    %cst_282 = arith.constant 9.99999974E-6 : f32
    %775 = vector.broadcast %cst_282 : f32 to vector<16x1xf32>
    %776 = arith.addf %772, %775 : vector<16x1xf32>
    %777 = math.rsqrt %776 : vector<16x1xf32>
    %778 = vector.broadcast %777 : vector<16x1xf32> to vector<16x32xf32>
    %779 = arith.mulf %774, %778 : vector<16x32xf32>
    %780 = vector.broadcast %759 : vector<1x32xf32> to vector<16x32xf32>
    %781 = arith.mulf %779, %780 : vector<16x32xf32>
    %782 = vector.broadcast %761 : vector<1x32xf32> to vector<16x32xf32>
    %783 = arith.addf %781, %782 : vector<16x32xf32>
    %c0_283 = arith.constant 0 : index
    %c0_284 = arith.constant 0 : index
    %784 = vector.load %arg13[%c0_283, %c0_284] : memref<1x32xf32, #tpu.memory_space<vmem>>, vector<1x32xf32>
    %c0_285 = arith.constant 0 : index
    %c0_286 = arith.constant 0 : index
    %785 = vector.load %arg14[%c0_285, %c0_286] : memref<1x32xf32, #tpu.memory_space<vmem>>, vector<1x32xf32>
    %cst_287 = arith.constant dense<0.000000e+00> : vector<16xf32>
    %786 = vector.multi_reduction <add>, %783, %cst_287 [1] : vector<16x32xf32> to vector<16xf32>
    %787 = vector.shape_cast %786 : vector<16xf32> to vector<16x1xf32>
    %cst_288 = arith.constant 3.200000e+01 : f32
    %788 = vector.broadcast %cst_288 : f32 to vector<16x1xf32>
    %789 = arith.divf %787, %788 : vector<16x1xf32>
    %790 = vector.broadcast %789 : vector<16x1xf32> to vector<16x32xf32>
    %791 = arith.subf %783, %790 : vector<16x32xf32>
    %792 = arith.mulf %791, %791 : vector<16x32xf32>
    %cst_289 = arith.constant dense<0.000000e+00> : vector<16xf32>
    %793 = vector.multi_reduction <add>, %792, %cst_289 [1] : vector<16x32xf32> to vector<16xf32>
    %794 = vector.shape_cast %793 : vector<16xf32> to vector<16x1xf32>
    %cst_290 = arith.constant 3.200000e+01 : f32
    %795 = vector.broadcast %cst_290 : f32 to vector<16x1xf32>
    %796 = arith.divf %794, %795 : vector<16x1xf32>
    %797 = vector.broadcast %789 : vector<16x1xf32> to vector<16x32xf32>
    %798 = arith.subf %783, %797 : vector<16x32xf32>
    %cst_291 = arith.constant 9.99999974E-6 : f32
    %799 = vector.broadcast %cst_291 : f32 to vector<16x1xf32>
    %800 = arith.addf %796, %799 : vector<16x1xf32>
    %801 = math.rsqrt %800 : vector<16x1xf32>
    %802 = vector.broadcast %801 : vector<16x1xf32> to vector<16x32xf32>
    %803 = arith.mulf %798, %802 : vector<16x32xf32>
    %804 = vector.broadcast %784 : vector<1x32xf32> to vector<16x32xf32>
    %805 = arith.mulf %803, %804 : vector<16x32xf32>
    %806 = vector.broadcast %785 : vector<1x32xf32> to vector<16x32xf32>
    %807 = arith.addf %805, %806 : vector<16x32xf32>
    %808 = vector.shape_cast %807 : vector<16x32xf32> to vector<2x8x32xf32>
    %c0_292 = arith.constant 0 : index
    %c0_293 = arith.constant 0 : index
    %c0_294 = arith.constant 0 : index
    %809 = vector.load %arg15[%c0_292, %c0_293, %c0_294] : memref<2x8x32xf32, #tpu.memory_space<vmem>>, vector<2x8x32xf32>
    tpu.vector_store %arg15[%c0_292, %c0_293, %c0_294], %808 {strides = array<i32>} : memref<2x8x32xf32, #tpu.memory_space<vmem>>, vector<2x8x32xf32>,
    return
  }
  func.func @transform_0(%arg0: i32) -> (i32, i32, i32) {
    %c0_i32 = arith.constant 0 : i32
    %c0_i32_0 = arith.constant 0 : i32
    %c0_i32_1 = arith.constant 0 : i32
    %c0_i32_2 = arith.constant 0 : i32
    return %c0_i32, %c0_i32_0, %c0_i32_1 : i32, i32, i32
  }
  func.func @transform_1(%arg0: i32) -> (i32, i32, i32) {
    %c0_i32 = arith.constant 0 : i32
    %c0_i32_0 = arith.constant 0 : i32
    %c0_i32_1 = arith.constant 0 : i32
    %c0_i32_2 = arith.constant 0 : i32
    return %c0_i32, %c0_i32_0, %c0_i32_1 : i32, i32, i32
  }
  func.func @transform_2(%arg0: i32) -> (i32, i32, i32) {
    %c0_i32 = arith.constant 0 : i32
    %c0_i32_0 = arith.constant 0 : i32
    %c0_i32_1 = arith.constant 0 : i32
    %c0_i32_2 = arith.constant 0 : i32
    return %c0_i32, %c0_i32_0, %c0_i32_1 : i32, i32, i32
  }
  func.func @transform_3(%arg0: i32) -> (i32, i32, i32) {
    %c0_i32 = arith.constant 0 : i32
    %c0_i32_0 = arith.constant 0 : i32
    %c0_i32_1 = arith.constant 0 : i32
    %c0_i32_2 = arith.constant 0 : i32
    return %c0_i32, %c0_i32_0, %c0_i32_1 : i32, i32, i32
  }
  func.func @transform_4(%arg0: i32) -> (i32, i32, i32) {
    %c0_i32 = arith.constant 0 : i32
    %c0_i32_0 = arith.constant 0 : i32
    %c0_i32_1 = arith.constant 0 : i32
    %c0_i32_2 = arith.constant 0 : i32
    return %c0_i32, %c0_i32_0, %c0_i32_1 : i32, i32, i32
  }
  func.func @transform_5(%arg0: i32) -> (i32, i32, i32) {
    %c0_i32 = arith.constant 0 : i32
    %c0_i32_0 = arith.constant 0 : i32
    %c0_i32_1 = arith.constant 0 : i32
    %c0_i32_2 = arith.constant 0 : i32
    return %c0_i32, %c0_i32_0, %c0_i32_1 : i32, i32, i32
  }
  func.func @transform_6(%arg0: i32) -> (i32, i32, i32) {
    %c0_i32 = arith.constant 0 : i32
    %c0_i32_0 = arith.constant 0 : i32
    %c0_i32_1 = arith.constant 0 : i32
    %c0_i32_2 = arith.constant 0 : i32
    return %c0_i32, %c0_i32_0, %c0_i32_1 : i32, i32, i32
  }
  func.func @transform_7(%arg0: i32) -> (i32, i32, i32) {
    %c0_i32 = arith.constant 0 : i32
    %c0_i32_0 = arith.constant 0 : i32
    %c0_i32_1 = arith.constant 0 : i32
    %c0_i32_2 = arith.constant 0 : i32
    return %c0_i32, %c0_i32_0, %c0_i32_1 : i32, i32, i32
  }
  func.func @transform_8(%arg0: i32) -> (i32, i32, i32) {
    %c0_i32 = arith.constant 0 : i32
    %c0_i32_0 = arith.constant 0 : i32
    %c0_i32_1 = arith.constant 0 : i32
    %c0_i32_2 = arith.constant 0 : i32
    return %c0_i32, %c0_i32_0, %c0_i32_1 : i32, i32, i32
  }
  func.func @transform_9(%arg0: i32) -> (i32, i32, i32) {
    %c0_i32 = arith.constant 0 : i32
    %c0_i32_0 = arith.constant 0 : i32
    %c0_i32_1 = arith.constant 0 : i32
    %c0_i32_2 = arith.constant 0 : i32
    return %c0_i32, %c0_i32_0, %c0_i32_1 : i32, i32, i32
  }
  func.func @transform_10(%arg0: i32) -> (i32, i32, i32) {
    %c0_i32 = arith.constant 0 : i32
    %c0_i32_0 = arith.constant 0 : i32
    %c0_i32_1 = arith.constant 0 : i32
    %c0_i32_2 = arith.constant 0 : i32
    return %c0_i32, %c0_i32_0, %c0_i32_1 : i32, i32, i32
  }
  func.func @transform_11(%arg0: i32) -> (i32, i32, i32) {
    %c0_i32 = arith.constant 0 : i32
    %c0_i32_0 = arith.constant 0 : i32
    %c0_i32_1 = arith.constant 0 : i32
    %c0_i32_2 = arith.constant 0 : i32
    return %c0_i32, %c0_i32_0, %c0_i32_1 : i32, i32, i32
  }
  func.func @transform_12(%arg0: i32) -> (i32, i32) {
    %c0_i32 = arith.constant 0 : i32
    %c0_i32_0 = arith.constant 0 : i32
    %c0_i32_1 = arith.constant 0 : i32
    return %c0_i32, %c0_i32_0 : i32, i32
  }
  func.func @transform_13(%arg0: i32) -> (i32, i32) {
    %c0_i32 = arith.constant 0 : i32
    %c0_i32_0 = arith.constant 0 : i32
    %c0_i32_1 = arith.constant 0 : i32
    return %c0_i32, %c0_i32_0 : i32, i32
  }
  func.func @transform_14(%arg0: i32) -> (i32, i32, i32) {
    %c0_i32 = arith.constant 0 : i32
    %c0_i32_0 = arith.constant 0 : i32
    %c0_i32_1 = arith.constant 0 : i32
    %c0_i32_2 = arith.constant 0 : i32
    return %c0_i32, %c0_i32_0, %c0_i32_1 : i32, i32, i32
  }
}

</mosaic_0001>

<bundles_post_ra>
// kernel: run.1
= control target key start
LH: loop header
LB: loop body
LE: loop exit
PB: predicated region body
PF: predicated region fallthrough
CT: control target
= control target key end

     0   :  { %vm71_vm0 = vcmask 261120   ;;  %s9832_s0 = inlined_call_operand.vmem [shape: f32[2,8,32], index: 0, kind: input, shape index: {}]   ;;  %s9833_s1 = inlined_call_operand.vmem [shape: f32[2,16,32], index: 1, kind: input, shape index: {}]   ;;  %s9834_s2 = inlined_call_operand.vmem [shape: f32[4,32,96], index: 2, kind: input, shape index: {}]   ;;  %s9835_s3 = inlined_call_operand.vmem [shape: f32[4,1,96], index: 3, kind: input, shape index: {}]   ;;  %s9836_s4 = inlined_call_operand.vmem [shape: f32[4,32,32], index: 4, kind: input, shape index: {}]   ;;  %s9837_s5 = inlined_call_operand.vmem [shape: f32[4,1,32], index: 5, kind: input, shape index: {}]   ;;  %s9838_s6 = inlined_call_operand.vmem [shape: f32[2,32,64], index: 6, kind: input, shape index: {}]   ;;  %s9839_s7 = inlined_call_operand.vmem [shape: f32[2,1,64], index: 7, kind: input, shape index: {}]   ;;  %s9840_s8 = inlined_call_operand.vmem [shape: f32[2,64,32], index: 8, kind: input, shape index: {}]   ;;  %s9841_s9 = inlined_call_operand.vmem [shape: f32[2,1,32], index: 9, kind: input, shape index: {}]   ;;  %s9842_s10 = inlined_call_operand.vmem [shape: f32[6,1,32], index: 10, kind: input, shape index: {}]   ;;  %s9843_s11 = inlined_call_operand.vmem [shape: f32[6,1,32], index: 11, kind: input, shape index: {}]   ;;  %s9844_s12 = inlined_call_operand.vmem [shape: f32[1,32], index: 12, kind: input, shape index: {}]   ;;  %s9845_s13 = inlined_call_operand.vmem [shape: f32[1,32], index: 13, kind: input, shape index: {}]   ;;  %s9846_s14 = inlined_call_operand.hbm [shape: f32[2,8,32], index: 14, kind: output, shape index: {}]  }
   0x1   :  { %v63_v0 = vld [vmem:[%s9834_s2 + $0x18] sm:$0xff]  ;;  %v62_v1 = vld [vmem:[%s9834_s2 + $0x10] sm:$0xff]  ;;  %v8606_v2 = vld [vmem:[%s9832_s0] sm:$0xff] }
   0x2   :  { %7742 = vmatprep.subr.mxu1 %v63_v0  ;;  %v61_v3 = vld [vmem:[%s9834_s2 + $0x8] sm:$0xff]  ;;  %7750 = vmatprep.mubr.msk.f32.mxu1 %vm71_vm0, %v8606_v2 }
   0x3   :  { %7743 = vmatpush3.msra.mxu1 %v63_v0 }
   0x4   :  { %19 = vsyncpa [#allocation3], 0  ;;  %7744 = vmatprep.subr.mxu1 %v62_v1  ;;  %v60_v4 = vld [vmem:[%s9834_s2] sm:$0xff]  ;;  %v8619_v5 = vld [vmem:[%s9832_s0 + $0x8] sm:$0xff]  ;;  %v8503_v6 = vmov 0.0   ;;  %vm8504_vm1 = vmmov 0   ;;  %v54_v27 = vlaneseq }
   0x5   :  { %7745 = vmatpush3.msra.mxu1 %v62_v1  ;;  %7763 = vmatprep.subr.mxu0 %v8503_v6  ;;  %v7262_v8 = vld [vmem:[%s9835_s3] ss:$0 sm:$0xff]  ;;  %s8505_s26 = smov 120   ;;  %s8506_s27 = smov 96   ;;  %vm156_vm2 = vcmask 64512   ;;  %vm826_vm4 = vcmask 130048  }
   0x6   :  { %7746 = vmatprep.subr.mxu1 %v61_v3  ;;  %7765 = vmatprep.mubr.msk.f32.mxu0 %vm8504_vm1, %v8503_v6  ;;  %s8507_s28 = smov 80   ;;  %s8508_s29 = smov 88   ;;  %v55_v28 = vshrl.u32 %v54_v27, 7  ;;  %v57_v29 = vand.u32 127, %v54_v27  ;;  %v8514_v30 = vmov -1e+09  }
   0x7   :  { %7747 = vmatpush3.msra.mxu1 %v61_v3  ;;  %s9855_s30 = smov 72   ;;  %s8510_s15 = smov 112   ;;  %vm828_vm5 = vcmask 195584   ;;  %vm3504_vm6 = vcmask 523264  }
   0x8   :  { %7748 = vmatprep.subr.mxu1 %v60_v4  ;;  %s9859_s16 = smov 104   ;;  %s9849_s17 = smov 56   ;;  %vm58_vm3 = vcmp.ge.s32.totalorder %v55_v28, %v57_v29 }
   0x9   :  { %7749 = vmatpush3.msra.mxu1 %v60_v4  ;;  %s9853_s18 = smov 64   ;;  %v8708_v31 = vsel %vm58_vm3, 0.0, %v8514_v30  ;;  %s9847_s19 = smov 40  }
   0xa   :  { %7751 = vmatmul.mubr.msk.f32.vlgmr.msra.gmra.mxu1 %vm71_vm0, %v8619_v5  ;;  %7753 = vmatprep.subr.mxu1 %v8503_v6  ;;  %s9851_s20 = smov 48   ;;  %s8517_s21 = smov 8  }
   0xb   :  { %7755 = vmatprep.mubr.msk.f32.mxu1 %vm8504_vm1, %v8503_v6  ;;  %s9857_s22 = smov 16   ;;  %s8519_s23 = smov 24  }
  0xca   :  { %v7752_v7 = vpop.f32.mrf.mxu1 }
  0xcb   :  { %v8646_v11 = vadd.f32 %v7752_v7, %v7262_v8 }
  0xcc   :  { %v144_v9 = vpop.f32.mrf.mxu1 }
  0xcd   :  { %v8632_v10 = vadd.f32 %v7262_v8, %v144_v9 }
  0xcf   :  { %318 = vrot.lane.b32.xlu1 %v8632_v10, %s8505_s26  ;;  %154 = vrot.lane.b32.xlu0 %v8632_v10, %s8506_s27 }
  0xd3   :  { %485 = vrot.lane.b32.xlu1 %v8632_v10, %s8507_s28  ;;  %320 = vrot.lane.b32.xlu0 %v8632_v10, %s8508_s29 }
  0xd7   :  { %650 = vrot.lane.b32.xlu1 %v8632_v10, %s9855_s30  ;;  %483 = vrot.lane.b32.xlu0 %v8632_v10, %s8510_s15 }
  0xdb   :  { %831 = vrot.lane.b32.xlu1 %v8646_v11, %s8506_s27  ;;  %648 = vrot.lane.b32.xlu0 %v8632_v10, %s9859_s16 }
  0xdf   :  { %994 = vrot.lane.b32.xlu1 %v8646_v11, %s8505_s26  ;;  %996 = vrot.lane.b32.xlu0 %v8646_v11, %s8508_s29 }
  0xe3   :  { %1159 = vrot.lane.b32.xlu1 %v8646_v11, %s8510_s15  ;;  %1161 = vrot.lane.b32.xlu0 %v8646_v11, %s8507_s28 }
  0xe7   :  { %1324 = vrot.lane.b32.xlu1 %v8646_v11, %s9859_s16  ;;  %1326 = vrot.lane.b32.xlu0 %v8646_v11, %s9855_s30  ;;  %s9861_s30 = smov 72  }
  0xeb   :  { %407 = vrot.lane.b32.xlu1 %v8632_v10, %s9849_s17  ;;  %242 = vrot.lane.b32.xlu0 %v8632_v10, %s9853_s18 }
 0x141   :  { %v319_v12 = vpop.permute.xlu1 %318  ;;  %v155_v13 = vpop.permute.xlu0 %154 }
 0x142   :  { %7754 = vmatpush3.xpose.msk.msra.mxu1 %vm156_vm2, %v155_v13 }
 0x143   :  { %7758 = vmatprep.subr.mxu1 %v8503_v6 }
 0x145   :  { %v486_v14 = vpop.permute.xlu1 %485  ;;  %7756 = vmatmul.mubr.msk.f32.vlgmr.msra.gmra.mxu1 %vm156_vm2, %v8632_v10  ;;  %v321_v15 = vpop.permute.xlu0 %320 }
 0x146   :  { %7764 = vmatpush3.xpose.msk.msra.mxu0 %vm156_vm2, %v321_v15  ;;  %7760 = vmatprep.mubr.msk.f32.mxu1 %vm8504_vm1, %v8503_v6 }
 0x147   :  { %7773 = vmatprep.subr.mxu0 %v8503_v6 }
 0x149   :  { %v651_v16 = vpop.permute.xlu1 %650  ;;  %7766 = vmatmul.mubr.msk.f32.vlgmr.msra.gmra.mxu0 %vm156_vm2, %v319_v12  ;;  %v484_v17 = vpop.permute.xlu0 %483 }
 0x14a   :  { %7774 = vmatpush3.xpose.msk.msra.mxu0 %vm156_vm2, %v486_v14  ;;  %7775 = vmatprep.mubr.msk.f32.mxu0 %vm8504_vm1, %v8503_v6 }
 0x14b   :  { %7783 = vmatprep.subr.mxu0 %v8503_v6 }
 0x14d   :  { %7776 = vmatmul.mubr.msk.f32.vlgmr.msra.gmra.mxu0 %vm156_vm2, %v484_v17  ;;  %v649_v18 = vpop.permute.xlu0 %648  ;;  %v832_v19 = vpop.permute.xlu1 %831 }
 0x14e   :  { %7784 = vmatpush3.xpose.msk.msra.mxu0 %vm156_vm2, %v651_v16  ;;  %7785 = vmatprep.mubr.msk.f32.mxu0 %vm8504_vm1, %v8503_v6 }
 0x14f   :  { %7793 = vmatprep.subr.mxu0 %v8503_v6 }
 0x151   :  { %7786 = vmatmul.mubr.msk.f32.vlgmr.msra.gmra.mxu0 %vm156_vm2, %v649_v18  ;;  %v997_v20 = vpop.permute.xlu0 %996  ;;  %v995_v21 = vpop.permute.xlu1 %994 }
 0x152   :  { %7794 = vmatpush3.xpose.msk.msra.mxu0 %vm156_vm2, %v832_v19  ;;  %7795 = vmatprep.mubr.msk.f32.mxu0 %vm8504_vm1, %v8503_v6 }
 0x153   :  { %7803 = vmatprep.subr.mxu0 %v8503_v6 }
 0x155   :  { %7796 = vmatmul.mubr.msk.f32.vlgmr.msra.gmra.mxu0 %vm156_vm2, %v8646_v11  ;;  %v1162_v22 = vpop.permute.xlu0 %1161  ;;  %v1160_v24 = vpop.permute.xlu1 %1159 }
 0x156   :  { %7804 = vmatpush3.xpose.msk.msra.mxu0 %vm156_vm2, %v997_v20  ;;  %7805 = vmatprep.mubr.msk.f32.mxu0 %vm8504_vm1, %v8503_v6 }
 0x157   :  { %7813 = vmatprep.subr.mxu0 %v8503_v6 }
 0x159   :  { %7806 = vmatmul.mubr.msk.f32.vlgmr.msra.gmra.mxu0 %vm156_vm2, %v995_v21  ;;  %v1327_v23 = vpop.permute.xlu0 %1326  ;;  %v1325_v26 = vpop.permute.xlu1 %1324 }
 0x15a   :  { %7814 = vmatpush3.xpose.msk.msra.mxu0 %vm156_vm2, %v1162_v22  ;;  %7815 = vmatprep.mubr.msk.f32.mxu0 %vm8504_vm1, %v8503_v6 }
 0x15b   :  { %7823 = vmatprep.subr.mxu0 %v8503_v6 }
 0x15d   :  { %7816 = vmatmul.mubr.msk.f32.vlgmr.msra.gmra.mxu0 %vm156_vm2, %v1160_v24  ;;  %v243_v25 = vpop.permute.xlu0 %242  ;;  %v8730_v0 = vpop.permute.xlu1 %407 }
 0x15e   :  { %7759 = vmatpush3.msra.mxu1 %v243_v25  ;;  %7824 = vmatpush3.xpose.msk.msra.mxu0 %vm156_vm2, %v1327_v23 }
 0x15f   :  { %7825 = vmatprep.mubr.msk.f32.mxu0 %vm8504_vm1, %v8503_v6  ;;  %7768 = vmatprep.subr.mxu1 %v8503_v6 }
 0x161   :  { %7826 = vmatmul.mubr.msk.f32.vlgmr.msra.gmra.mxu0 %vm156_vm2, %v1325_v26 }
 0x205   :  { %v227_v32 = vpop.f32.mrf.mxu1 }
 0x206   :  { %v228_v33 = vadd.f32 %v227_v32, %v8708_v31 }
 0x207   :  { %v7757_v34 = vpop.f32.mrf.mxu1 }
 0x208   :  { %v231_v35 = vsel %vm156_vm2, %v228_v33, -inf }
 0x209   :  { %232 = vmax.xlane.f32.xlu0 %v231_v35  ;;  %v392_v36 = vpop.f32.mrf.mxu0 }
 0x20a   :  { %v393_v37 = vadd.f32 %v392_v36, %v8708_v31 }
 0x20b   :  { %v7767_v38 = vpop.f32.mrf.mxu0 }
 0x20c   :  { %v396_v39 = vsel %vm156_vm2, %v393_v37, -inf }
 0x20d   :  { %397 = vmax.xlane.f32.xlu1 %v396_v39  ;;  %v557_v40 = vpop.f32.mrf.mxu0 }
 0x20e   :  { %v558_v41 = vadd.f32 %v557_v40, %v8708_v31 }
 0x20f   :  { %v7777_v42 = vpop.f32.mrf.mxu0 }
 0x210   :  { %v561_v43 = vsel %vm156_vm2, %v558_v41, -inf }
 0x211   :  { %562 = vmax.xlane.f32.xlu0 %v561_v43  ;;  %v722_v44 = vpop.f32.mrf.mxu0 }
 0x212   :  { %v723_v45 = vadd.f32 %v722_v44, %v8708_v31 }
 0x213   :  { %v7787_v46 = vpop.f32.mrf.mxu0 }
 0x214   :  { %v726_v47 = vsel %vm156_vm2, %v723_v45, -inf }
 0x215   :  { %727 = vmax.xlane.f32.xlu0 %v726_v47  ;;  %v903_v48 = vpop.f32.mrf.mxu0 }
 0x216   :  { %v904_v49 = vadd.f32 %v903_v48, %v8708_v31 }
 0x217   :  { %v7797_v50 = vpop.f32.mrf.mxu0 }
 0x218   :  { %v907_v51 = vsel %vm156_vm2, %v904_v49, -inf }
 0x219   :  { %908 = vmax.xlane.f32.xlu1 %v907_v51  ;;  %v1068_v52 = vpop.f32.mrf.mxu0 }
 0x21a   :  { %v1069_v53 = vadd.f32 %v1068_v52, %v8708_v31 }
 0x21b   :  { %v7807_v54 = vpop.f32.mrf.mxu0 }
 0x21c   :  { %v1072_v55 = vsel %vm156_vm2, %v1069_v53, -inf }
 0x21d   :  { %1073 = vmax.xlane.f32.xlu0 %v1072_v55  ;;  %v1233_v56 = vpop.f32.mrf.mxu0 }
 0x21e   :  { %v1234_v57 = vadd.f32 %v1233_v56, %v8708_v31 }
 0x21f   :  { %v7817_v58 = vpop.f32.mrf.mxu0 }
 0x220   :  { %v1237_v59 = vsel %vm156_vm2, %v1234_v57, -inf }
 0x221   :  { %1238 = vmax.xlane.f32.xlu1 %v1237_v59  ;;  %v1398_v60 = vpop.f32.mrf.mxu0 }
 0x222   :  { %v1399_v61 = vadd.f32 %v1398_v60, %v8708_v31 }
 0x223   :  { %v7827_v62 = vpop.f32.mrf.mxu0 }
 0x224   :  { %v1402_v63 = vsel %vm156_vm2, %v1399_v61, -inf }
 0x225   :  { %1403 = vmax.xlane.f32.xlu0 %v1402_v63 }
 0x232   :  { %737 = vrot.lane.b32.xlu1 %v8632_v10, %s9847_s19 }
 0x23b   :  { %572 = vrot.lane.b32.xlu0 %v8632_v10, %s9851_s20 }
 0x292   :  { %v233_v1 = vpop.xlane.xlu0 %232 }
 0x293   :  { %v234_v3 = vsub.f32 %v228_v33, %v233_v1 }
 0x295   :  { %v235_v4 = vmul.f32 1.442695, %v234_v3 }
 0x296   :  { %v398_v7 = vpop.xlane.xlu1 %397 }
 0x297   :  { %8321 = vpow2.f32 %v235_v4  ;;  %v399_v8 = vsub.f32 %v393_v37, %v398_v7 }
 0x299   :  { %v400_v9 = vmul.f32 1.442695, %v399_v8 }
 0x29a   :  { %v563_v12 = vpop.xlane.xlu0 %562 }
 0x29b   :  { %8323 = vpow2.f32 %v400_v9  ;;  %v564_v13 = vsub.f32 %v558_v41, %v563_v12 }
 0x29d   :  { %v565_v14 = vmul.f32 1.442695, %v564_v13 }
 0x29e   :  { %v728_v15 = vpop.xlane.xlu0 %727 }
 0x29f   :  { %8325 = vpow2.f32 %v565_v14  ;;  %v729_v16 = vsub.f32 %v723_v45, %v728_v15 }
 0x2a1   :  { %v730_v17 = vmul.f32 1.442695, %v729_v16 }
 0x2a2   :  { %v909_v25 = vpop.xlane.xlu1 %908 }
 0x2a3   :  { %8327 = vpow2.f32 %v730_v17  ;;  %v910_v26 = vsub.f32 %v904_v49, %v909_v25  ;;  %v1505_v25 = vld [vmem:[%s9836_s4 + $0x8] sm:$0xff] }
 0x2a4   :  { %v8322_v18 = vpop.eup %8321 }
 0x2a5   :  { %v237_v10 = vsel %vm156_vm2, %v8322_v18, 0.0  ;;  %v911_v30 = vmul.f32 1.442695, %v910_v26  ;;  %v1504_v26 = vld [vmem:[%s9836_s4] sm:$0xff] }
 0x2a6   :  { %238 = vadd.xlane.f32.xlu1 %v237_v10  ;;  %v1074_v27 = vpop.xlane.xlu0 %1073 }
 0x2a7   :  { %v1075_v29 = vsub.f32 %v1069_v53, %v1074_v27  ;;  %8329 = vpow2.f32 %v911_v30 }
 0x2a8   :  { %v8324_v19 = vpop.eup %8323 }
 0x2a9   :  { %v402_v20 = vsel %vm156_vm2, %v8324_v19, 0.0  ;;  %v1076_v34 = vmul.f32 1.442695, %v1075_v29 }
 0x2aa   :  { %403 = vadd.xlane.f32.xlu0 %v402_v20  ;;  %v1239_v28 = vpop.xlane.xlu1 %1238 }
 0x2ab   :  { %v1240_v32 = vsub.f32 %v1234_v57, %v1239_v28  ;;  %8331 = vpow2.f32 %v1076_v34 }
 0x2ac   :  { %v8326_v21 = vpop.eup %8325 }
 0x2ad   :  { %v567_v22 = vsel %vm156_vm2, %v8326_v21, 0.0  ;;  %v1241_v35 = vmul.f32 1.442695, %v1240_v32 }
 0x2ae   :  { %568 = vadd.xlane.f32.xlu1 %v567_v22  ;;  %v1404_v33 = vpop.xlane.xlu0 %1403  ;;  %v738_v46 = vpop.permute.xlu1 %737 }
 0x2af   :  { %v1405_v36 = vsub.f32 %v1399_v61, %v1404_v33  ;;  %8333 = vpow2.f32 %v1241_v35 }
 0x2b0   :  { %v8735_v23 = vpop.eup %8327 }
 0x2b1   :  { %v732_v24 = vsel %vm156_vm2, %v8735_v23, 0.0  ;;  %v1406_v37 = vmul.f32 1.442695, %v1405_v36 }
 0x2b2   :  { %733 = vadd.xlane.f32.xlu0 %v732_v24  ;;  %v573_v47 = vpop.permute.xlu0 %572  ;;  %v1506_v24 = vld [vmem:[%s9836_s4 + $0x10] sm:$0xff] }
 0x2b3   :  { %8335 = vpow2.f32 %v1406_v37 }
 0x2b4   :  { %v8330_v38 = vpop.eup %8329 }
 0x2b5   :  { %v913_v40 = vsel %vm156_vm2, %v8330_v38, 0.0 }
 0x2b8   :  { %v8743_v39 = vpop.eup %8331 }
 0x2b9   :  { %v1078_v43 = vsel %vm156_vm2, %v8743_v39, 0.0 }
 0x2bc   :  { %v8746_v41 = vpop.eup %8333 }
 0x2bd   :  { %v1243_v42 = vsel %vm156_vm2, %v8746_v41, 0.0 }
 0x2bf   :  { %1083 = vrot.lane.b32.xlu1 %v8646_v11, %s9849_s17  ;;  %s9863_s17 = smov 48  }
 0x2c0   :  { %v8752_v44 = vpop.eup %8335 }
 0x2c1   :  { %v1408_v45 = vsel %vm156_vm2, %v8752_v44, 0.0 }
 0x2c8   :  { %918 = vrot.lane.b32.xlu0 %v8646_v11, %s9853_s18  ;;  %s9864_s18 = smov 56  }
 0x2e3   :  { %914 = vadd.xlane.f32.xlu1 %v913_v40 }
 0x2e7   :  { %1244 = vadd.xlane.f32.xlu1 %v1243_v42  ;;  %1079 = vadd.xlane.f32.xlu0 %v1078_v43 }
 0x2eb   :  { %1409 = vadd.xlane.f32.xlu1 %v1408_v45 }
 0x2fc   :  { %1413 = vrot.lane.b32.xlu1 %v8646_v11, %s9847_s19  ;;  %s9865_s19 = smov 40  }
 0x2fd   :  { %1248 = vrot.lane.b32.xlu0 %v8646_v11, %s9851_s20  ;;  %s9866_s20 = smov 16  }
 0x32f   :  { %v239_v48 = vpop.xlane.xlu1 %238 }
 0x330   :  { %8337 = vrcp.f32 %v239_v48  ;;  %v7289_v48 = vld [vmem:[%s9837_s5] ss:$0 sm:$0xff] }
 0x333   :  { %v404_v49 = vpop.xlane.xlu0 %403 }
 0x334   :  { %8339 = vrcp.f32 %v404_v49 }
 0x337   :  { %v569_v50 = vpop.xlane.xlu1 %568 }
 0x338   :  { %8341 = vrcp.f32 %v569_v50 }
 0x33b   :  { %v734_v51 = vpop.xlane.xlu0 %733  ;;  %v1084_v60 = vpop.permute.xlu1 %1083 }
 0x33c   :  { %8343 = vrcp.f32 %v734_v51 }
 0x33d   :  { %v8338_v52 = vpop.eup %8337 }
 0x33e   :  { %v241_v53 = vmul.f32 %v8338_v52, %v8322_v18 }
 0x33f   :  { %v919_v59 = vpop.permute.xlu0 %918 }
 0x340   :  { %7761 = vmatmul.mubr.msk.f32.vlgmr.msra.gmra.mxu1 %vm156_vm2, %v241_v53 }
 0x341   :  { %v8340_v54 = vpop.eup %8339  ;;  %7769 = vmatpush3.msra.mxu1 %v8730_v0  ;;  %7770 = vmatprep.mubr.msk.f32.mxu1 %vm8504_vm1, %v8503_v6 }
 0x342   :  { %7778 = vmatprep.subr.mxu1 %v8503_v6  ;;  %v406_v11 = vmul.f32 %v8340_v54, %v8324_v19 }
 0x344   :  { %7771 = vmatmul.mubr.msk.f32.vlgmr.msra.gmra.mxu1 %vm156_vm2, %v406_v11 }
 0x345   :  { %v8342_v55 = vpop.eup %8341  ;;  %7779 = vmatpush3.msra.mxu1 %v573_v47  ;;  %7780 = vmatprep.mubr.msk.f32.mxu1 %vm8504_vm1, %v8503_v6 }
 0x346   :  { %7788 = vmatprep.subr.mxu1 %v8503_v6  ;;  %v571_v56 = vmul.f32 %v8342_v55, %v8326_v21 }
 0x348   :  { %7781 = vmatmul.mubr.msk.f32.vlgmr.msra.gmra.mxu1 %vm156_vm2, %v571_v56  ;;  %v7297_v56 = vld [vmem:[%s9834_s2 + $0x38] sm:$0xff] }
 0x349   :  { %v8344_v57 = vpop.eup %8343  ;;  %7789 = vmatpush3.msra.mxu1 %v738_v46  ;;  %7790 = vmatprep.mubr.msk.f32.mxu1 %vm8504_vm1, %v8503_v6 }
 0x34a   :  { %7798 = vmatprep.subr.mxu1 %v8503_v6  ;;  %v736_v58 = vmul.f32 %v8344_v57, %v8735_v23  ;;  %v1507_v23 = vld [vmem:[%s9836_s4 + $0x18] sm:$0xff]  ;;  %v7295_v57 = vld [vmem:[%s9834_s2 + $0x28] sm:$0xff] }
 0x34b   :  { %7833 = vmatprep.subr.mxu0 %v1507_v23 }
 0x34c   :  { %7791 = vmatmul.mubr.msk.f32.vlgmr.msra.gmra.mxu1 %vm156_vm2, %v736_v58  ;;  %7834 = vmatpush3.msra.mxu0 %v1507_v23 }
 0x34d   :  { %7799 = vmatpush3.msra.mxu1 %v919_v59  ;;  %7800 = vmatprep.mubr.msk.f32.mxu1 %vm8504_vm1, %v8503_v6 }
 0x34e   :  { %7808 = vmatprep.subr.mxu1 %v8503_v6  ;;  %7835 = vmatprep.subr.mxu0 %v1506_v24 }
 0x34f   :  { %7836 = vmatpush3.msra.mxu0 %v1506_v24 }
 0x350   :  { %7837 = vmatprep.subr.mxu0 %v1505_v25 }
 0x351   :  { %7838 = vmatpush3.msra.mxu0 %v1505_v25  ;;  %v7292_v25 = vld [vmem:[%s9842_s10] ss:$0 sm:$0xff] }
 0x352   :  { %7839 = vmatprep.subr.mxu0 %v1504_v26 }
 0x353   :  { %7840 = vmatpush3.msra.mxu0 %v1504_v26 }
 0x36c   :  { %v915_v61 = vpop.xlane.xlu1 %914 }
 0x36d   :  { %8345 = vrcp.f32 %v915_v61 }
 0x370   :  { %v1245_v62 = vpop.xlane.xlu1 %1244  ;;  %v1080_v63 = vpop.xlane.xlu0 %1079 }
 0x371   :  { %8347 = vrcp.f32 %v1080_v63 }
 0x372   :  { %8349 = vrcp.f32 %v1245_v62 }
 0x374   :  { %v1410_v0 = vpop.xlane.xlu1 %1409  ;;  %v1249_v9 = vpop.permute.xlu0 %1248 }
 0x375   :  { %8351 = vrcp.f32 %v1410_v0 }
 0x378   :  { %v1414_v14 = vpop.permute.xlu1 %1413 }
 0x37a   :  { %v8346_v1 = vpop.eup %8345 }
 0x37b   :  { %v917_v3 = vmul.f32 %v8346_v1, %v8330_v38 }
 0x37d   :  { %7801 = vmatmul.mubr.msk.f32.vlgmr.msra.gmra.mxu1 %vm156_vm2, %v917_v3 }
 0x37e   :  { %7809 = vmatpush3.msra.mxu1 %v1084_v60  ;;  %7810 = vmatprep.mubr.msk.f32.mxu1 %vm8504_vm1, %v8503_v6  ;;  %v8348_v4 = vpop.eup %8347 }
 0x37f   :  { %7818 = vmatprep.subr.mxu1 %v8503_v6  ;;  %v1082_v7 = vmul.f32 %v8348_v4, %v8743_v39  ;;  %v8350_v8 = vpop.eup %8349 }
 0x380   :  { %v1247_v12 = vmul.f32 %v8350_v8, %v8746_v41  ;;  %v50_v8 = vld [vmem:[%s9833_s1] sm:$0xff] }
 0x381   :  { %7811 = vmatmul.mubr.msk.f32.vlgmr.msra.gmra.mxu1 %vm156_vm2, %v1082_v7 }
 0x382   :  { %7819 = vmatpush3.msra.mxu1 %v1249_v9  ;;  %7820 = vmatprep.mubr.msk.f32.mxu1 %vm8504_vm1, %v8503_v6  ;;  %v8352_v13 = vpop.eup %8351  ;;  %v8852_v9 = vld [vmem:[%s9835_s3 + $0x1] ss:$0 sm:$0xff] }
 0x383   :  { %7828 = vmatprep.subr.mxu1 %v8503_v6  ;;  %v1412_v15 = vmul.f32 %v8352_v13, %v8752_v44 }
 0x385   :  { %7821 = vmatmul.mubr.msk.f32.vlgmr.msra.gmra.mxu1 %vm156_vm2, %v1247_v12 }
 0x386   :  { %7829 = vmatpush3.msra.mxu1 %v1414_v14  ;;  %7830 = vmatprep.mubr.msk.f32.mxu1 %vm8504_vm1, %v8503_v6 }
 0x387   :  { %7844 = vmatprep.subr.mxu1 %v7297_v56 }
 0x389   :  { %7831 = vmatmul.mubr.msk.f32.vlgmr.msra.gmra.mxu1 %vm156_vm2, %v1412_v15 }
 0x38a   :  { %7845 = vmatpush3.msra.mxu1 %v7297_v56 }
 0x400   :  { %v314_v16 = vpop.f32.mrf.mxu1 }
 0x402   :  { %v7762_v17 = vpop.f32.mrf.mxu1 }
 0x404   :  { %v479_v18 = vpop.f32.mrf.mxu1 }
 0x405   :  { %814 = vrot.lane.b32.xlu0 %v479_v18, %s8517_s21 }
 0x406   :  { %v7772_v10 = vpop.f32.mrf.mxu1 }
 0x408   :  { %v644_v19 = vpop.f32.mrf.mxu1 }
 0x409   :  { %818 = vrot.lane.b32.xlu1 %v644_v19, %s9857_s22 }
 0x40a   :  { %v7782_v20 = vpop.f32.mrf.mxu1 }
 0x40b   :  { %v51_v20 = vld [vmem:[%s9833_s1 + $0x8] sm:$0xff] }
 0x40c   :  { %v809_v21 = vpop.f32.mrf.mxu1 }
 0x40d   :  { %822 = vrot.lane.b32.xlu1 %v809_v21, %s8519_s23  ;;  %v52_v21 = vld [vmem:[%s9833_s1 + $0x10] sm:$0xff] }
 0x40e   :  { %v7792_v22 = vpop.f32.mrf.mxu1 }
 0x40f   :  { %v53_v22 = vld [vmem:[%s9833_s1 + $0x18] sm:$0xff] }
 0x43d   :  { %v990_v27 = vpop.f32.mrf.mxu1 }
 0x43f   :  { %v7802_v28 = vpop.f32.mrf.mxu1 }
 0x441   :  { %v1155_v29 = vpop.f32.mrf.mxu1 }
 0x442   :  { %1490 = vrot.lane.b32.xlu0 %v1155_v29, %s8517_s21  ;;  %v7293_v29 = vld [vmem:[%s9843_s11] ss:$0 sm:$0xff] }
 0x443   :  { %v7812_v30 = vpop.f32.mrf.mxu1 }
 0x445   :  { %v1320_v32 = vpop.f32.mrf.mxu1 }
 0x446   :  { %1494 = vrot.lane.b32.xlu0 %v1320_v32, %s9857_s22 }
 0x447   :  { %v7822_v33 = vpop.f32.mrf.mxu1 }
 0x449   :  { %v1485_v34 = vpop.f32.mrf.mxu1 }
 0x44a   :  { %1498 = vrot.lane.b32.xlu1 %v1485_v34, %s8519_s23 }
 0x44b   :  { %v7832_v35 = vpop.f32.mrf.mxu1 }
 0x477   :  { %v815_v36 = vpop.permute.xlu0 %814 }
 0x478   :  { %v825_v38 = vsel %vm156_vm2, %v314_v16, %v815_v36 }
 0x47b   :  { %v819_v37 = vpop.permute.xlu1 %818 }
 0x47c   :  { %v827_v39 = vsel %vm826_vm4, %v825_v38, %v819_v37 }
 0x47f   :  { %v823_v40 = vpop.permute.xlu1 %822 }
 0x480   :  { %v829_v41 = vsel %vm828_vm5, %v827_v39, %v823_v40 }
 0x481   :  { %7841 = vmatprep.mubr.msk.f32.mxu0 %vm71_vm0, %v829_v41 }
 0x4b4   :  { %v1491_v42 = vpop.permute.xlu0 %1490 }
 0x4b5   :  { %v1501_v44 = vsel %vm156_vm2, %v990_v27, %v1491_v42 }
 0x4b8   :  { %v1495_v43 = vpop.permute.xlu0 %1494 }
 0x4b9   :  { %v1502_v45 = vsel %vm826_vm4, %v1501_v44, %v1495_v43 }
 0x4bc   :  { %v1499_v46 = vpop.permute.xlu1 %1498 }
 0x4bd   :  { %v1503_v47 = vsel %vm828_vm5, %v1502_v45, %v1499_v46 }
 0x4be   :  { %7842 = vmatmul.mubr.msk.f32.vlgmr.msra.gmra.mxu0 %vm71_vm0, %v1503_v47 }
 0x4bf   :  { %7863 = vmatprep.mubr.msk.f32.mxu0 %vm71_vm0, %v50_v8 }
 0x57e   :  { %v7843_v49 = vpop.f32.mrf.mxu0 }
 0x57f   :  { %v1593_v50 = vadd.f32 %v7843_v49, %v7289_v48 }
 0x580   :  { %v1587_v51 = vpop.f32.mrf.mxu0 }
 0x581   :  { %v1588_v52 = vadd.f32 %v7289_v48, %v1587_v51  ;;  %v1597_v53 = vadd.f32 %v1593_v50, %v8619_v5  ;;  %v7296_v5 = vld [vmem:[%s9834_s2 + $0x30] sm:$0xff] }
 0x582   :  { %7846 = vmatprep.subr.mxu1 %v7296_v5 }
 0x583   :  { %v1603_v54 = vsel %vm71_vm0, %v1597_v53, 0.0  ;;  %v1596_v11 = vadd.f32 %v1588_v52, %v8606_v2  ;;  %7847 = vmatpush3.msra.mxu1 %v7296_v5  ;;  %v7294_v2 = vld [vmem:[%s9834_s2 + $0x20] sm:$0xff] }
 0x584   :  { %1604 = vadd.xlane.f32.xlu1 %v1603_v54  ;;  %7848 = vmatprep.subr.mxu1 %v7295_v57 }
 0x585   :  { %v1600_v55 = vsel %vm71_vm0, %v1596_v11, 0.0  ;;  %7849 = vmatpush3.msra.mxu1 %v7295_v57 }
 0x586   :  { %1601 = vadd.xlane.f32.xlu0 %v1600_v55  ;;  %7850 = vmatprep.subr.mxu1 %v7294_v2 }
 0x587   :  { %7851 = vmatpush3.msra.mxu1 %v7294_v2 }
 0x588   :  { %7869 = vmatprep.subr.mxu1 %v8503_v6 }
 0x595   :  { %1747 = vrot.lane.b32.xlu1 %v7297_v56, %s8506_s27 }
 0x599   :  { %1743 = vrot.lane.b32.xlu1 %v7295_v57, %s8506_s27 }
 0x59d   :  { %1741 = vrot.lane.b32.xlu1 %v7294_v2, %s8506_s27 }
 0x60d   :  { %v1605_v58 = vpop.xlane.xlu1 %1604 }
 0x60e   :  { %v1608_v59 = vmul.f32 0.03125, %v1605_v58 }
 0x60f   :  { %v1602_v60 = vpop.xlane.xlu0 %1601 }
 0x610   :  { %v1610_v61 = vsub.f32 %v1597_v53, %v1608_v59  ;;  %v1607_v62 = vmul.f32 0.03125, %v1602_v60 }
 0x611   :  { %v1748_v7 = vpop.permute.xlu1 %1747 }
 0x612   :  { %v1609_v63 = vsub.f32 %v1596_v11, %v1607_v62  ;;  %v1612_v0 = vmul.f32 %v1610_v61, %v1610_v61  ;;  %7855 = vmatprep.subr.mxu0 %v1748_v7 }
 0x613   :  { %7856 = vmatpush3.msra.mxu0 %v1748_v7 }
 0x614   :  { %v1616_v1 = vsel %vm71_vm0, %v1612_v0, 0.0  ;;  %v1611_v3 = vmul.f32 %v1609_v63, %v1609_v63 }
 0x615   :  { %1617 = vadd.xlane.f32.xlu0 %v1616_v1  ;;  %v1744_v16 = vpop.permute.xlu1 %1743 }
 0x616   :  { %v1613_v4 = vsel %vm71_vm0, %v1611_v3, 0.0 }
 0x619   :  { %1614 = vadd.xlane.f32.xlu0 %v1613_v4  ;;  %v1742_v19 = vpop.permute.xlu1 %1741 }
 0x62f   :  { %1745 = vrot.lane.b32.xlu0 %v7296_v5, %s8506_s27 }
 0x633   :  { %1753 = vrot.lane.b32.xlu0 %v8852_v9, %s8506_s27 }
 0x69e   :  { %v1618_v12 = vpop.xlane.xlu0 %1617 }
 0x69f   :  { %v1620_v13 = vmul.f32 0.03125, %v1618_v12 }
 0x6a1   :  { %v1622_v14 = vadd.f32 1e-05, %v1620_v13 }
 0x6a2   :  { %v1615_v15 = vpop.xlane.xlu0 %1614 }
 0x6a3   :  { %8353 = vrsqrt.f32 %v1622_v14  ;;  %v1619_v17 = vmul.f32 0.03125, %v1615_v15 }
 0x6a5   :  { %v1621_v18 = vadd.f32 1e-05, %v1619_v17 }
 0x6a6   :  { %v1746_v10 = vpop.permute.xlu0 %1745 }
 0x6a7   :  { %8355 = vrsqrt.f32 %v1621_v18  ;;  %7857 = vmatprep.subr.mxu0 %v1746_v10 }
 0x6a8   :  { %7858 = vmatpush3.msra.mxu0 %v1746_v10 }
 0x6a9   :  { %7859 = vmatprep.subr.mxu0 %v1744_v16 }
 0x6aa   :  { %7860 = vmatpush3.msra.mxu0 %v1744_v16  ;;  %v8887_v34 = vpop.permute.xlu0 %1753 }
 0x6ab   :  { %7861 = vmatprep.subr.mxu0 %v1742_v19 }
 0x6ac   :  { %7862 = vmatpush3.msra.mxu0 %v1742_v19 }
 0x6ad   :  { %7864 = vmatmul.mubr.msk.f32.vlgmr.msra.gmra.mxu0 %vm71_vm0, %v51_v20  ;;  %7883 = vmatprep.subr.mxu0 %v8503_v6 }
 0x6ae   :  { %7866 = vmatprep.mubr.msk.f32.mxu0 %vm71_vm0, %v52_v21 }
 0x6b0   :  { %v8354_v23 = vpop.eup %8353 }
 0x6b1   :  { %7867 = vmatmul.mubr.msk.f32.gmra.mxu0 %vm71_vm0, %v53_v22  ;;  %v1626_v24 = vmul.f32 %v8354_v23, %v1610_v61 }
 0x6b2   :  { %7887 = vmatprep.mubr.msk.f32.mxu0 %vm8504_vm1, %v8503_v6 }
 0x6b3   :  { %v1634_v28 = vmul.f32 %v7292_v25, %v1626_v24 }
 0x6b4   :  { %v8356_v26 = vpop.eup %8355 }
 0x6b5   :  { %v1625_v27 = vmul.f32 %v8356_v26, %v1609_v63  ;;  %v8879_v33 = vadd.f32 %v7293_v29, %v1634_v28 }
 0x6b7   :  { %v1633_v30 = vmul.f32 %v7292_v25, %v1625_v27 }
 0x6b9   :  { %v8877_v32 = vadd.f32 %v7293_v29, %v1633_v30 }
 0x6bb   :  { %7852 = vmatprep.mubr.msk.f32.mxu1 %vm71_vm0, %v8877_v32 }
 0x6bc   :  { %7853 = vmatmul.mubr.msk.f32.vlgmr.msra.gmra.mxu1 %vm71_vm0, %v8879_v33 }
 0x6bd   :  { %7873 = vmatprep.mubr.msk.f32.mxu1 %vm8504_vm1, %v8503_v6 }
 0x76d   :  { %v7865_v35 = vpop.f32.mrf.mxu0 }
 0x76e   :  { %v8890_v36 = vadd.f32 %v7865_v35, %v8887_v34 }
 0x76f   :  { %v1834_v37 = vpop.f32.mrf.mxu0 }
 0x770   :  { %v8893_v38 = vadd.f32 %v1834_v37, %v8887_v34  ;;  %2026 = vrot.lane.b32.xlu1 %v8890_v36, %s8505_s26  ;;  %7870 = vmatpush3.xpose.msk.msra.mxu1 %vm156_vm2, %v8890_v36 }
 0x771   :  { %7871 = vmatprep.subr.mxu1 %v8503_v6  ;;  %v8943_v51 = vpop.f32.mrf.mxu0 }
 0x772   :  { %2024 = vrot.lane.b32.xlu0 %v8893_v38, %s8505_s26 }
 0x773   :  { %v8945_v52 = vpop.f32.mrf.mxu0 }
 0x774   :  { %7872 = vmatpush3.xpose.msk.msra.mxu1 %vm156_vm2, %v8893_v38 }
 0x775   :  { %7876 = vmatprep.subr.mxu1 %v8503_v6 }
 0x776   :  { %2198 = vrot.lane.b32.xlu0 %v8890_v36, %s8510_s15 }
 0x77c   :  { %v8907_v39 = vpop.f32.mrf.mxu1 }
 0x77e   :  { %v1728_v40 = vpop.f32.mrf.mxu1 }
 0x77f   :  { %v8910_v41 = vadd.f32 %v8852_v9, %v1728_v40 }
 0x781   :  { %2022 = vrot.lane.b32.xlu1 %v8910_v41, %s8505_s26  ;;  %2194 = vrot.lane.b32.xlu0 %v8910_v41, %s8510_s15 }
 0x782   :  { %7874 = vmatmul.mubr.msk.f32.vlgmr.msra.gmra.mxu1 %vm156_vm2, %v8910_v41 }
 0x783   :  { %7880 = vmatprep.mubr.msk.f32.mxu1 %vm8504_vm1, %v8503_v6 }
 0x785   :  { %2196 = vrot.lane.b32.xlu1 %v8893_v38, %s8510_s15 }
 0x7e2   :  { %v2027_v42 = vpop.permute.xlu1 %2026 }
 0x7e3   :  { %7884 = vmatpush3.xpose.msk.msra.mxu0 %vm156_vm2, %v2027_v42 }
 0x7e4   :  { %7885 = vmatprep.subr.mxu0 %v8503_v6  ;;  %v2025_v43 = vpop.permute.xlu0 %2024 }
 0x7e7   :  { %7886 = vmatpush3.xpose.msk.msra.mxu0 %vm156_vm2, %v2025_v43 }
 0x7e8   :  { %7897 = vmatprep.subr.mxu0 %v8503_v6  ;;  %v2199_v45 = vpop.permute.xlu0 %2198 }
 0x7f3   :  { %v2023_v44 = vpop.permute.xlu1 %2022  ;;  %v2195_v47 = vpop.permute.xlu0 %2194 }
 0x7f4   :  { %7888 = vmatmul.mubr.msk.f32.vlgmr.msra.gmra.mxu0 %vm156_vm2, %v2023_v44 }
 0x7f5   :  { %7898 = vmatpush3.xpose.msk.msra.mxu0 %vm156_vm2, %v2199_v45  ;;  %7901 = vmatprep.mubr.msk.f32.mxu0 %vm8504_vm1, %v8503_v6 }
 0x7f6   :  { %7899 = vmatprep.subr.mxu0 %v8503_v6 }
 0x7f7   :  { %v2197_v46 = vpop.permute.xlu1 %2196 }
 0x7f9   :  { %7900 = vmatpush3.xpose.msk.msra.mxu0 %vm156_vm2, %v2197_v46 }
 0x7fa   :  { %7918 = vmatprep.subr.mxu0 %v8503_v6 }
 0x7fc   :  { %7902 = vmatmul.mubr.msk.f32.vlgmr.msra.gmra.mxu0 %vm156_vm2, %v2195_v47 }
 0x7fd   :  { %7922 = vmatprep.mubr.msk.f32.mxu0 %vm8504_vm1, %v8503_v6 }
 0x842   :  { %v1928_v48 = vpop.f32.mrf.mxu1 }
 0x843   :  { %v1932_v49 = vsel %vm826_vm4, %v1928_v48, -inf }
 0x844   :  { %1933 = vmax.xlane.f32.xlu1 %v1932_v49  ;;  %v7875_v50 = vpop.f32.mrf.mxu1 }
 0x855   :  { %1943 = vrot.lane.b32.xlu1 %v8893_v38, %s8506_s27 }
 0x859   :  { %2117 = vrot.lane.b32.xlu1 %v8890_v36, %s8508_s29 }
 0x85d   :  { %2289 = vrot.lane.b32.xlu1 %v8890_v36, %s8507_s28 }
 0x8b4   :  { %v2100_v53 = vpop.f32.mrf.mxu0 }
 0x8b5   :  { %v2104_v54 = vsel %vm826_vm4, %v2100_v53, -inf }
 0x8b6   :  { %2105 = vmax.xlane.f32.xlu0 %v2104_v54  ;;  %v7889_v11 = vpop.f32.mrf.mxu0  ;;  %v9001_v54 = vadd.f32 %v8945_v52, %v8887_v34 }
 0x8bc   :  { %v2272_v55 = vpop.f32.mrf.mxu0 }
 0x8bd   :  { %v2276_v56 = vsel %vm826_vm4, %v2272_v55, -inf }
 0x8be   :  { %2277 = vmax.xlane.f32.xlu0 %v2276_v56  ;;  %v7903_v57 = vpop.f32.mrf.mxu0 }
 0x8bf   :  { %v9008_v57 = vadd.f32 %v8943_v51, %v8887_v34 }
 0x8cd   :  { %v1934_v5 = vpop.xlane.xlu1 %1933 }
 0x8ce   :  { %v1935_v2 = vsub.f32 %v1928_v48, %v1934_v5 }
 0x8d0   :  { %v1936_v58 = vmul.f32 1.442695, %v1935_v2 }
 0x8d1   :  { %v1944_v7 = vpop.permute.xlu1 %1943 }
 0x8d2   :  { %8357 = vpow2.f32 %v1936_v58 }
 0x8d4   :  { %1945 = vrot.lane.b32.xlu0 %v8890_v36, %s8506_s27 }
 0x8d5   :  { %v2118_v15 = vpop.permute.xlu1 %2117 }
 0x8d8   :  { %2115 = vrot.lane.b32.xlu0 %v8893_v38, %s8508_s29 }
 0x8d9   :  { %v2290_v16 = vpop.permute.xlu1 %2289 }
 0x8df   :  { %v8358_v59 = vpop.eup %8357 }
 0x8e0   :  { %v1938_v60 = vsel %vm826_vm4, %v8358_v59, 0.0 }
 0x8e1   :  { %1939 = vadd.xlane.f32.xlu1 %v1938_v60 }
 0x8f2   :  { %2370 = vrot.lane.b32.xlu1 %v8890_v36, %s9859_s16 }
 0x93f   :  { %v2106_v61 = vpop.xlane.xlu0 %2105 }
 0x940   :  { %v2107_v62 = vsub.f32 %v2100_v53, %v2106_v61 }
 0x942   :  { %v2108_v63 = vmul.f32 1.442695, %v2107_v62 }
 0x944   :  { %8359 = vpow2.f32 %v2108_v63 }
 0x947   :  { %v2278_v0 = vpop.xlane.xlu0 %2277 }
 0x948   :  { %v2279_v1 = vsub.f32 %v2272_v55, %v2278_v0 }
 0x94a   :  { %v2280_v3 = vmul.f32 1.442695, %v2279_v1 }
 0x94b   :  { %v1946_v4 = vpop.permute.xlu0 %1945 }
 0x94c   :  { %8361 = vpow2.f32 %v2280_v3  ;;  %7877 = vmatpush3.msra.mxu1 %v1946_v4 }
 0x94d   :  { %7878 = vmatprep.subr.mxu1 %v8503_v6 }
 0x94e   :  { %7879 = vmatpush3.msra.mxu1 %v1944_v7 }
 0x94f   :  { %7890 = vmatprep.subr.mxu1 %v8503_v6  ;;  %v2116_v19 = vpop.permute.xlu0 %2115 }
 0x951   :  { %v8360_v8 = vpop.eup %8359 }
 0x952   :  { %v2110_v12 = vsel %vm826_vm4, %v8360_v8, 0.0 }
 0x953   :  { %2111 = vadd.xlane.f32.xlu0 %v2110_v12 }
 0x959   :  { %v8362_v13 = vpop.eup %8361 }
 0x95a   :  { %v2282_v14 = vsel %vm826_vm4, %v8362_v13, 0.0 }
 0x95b   :  { %2283 = vadd.xlane.f32.xlu1 %v2282_v14 }
 0x969   :  { %2287 = vrot.lane.b32.xlu0 %v8893_v38, %s8507_s28 }
 0x96a   :  { %v1940_v17 = vpop.xlane.xlu1 %1939 }
 0x96b   :  { %8363 = vrcp.f32 %v1940_v17 }
 0x96c   :  { %2366 = vrot.lane.b32.xlu1 %v8910_v41, %s9859_s16 }
 0x96d   :  { %2368 = vrot.lane.b32.xlu0 %v8893_v38, %s9859_s16 }
 0x96e   :  { %v2371_v21 = vpop.permute.xlu1 %2370 }
 0x978   :  { %v8364_v18 = vpop.eup %8363 }
 0x979   :  { %v1942_v10 = vmul.f32 %v8364_v18, %v8358_v59 }
 0x97b   :  { %7881 = vmatmul.mubr.msk.f32.vlgmr.msra.gmra.mxu1 %vm826_vm4, %v1942_v10 }
 0x97c   :  { %7891 = vmatpush3.msra.mxu1 %v2118_v15  ;;  %7894 = vmatprep.mubr.msk.f32.mxu1 %vm8504_vm1, %v8503_v6 }
 0x97d   :  { %7892 = vmatprep.subr.mxu1 %v8503_v6 }
 0x97e   :  { %7893 = vmatpush3.msra.mxu1 %v2116_v19 }
 0x97f   :  { %7904 = vmatprep.subr.mxu1 %v8503_v6 }
 0x9dc   :  { %v2112_v20 = vpop.xlane.xlu0 %2111 }
 0x9dd   :  { %8365 = vrcp.f32 %v2112_v20 }
 0x9e0   :  { %v2288_v25 = vpop.permute.xlu0 %2287 }
 0x9e4   :  { %v2284_v22 = vpop.xlane.xlu1 %2283  ;;  %v2369_v28 = vpop.permute.xlu0 %2368 }
 0x9e5   :  { %8367 = vrcp.f32 %v2284_v22 }
 0x9e8   :  { %v2367_v29 = vpop.permute.xlu1 %2366 }
 0x9ea   :  { %v8366_v23 = vpop.eup %8365 }
 0x9eb   :  { %v2114_v24 = vmul.f32 %v8366_v23, %v8360_v8 }
 0x9ed   :  { %7895 = vmatmul.mubr.msk.f32.vlgmr.msra.gmra.mxu1 %vm826_vm4, %v2114_v24 }
 0x9ee   :  { %7905 = vmatpush3.msra.mxu1 %v2290_v16  ;;  %7908 = vmatprep.mubr.msk.f32.mxu1 %vm8504_vm1, %v8503_v6 }
 0x9ef   :  { %7906 = vmatprep.subr.mxu1 %v8503_v6 }
 0x9f0   :  { %7907 = vmatpush3.msra.mxu1 %v2288_v25 }
 0x9f1   :  { %7911 = vmatprep.subr.mxu1 %v8503_v6 }
 0x9f2   :  { %v8368_v26 = vpop.eup %8367 }
 0x9f3   :  { %v2286_v27 = vmul.f32 %v8368_v26, %v8362_v13 }
 0x9f5   :  { %7909 = vmatmul.mubr.msk.f32.vlgmr.msra.gmra.mxu1 %vm826_vm4, %v2286_v27 }
 0x9f6   :  { %7912 = vmatpush3.xpose.msk.msra.mxu1 %vm156_vm2, %v2371_v21  ;;  %7915 = vmatprep.mubr.msk.f32.mxu1 %vm8504_vm1, %v8503_v6 }
 0x9f7   :  { %7913 = vmatprep.subr.mxu1 %v8503_v6 }
 0x9fa   :  { %7914 = vmatpush3.xpose.msk.msra.mxu1 %vm156_vm2, %v2369_v28 }
 0x9fb   :  { %7932 = vmatprep.subr.mxu1 %v8503_v6 }
 0x9fd   :  { %7916 = vmatmul.mubr.msk.f32.vlgmr.msra.gmra.mxu1 %vm156_vm2, %v2367_v29 }
 0x9fe   :  { %7936 = vmatprep.mubr.msk.f32.mxu1 %vm8504_vm1, %v8503_v6 }
 0xa3b   :  { %v8986_v30 = vpop.f32.mrf.mxu1 }
 0xa3d   :  { %v7882_v35 = vpop.f32.mrf.mxu1 }
 0xaad   :  { %v8988_v37 = vpop.f32.mrf.mxu1 }
 0xaaf   :  { %v7896_v40 = vpop.f32.mrf.mxu1 }
 0xab5   :  { %v8990_v41 = vpop.f32.mrf.mxu1 }
 0xab7   :  { %v7910_v42 = vpop.f32.mrf.mxu1 }
 0xabd   :  { %v2444_v43 = vpop.f32.mrf.mxu1 }
 0xabe   :  { %v2448_v44 = vsel %vm826_vm4, %v2444_v43, -inf }
 0xabf   :  { %2449 = vmax.xlane.f32.xlu0 %v2448_v44  ;;  %v7917_v45 = vpop.f32.mrf.mxu1 }
 0xad5   :  { %2461 = vrot.lane.b32.xlu0 %v8890_v36, %s9861_s30 }
 0xb48   :  { %v2450_v46 = vpop.xlane.xlu0 %2449 }
 0xb49   :  { %v2451_v47 = vsub.f32 %v2444_v43, %v2450_v46 }
 0xb4b   :  { %v2452_v48 = vmul.f32 1.442695, %v2451_v47 }
 0xb4c   :  { %v2462_v49 = vpop.permute.xlu0 %2461 }
 0xb4d   :  { %8369 = vpow2.f32 %v2452_v48  ;;  %7919 = vmatpush3.msra.mxu0 %v2462_v49 }
 0xb4e   :  { %7920 = vmatprep.subr.mxu0 %v8503_v6 }
 0xb5a   :  { %v8370_v50 = vpop.eup %8369 }
 0xb5b   :  { %v2454_v53 = vsel %vm826_vm4, %v8370_v50, 0.0 }
 0xb5c   :  { %2455 = vadd.xlane.f32.xlu1 %v2454_v53 }
 0xb6d   :  { %2459 = vrot.lane.b32.xlu1 %v8893_v38, %s9861_s30  ;;  %v9020_v38 = vadd.f32 %v8907_v39, %v8852_v9 }
 0xb71   :  { %2643 = vrot.lane.b32.xlu1 %v9001_v54, %s8506_s27 }
 0xbe5   :  { %v2456_v36 = vpop.xlane.xlu1 %2455 }
 0xbe6   :  { %8371 = vrcp.f32 %v2456_v36 }
 0xbe9   :  { %v2460_v11 = vpop.permute.xlu1 %2459 }
 0xbea   :  { %7921 = vmatpush3.msra.mxu0 %v2460_v11 }
 0xbeb   :  { %7925 = vmatprep.subr.mxu0 %v8503_v6 }
 0xbed   :  { %v2644_v60 = vpop.permute.xlu1 %2643 }
 0xbf3   :  { %v8372_v55 = vpop.eup %8371 }
 0xbf4   :  { %v2458_v56 = vmul.f32 %v8372_v55, %v8370_v50 }
 0xbf6   :  { %7923 = vmatmul.mubr.msk.f32.vlgmr.msra.gmra.mxu0 %vm826_vm4, %v2458_v56 }
 0xbf7   :  { %7926 = vmatpush3.xpose.msk.msra.mxu0 %vm156_vm2, %v9008_v57  ;;  %7929 = vmatprep.mubr.msk.f32.mxu0 %vm8504_vm1, %v8503_v6 }
 0xbf8   :  { %7927 = vmatprep.subr.mxu0 %v8503_v6 }
 0xbfb   :  { %7928 = vmatpush3.xpose.msk.msra.mxu0 %vm156_vm2, %v9001_v54 }
 0xbfc   :  { %7946 = vmatprep.subr.mxu0 %v8503_v6 }
 0xbfe   :  { %7930 = vmatmul.mubr.msk.f32.vlgmr.msra.gmra.mxu0 %vm156_vm2, %v9020_v38 }
 0xbff   :  { %7950 = vmatprep.mubr.msk.f32.mxu0 %vm8504_vm1, %v8503_v6 }
 0xcb6   :  { %v9027_v34 = vpop.f32.mrf.mxu0 }
 0xcb8   :  { %v7924_v51 = vpop.f32.mrf.mxu0 }
 0xcbe   :  { %v2628_v52 = vpop.f32.mrf.mxu0 }
 0xcbf   :  { %v2632_v5 = vsel %vm826_vm4, %v2628_v52, -inf }
 0xcc0   :  { %2633 = vmax.xlane.f32.xlu0 %v2632_v5  ;;  %v7931_v2 = vpop.f32.mrf.mxu0 }
 0xcd6   :  { %2645 = vrot.lane.b32.xlu0 %v9008_v57, %s8506_s27 }
 0xcda   :  { %2726 = vrot.lane.b32.xlu0 %v9008_v57, %s8505_s26 }
 0xcde   :  { %2722 = vrot.lane.b32.xlu0 %v9020_v38, %s8505_s26 }
 0xd49   :  { %v2634_v9 = vpop.xlane.xlu0 %2633 }
 0xd4a   :  { %v2635_v39 = vsub.f32 %v2628_v52, %v2634_v9 }
 0xd4c   :  { %v2636_v58 = vmul.f32 1.442695, %v2635_v39 }
 0xd4d   :  { %v2646_v59 = vpop.permute.xlu0 %2645 }
 0xd4e   :  { %8373 = vpow2.f32 %v2636_v58  ;;  %7933 = vmatpush3.msra.mxu1 %v2646_v59 }
 0xd4f   :  { %7934 = vmatprep.subr.mxu1 %v8503_v6 }
 0xd50   :  { %7935 = vmatpush3.msra.mxu1 %v2644_v60 }
 0xd51   :  { %7939 = vmatprep.subr.mxu1 %v8503_v6  ;;  %v2727_v3 = vpop.permute.xlu0 %2726 }
 0xd55   :  { %v2723_v7 = vpop.permute.xlu0 %2722 }
 0xd5b   :  { %v8374_v61 = vpop.eup %8373 }
 0xd5c   :  { %v2638_v62 = vsel %vm826_vm4, %v8374_v61, 0.0 }
 0xd5d   :  { %2639 = vadd.xlane.f32.xlu1 %v2638_v62 }
 0xd6e   :  { %2724 = vrot.lane.b32.xlu1 %v9001_v54, %s8505_s26 }
 0xde6   :  { %v2640_v63 = vpop.xlane.xlu1 %2639 }
 0xde7   :  { %8375 = vrcp.f32 %v2640_v63 }
 0xdea   :  { %v2725_v4 = vpop.permute.xlu1 %2724 }
 0xdf4   :  { %v8376_v0 = vpop.eup %8375 }
 0xdf5   :  { %v2642_v1 = vmul.f32 %v8376_v0, %v8374_v61 }
 0xdf7   :  { %7937 = vmatmul.mubr.msk.f32.vlgmr.msra.gmra.mxu1 %vm826_vm4, %v2642_v1 }
 0xdf8   :  { %7940 = vmatpush3.xpose.msk.msra.mxu1 %vm156_vm2, %v2727_v3  ;;  %7943 = vmatprep.mubr.msk.f32.mxu1 %vm8504_vm1, %v8503_v6 }
 0xdf9   :  { %7941 = vmatprep.subr.mxu1 %v8503_v6 }
 0xdfc   :  { %7942 = vmatpush3.xpose.msk.msra.mxu1 %vm156_vm2, %v2725_v4  ;;  %v7341_v4 = vld [vmem:[%s9836_s4 + $0x38] sm:$0xff] }
 0xdfd   :  { %7960 = vmatprep.subr.mxu1 %v8503_v6 }
 0xdff   :  { %7944 = vmatmul.mubr.msk.f32.vlgmr.msra.gmra.mxu1 %vm156_vm2, %v2723_v7  ;;  %v7340_v7 = vld [vmem:[%s9836_s4 + $0x30] sm:$0xff] }
 0xe00   :  { %7964 = vmatprep.mubr.msk.f32.mxu1 %vm8504_vm1, %v8503_v6 }
 0xeb7   :  { %v9051_v8 = vpop.f32.mrf.mxu1 }
 0xeb9   :  { %v7938_v12 = vpop.f32.mrf.mxu1 }
 0xeba   :  { %v7338_v12 = vld [vmem:[%s9836_s4 + $0x20] sm:$0xff] }
 0xebf   :  { %v2800_v13 = vpop.f32.mrf.mxu1 }
 0xec0   :  { %v2804_v14 = vsel %vm826_vm4, %v2800_v13, -inf }
 0xec1   :  { %2805 = vmax.xlane.f32.xlu1 %v2804_v14  ;;  %v7945_v15 = vpop.f32.mrf.mxu1 }
 0xed2   :  { %2815 = vrot.lane.b32.xlu1 %v9001_v54, %s8508_s29 }
 0xed6   :  { %2898 = vrot.lane.b32.xlu1 %v9008_v57, %s8510_s15 }
 0xeda   :  { %2894 = vrot.lane.b32.xlu1 %v9020_v38, %s8510_s15 }
 0xede   :  { %2987 = vrot.lane.b32.xlu1 %v9001_v54, %s8507_s28 }
 0xf4a   :  { %v2806_v16 = vpop.xlane.xlu1 %2805 }
 0xf4b   :  { %v2807_v17 = vsub.f32 %v2800_v13, %v2806_v16 }
 0xf4d   :  { %v2808_v18 = vmul.f32 1.442695, %v2807_v17 }
 0xf4e   :  { %v2816_v22 = vpop.permute.xlu1 %2815 }
 0xf4f   :  { %8377 = vpow2.f32 %v2808_v18 }
 0xf52   :  { %v2899_v25 = vpop.permute.xlu1 %2898 }
 0xf56   :  { %v2895_v27 = vpop.permute.xlu1 %2894 }
 0xf5a   :  { %v2988_v47 = vpop.permute.xlu1 %2987 }
 0xf5c   :  { %v8378_v10 = vpop.eup %8377 }
 0xf5d   :  { %v2810_v19 = vsel %vm826_vm4, %v8378_v10, 0.0 }
 0xf5e   :  { %2811 = vadd.xlane.f32.xlu0 %v2810_v19 }
 0xf74   :  { %2817 = vrot.lane.b32.xlu0 %v9008_v57, %s8508_s29 }
 0xf78   :  { %2896 = vrot.lane.b32.xlu0 %v9001_v54, %s8510_s15 }
 0xfe7   :  { %v2812_v20 = vpop.xlane.xlu0 %2811 }
 0xfe8   :  { %8379 = vrcp.f32 %v2812_v20  ;;  %v7343_v20 = vld [vmem:[%s9837_s5 + $0x1] ss:$0 sm:$0xff] }
 0xfeb   :  { %v2818_v21 = vpop.permute.xlu0 %2817 }
 0xfec   :  { %7947 = vmatpush3.msra.mxu0 %v2818_v21 }
 0xfed   :  { %7948 = vmatprep.subr.mxu0 %v8503_v6 }
 0xfee   :  { %7949 = vmatpush3.msra.mxu0 %v2816_v22 }
 0xfef   :  { %7953 = vmatprep.subr.mxu0 %v8503_v6  ;;  %v2897_v26 = vpop.permute.xlu0 %2896 }
 0xff5   :  { %v8380_v23 = vpop.eup %8379 }
 0xff6   :  { %v2814_v24 = vmul.f32 %v8380_v23, %v8378_v10 }
 0xff8   :  { %7951 = vmatmul.mubr.msk.f32.vlgmr.msra.gmra.mxu0 %vm826_vm4, %v2814_v24 }
 0xff9   :  { %7954 = vmatpush3.xpose.msk.msra.mxu0 %vm156_vm2, %v2899_v25  ;;  %7957 = vmatprep.mubr.msk.f32.mxu0 %vm8504_vm1, %v8503_v6 }
 0xffa   :  { %7955 = vmatprep.subr.mxu0 %v8503_v6 }
 0xffd   :  { %7956 = vmatpush3.xpose.msk.msra.mxu0 %vm156_vm2, %v2897_v26 }
 0xffe   :  { %7974 = vmatprep.subr.mxu0 %v8503_v6 }
0x1000   :  { %7958 = vmatmul.mubr.msk.f32.vlgmr.msra.gmra.mxu0 %vm156_vm2, %v2895_v27 }
0x1001   :  { %7978 = vmatprep.mubr.msk.f32.mxu0 %vm8504_vm1, %v8503_v6 }
0x10b8   :  { %v2890_v28 = vpop.f32.mrf.mxu0 }
0x10ba   :  { %v7952_v29 = vpop.f32.mrf.mxu0 }
0x10c0   :  { %v2972_v35 = vpop.f32.mrf.mxu0 }
0x10c1   :  { %v2976_v40 = vsel %vm826_vm4, %v2972_v35, -inf }
0x10c2   :  { %2977 = vmax.xlane.f32.xlu0 %v2976_v40  ;;  %v7959_v42 = vpop.f32.mrf.mxu0 }
0x10d8   :  { %2989 = vrot.lane.b32.xlu0 %v9008_v57, %s8507_s28 }
0x10dc   :  { %3070 = vrot.lane.b32.xlu0 %v9008_v57, %s9859_s16 }
0x10e0   :  { %3066 = vrot.lane.b32.xlu0 %v9020_v38, %s9859_s16 }
0x114b   :  { %v2978_v43 = vpop.xlane.xlu0 %2977 }
0x114c   :  { %v2979_v44 = vsub.f32 %v2972_v35, %v2978_v43 }
0x114e   :  { %v2980_v45 = vmul.f32 1.442695, %v2979_v44 }
0x114f   :  { %v2990_v46 = vpop.permute.xlu0 %2989 }
0x1150   :  { %8381 = vpow2.f32 %v2980_v45  ;;  %7961 = vmatpush3.msra.mxu1 %v2990_v46 }
0x1151   :  { %7962 = vmatprep.subr.mxu1 %v8503_v6 }
0x1152   :  { %7963 = vmatpush3.msra.mxu1 %v2988_v47  ;;  %v3397_v47 = vld [vmem:[%s9838_s6 + $0x10] sm:$0xff] }
0x1153   :  { %7967 = vmatprep.subr.mxu1 %v8503_v6  ;;  %v3071_v11 = vpop.permute.xlu0 %3070 }
0x1157   :  { %v3067_v56 = vpop.permute.xlu0 %3066 }
0x115d   :  { %v8382_v48 = vpop.eup %8381 }
0x115e   :  { %v2982_v49 = vsel %vm826_vm4, %v8382_v48, 0.0 }
0x115f   :  { %2983 = vadd.xlane.f32.xlu1 %v2982_v49  ;;  %v3395_v49 = vld [vmem:[%s9838_s6] sm:$0xff] }
0x1170   :  { %3068 = vrot.lane.b32.xlu1 %v9001_v54, %s9859_s16 }
0x11e8   :  { %v2984_v50 = vpop.xlane.xlu1 %2983 }
0x11e9   :  { %8383 = vrcp.f32 %v2984_v50  ;;  %v3496_v50 = vld [vmem:[%s9840_s8 + $0x38] sm:$0xff] }
0x11ec   :  { %v3069_v55 = vpop.permute.xlu1 %3068 }
0x11f6   :  { %v8384_v53 = vpop.eup %8383 }
0x11f7   :  { %v2986_v36 = vmul.f32 %v8384_v53, %v8382_v48  ;;  %v3396_v48 = vld [vmem:[%s9838_s6 + $0x8] sm:$0xff]  ;;  %v3495_v53 = vld [vmem:[%s9840_s8 + $0x30] sm:$0xff] }
0x11f9   :  { %7965 = vmatmul.mubr.msk.f32.vlgmr.msra.gmra.mxu1 %vm826_vm4, %v2986_v36  ;;  %v3494_v36 = vld [vmem:[%s9840_s8 + $0x28] sm:$0xff] }
0x11fa   :  { %7968 = vmatpush3.xpose.msk.msra.mxu1 %vm156_vm2, %v3071_v11  ;;  %7971 = vmatprep.mubr.msk.f32.mxu1 %vm8504_vm1, %v8503_v6  ;;  %v3493_v11 = vld [vmem:[%s9840_s8 + $0x20] sm:$0xff] }
0x11fb   :  { %7969 = vmatprep.subr.mxu1 %v8503_v6 }
0x11fe   :  { %7970 = vmatpush3.xpose.msk.msra.mxu1 %vm156_vm2, %v3069_v55 }
0x1201   :  { %7972 = vmatmul.mubr.msk.f32.vlgmr.msra.gmra.mxu1 %vm156_vm2, %v3067_v56 }
0x12b9   :  { %v3062_v38 = vpop.f32.mrf.mxu1 }
0x12bb   :  { %v7966_v51 = vpop.f32.mrf.mxu1 }
0x12c1   :  { %v3144_v52 = vpop.f32.mrf.mxu1 }
0x12c2   :  { %v3148_v5 = vsel %vm826_vm4, %v3144_v52, -inf }
0x12c3   :  { %3149 = vmax.xlane.f32.xlu1 %v3148_v5  ;;  %v7973_v2 = vpop.f32.mrf.mxu1 }
0x12d4   :  { %3159 = vrot.lane.b32.xlu1 %v9001_v54, %s9861_s30 }
0x12d8   :  { %2539 = vrot.lane.b32.xlu1 %v8988_v37, %s8517_s21 }
0x12dc   :  { %3239 = vrot.lane.b32.xlu1 %v2890_v28, %s8517_s21 }
0x12e0   :  { %3243 = vrot.lane.b32.xlu1 %v3062_v38, %s9857_s22 }
0x134c   :  { %v3150_v9 = vpop.xlane.xlu1 %3149 }
0x134d   :  { %v3151_v39 = vsub.f32 %v3144_v52, %v3150_v9  ;;  %v7348_v9 = vld [vmem:[%s9842_s10 + $0x1] ss:$0 sm:$0xff] }
0x134f   :  { %v3152_v58 = vmul.f32 1.442695, %v3151_v39 }
0x1350   :  { %v3160_v61 = vpop.permute.xlu1 %3159 }
0x1351   :  { %8385 = vpow2.f32 %v3152_v58 }
0x1354   :  { %v2540_v63 = vpop.permute.xlu1 %2539 }
0x1358   :  { %v3240_v15 = vpop.permute.xlu1 %3239 }
0x1359   :  { %v3250_v17 = vsel %vm156_vm2, %v9051_v8, %v3240_v15 }
0x135c   :  { %v3244_v16 = vpop.permute.xlu1 %3243 }
0x135d   :  { %v3251_v18 = vsel %vm826_vm4, %v3250_v17, %v3244_v16 }
0x135e   :  { %v8386_v59 = vpop.eup %8385 }
0x135f   :  { %v3154_v60 = vsel %vm826_vm4, %v8386_v59, 0.0 }
0x1360   :  { %3155 = vadd.xlane.f32.xlu0 %v3154_v60 }
0x1376   :  { %3161 = vrot.lane.b32.xlu0 %v9008_v57, %s9861_s30  ;;  %v2550_v57 = vsel %vm156_vm2, %v8986_v30, %v2540_v63  ;;  %v7339_v30 = vld [vmem:[%s9836_s4 + $0x28] sm:$0xff]  ;;  %v3492_v63 = vld [vmem:[%s9840_s8 + $0x18] sm:$0xff] }
0x137a   :  { %2543 = vrot.lane.b32.xlu0 %v8990_v41, %s9857_s22  ;;  %s9862_s22 = smov 64  }
0x137e   :  { %2547 = vrot.lane.b32.xlu0 %v9027_v34, %s8519_s23 }
0x13e9   :  { %v3156_v37 = vpop.xlane.xlu0 %3155 }
0x13ea   :  { %8387 = vrcp.f32 %v3156_v37  ;;  %v7349_v37 = vld [vmem:[%s9843_s11 + $0x1] ss:$0 sm:$0xff] }
0x13ed   :  { %v3162_v54 = vpop.permute.xlu0 %3161 }
0x13ee   :  { %7975 = vmatpush3.msra.mxu0 %v3162_v54 }
0x13ef   :  { %7976 = vmatprep.subr.mxu0 %v8503_v6 }
0x13f0   :  { %7977 = vmatpush3.msra.mxu0 %v3160_v61 }
0x13f1   :  { %v2544_v62 = vpop.permute.xlu0 %2543  ;;  %7981 = vmatprep.subr.mxu0 %v7341_v4 }
0x13f2   :  { %v2551_v41 = vsel %vm826_vm4, %v2550_v57, %v2544_v62  ;;  %v3489_v57 = vld [vmem:[%s9840_s8] sm:$0xff] }
0x13f5   :  { %v2548_v1 = vpop.permute.xlu0 %2547 }
0x13f6   :  { %v2552_v34 = vsel %vm828_vm5, %v2551_v41, %v2548_v1  ;;  %v3490_v1 = vld [vmem:[%s9840_s8 + $0x8] sm:$0xff] }
0x13f7   :  { %v8388_v0 = vpop.eup %8387 }
0x13f8   :  { %v3158_v3 = vmul.f32 %v8388_v0, %v8386_v59  ;;  %v3491_v0 = vld [vmem:[%s9840_s8 + $0x10] sm:$0xff] }
0x13fa   :  { %7979 = vmatmul.mubr.msk.f32.vlgmr.msra.gmra.mxu0 %vm826_vm4, %v3158_v3  ;;  %v7350_v3 = vld [vmem:[%s9839_s7] ss:$0 sm:$0xff] }
0x13fb   :  { %7989 = vmatprep.mubr.msk.f32.mxu0 %vm71_vm0, %v2552_v34  ;;  %7982 = vmatpush3.msra.mxu0 %v7341_v4 }
0x13fc   :  { %7983 = vmatprep.subr.mxu0 %v7340_v7 }
0x13fd   :  { %7984 = vmatpush3.msra.mxu0 %v7340_v7 }
0x13fe   :  { %7985 = vmatprep.subr.mxu0 %v7339_v30 }
0x13ff   :  { %7986 = vmatpush3.msra.mxu0 %v7339_v30 }
0x1400   :  { %7987 = vmatprep.subr.mxu0 %v7338_v12 }
0x1401   :  { %7988 = vmatpush3.msra.mxu0 %v7338_v12 }
0x1402   :  { %8003 = vmatprep.subr.mxu0 %v3496_v50 }
0x14ba   :  { %v3234_v13 = vpop.f32.mrf.mxu0 }
0x14bb   :  { %3247 = vrot.lane.b32.xlu0 %v3234_v13, %s8519_s23  ;;  %v7353_v13 = vld [vmem:[%s9841_s9] ss:$0 sm:$0xff] }
0x14bc   :  { %v7980_v14 = vpop.f32.mrf.mxu0 }
0x152d   :  { %v3248_v10 = vpop.permute.xlu0 %3247 }
0x152e   :  { %v3252_v19 = vsel %vm828_vm5, %v3251_v18, %v3248_v10 }
0x152f   :  { %7990 = vmatmul.mubr.msk.f32.vlgmr.msra.gmra.mxu0 %vm71_vm0, %v3252_v19 }
0x1530   :  { %8004 = vmatpush3.msra.mxu0 %v3496_v50 }
0x1531   :  { %8005 = vmatprep.subr.mxu0 %v3495_v53 }
0x1532   :  { %8006 = vmatpush3.msra.mxu0 %v3495_v53 }
0x1533   :  { %8007 = vmatprep.subr.mxu0 %v3494_v36 }
0x1534   :  { %8008 = vmatpush3.msra.mxu0 %v3494_v36 }
0x1535   :  { %8009 = vmatprep.subr.mxu0 %v3493_v11 }
0x1536   :  { %8010 = vmatpush3.msra.mxu0 %v3493_v11 }
0x1537   :  { %8011 = vmatprep.subr.mxu0 %v3492_v63 }
0x1538   :  { %8012 = vmatpush3.msra.mxu0 %v3492_v63 }
0x1539   :  { %8013 = vmatprep.subr.mxu0 %v3491_v0 }
0x153a   :  { %8014 = vmatpush3.msra.mxu0 %v3491_v0 }
0x153b   :  { %8015 = vmatprep.subr.mxu0 %v3490_v1 }
0x153c   :  { %8016 = vmatpush3.msra.mxu0 %v3490_v1 }
0x153d   :  { %8017 = vmatprep.subr.mxu0 %v3489_v57 }
0x153e   :  { %8018 = vmatpush3.msra.mxu0 %v3489_v57 }
0x153f   :  { %8043 = vmatprep.subr.mxu0 %v8503_v6 }
0x15ef   :  { %v7991_v21 = vpop.f32.mrf.mxu0 }
0x15f0   :  { %v3344_v22 = vadd.f32 %v7991_v21, %v7343_v20 }
0x15f1   :  { %v3338_v23 = vpop.f32.mrf.mxu0 }
0x15f2   :  { %v3348_v24 = vadd.f32 %v3344_v22, %v8879_v33  ;;  %v3339_v25 = vadd.f32 %v7343_v20, %v3338_v23 }
0x15f4   :  { %v3347_v26 = vadd.f32 %v3339_v25, %v8877_v32  ;;  %v3356_v8 = vsel %vm71_vm0, %v3348_v24, 0.0  ;;  %v3398_v32 = vld [vmem:[%s9838_s6 + $0x18] sm:$0xff] }
0x15f5   :  { %3357 = vadd.xlane.f32.xlu0 %v3356_v8  ;;  %7992 = vmatprep.subr.mxu1 %v3398_v32 }
0x15f6   :  { %v3353_v27 = vsel %vm71_vm0, %v3347_v26, 0.0  ;;  %7993 = vmatpush3.msra.mxu1 %v3398_v32 }
0x15f7   :  { %3354 = vadd.xlane.f32.xlu1 %v3353_v27  ;;  %7994 = vmatprep.subr.mxu1 %v3397_v47 }
0x15f8   :  { %7995 = vmatpush3.msra.mxu1 %v3397_v47 }
0x15f9   :  { %7996 = vmatprep.subr.mxu1 %v3396_v48 }
0x15fa   :  { %7997 = vmatpush3.msra.mxu1 %v3396_v48 }
0x15fb   :  { %7998 = vmatprep.subr.mxu1 %v3395_v49 }
0x15fc   :  { %7999 = vmatpush3.msra.mxu1 %v3395_v49  ;;  %v7358_v49 = vld [vmem:[%s9842_s10 + $0x2] ss:$0 sm:$0xff] }
0x167e   :  { %v3358_v28 = vpop.xlane.xlu0 %3357 }
0x167f   :  { %v3360_v29 = vmul.f32 0.03125, %v3358_v28 }
0x1680   :  { %v3355_v35 = vpop.xlane.xlu1 %3354 }
0x1681   :  { %v3362_v40 = vsub.f32 %v3348_v24, %v3360_v29  ;;  %v3359_v42 = vmul.f32 0.03125, %v3355_v35  ;;  %v7363_v35 = vld [vmem:[%s9834_s2 + $0x58] sm:$0xff] }
0x1682   :  { %8022 = vmatprep.subr.mxu1 %v7363_v35 }
0x1683   :  { %v3361_v43 = vsub.f32 %v3347_v26, %v3359_v42  ;;  %v3364_v44 = vmul.f32 %v3362_v40, %v3362_v40  ;;  %v7361_v42 = vld [vmem:[%s9834_s2 + $0x48] sm:$0xff] }
0x1685   :  { %v3368_v45 = vsel %vm71_vm0, %v3364_v44, 0.0  ;;  %v3363_v46 = vmul.f32 %v3361_v43, %v3361_v43 }
0x1686   :  { %3369 = vadd.xlane.f32.xlu1 %v3368_v45 }
0x1687   :  { %v3365_v33 = vsel %vm71_vm0, %v3363_v46, 0.0 }
0x1688   :  { %3366 = vadd.xlane.f32.xlu0 %v3365_v33 }
0x170f   :  { %v3370_v55 = vpop.xlane.xlu1 %3369 }
0x1710   :  { %v3372_v56 = vmul.f32 0.03125, %v3370_v55  ;;  %v7359_v55 = vld [vmem:[%s9843_s11 + $0x2] ss:$0 sm:$0xff] }
0x1711   :  { %v3367_v38 = vpop.xlane.xlu0 %3366 }
0x1712   :  { %v3374_v51 = vadd.f32 1e-05, %v3372_v56  ;;  %v3371_v52 = vmul.f32 0.03125, %v3367_v38 }
0x1714   :  { %8389 = vrsqrt.f32 %v3374_v51  ;;  %v3373_v5 = vadd.f32 1e-05, %v3371_v52 }
0x1716   :  { %8391 = vrsqrt.f32 %v3373_v5  ;;  %v7365_v5 = vld [vmem:[%s9835_s3 + $0x2] ss:$0 sm:$0xff] }
0x1721   :  { %v8390_v2 = vpop.eup %8389 }
0x1722   :  { %v3378_v39 = vmul.f32 %v8390_v2, %v3362_v40  ;;  %v7362_v40 = vld [vmem:[%s9834_s2 + $0x50] sm:$0xff] }
0x1723   :  { %v8392_v58 = vpop.eup %8391 }
0x1724   :  { %v3377_v59 = vmul.f32 %v8392_v58, %v3361_v43  ;;  %v3386_v60 = vmul.f32 %v7348_v9, %v3378_v39  ;;  %v7360_v43 = vld [vmem:[%s9834_s2 + $0x40] sm:$0xff] }
0x1726   :  { %v3385_v54 = vmul.f32 %v7348_v9, %v3377_v59  ;;  %v3394_v62 = vadd.f32 %v7349_v37, %v3386_v60 }
0x1728   :  { %v3393_v61 = vadd.f32 %v7349_v37, %v3385_v54 }
0x172a   :  { %8000 = vmatprep.mubr.msk.f32.mxu1 %vm71_vm0, %v3393_v61 }
0x172b   :  { %8001 = vmatmul.mubr.msk.f32.vlgmr.msra.gmra.mxu1 %vm71_vm0, %v3394_v62 }
0x172c   :  { %8023 = vmatpush3.msra.mxu1 %v7363_v35 }
0x172d   :  { %8024 = vmatprep.subr.mxu1 %v7362_v40 }
0x172e   :  { %8025 = vmatpush3.msra.mxu1 %v7362_v40 }
0x172f   :  { %8026 = vmatprep.subr.mxu1 %v7361_v42 }
0x1730   :  { %8027 = vmatpush3.msra.mxu1 %v7361_v42 }
0x1731   :  { %8028 = vmatprep.subr.mxu1 %v7360_v43 }
0x1732   :  { %8029 = vmatpush3.msra.mxu1 %v7360_v43 }
0x1733   :  { %8033 = vmatprep.subr.mxu1 %v8503_v6 }
0x17eb   :  { %v8002_v41 = vpop.f32.mrf.mxu1 }
0x17ec   :  { %v3484_v34 = vadd.f32 %v8002_v41, %v7350_v3 }
0x17ed   :  { %v3478_v4 = vpop.f32.mrf.mxu1 }
0x17ee   :  { %v3479_v7 = vadd.f32 %v7350_v3, %v3478_v4  ;;  %v3488_v12 = vmax.f32 %v3484_v34, 0.0 }
0x17f0   :  { %v3487_v30 = vmax.f32 %v3479_v7, 0.0 }
0x17f2   :  { %8019 = vmatprep.mubr.msk.f32.mxu0 %vm3504_vm6, %v3487_v30 }
0x17f3   :  { %8020 = vmatmul.mubr.msk.f32.vlgmr.msra.gmra.mxu0 %vm3504_vm6, %v3488_v12 }
0x17f4   :  { %8045 = vmatprep.mubr.msk.f32.mxu0 %vm8504_vm1, %v8503_v6 }
0x18b3   :  { %v8021_v14 = vpop.f32.mrf.mxu0 }
0x18b4   :  { %v3583_v15 = vadd.f32 %v8021_v14, %v7353_v13 }
0x18b5   :  { %v3577_v16 = vpop.f32.mrf.mxu0 }
0x18b6   :  { %v3587_v17 = vadd.f32 %v3583_v15, %v3394_v62  ;;  %v3578_v18 = vadd.f32 %v7353_v13, %v3577_v16 }
0x18b8   :  { %v3586_v10 = vadd.f32 %v3578_v18, %v3393_v61  ;;  %v3595_v19 = vsel %vm71_vm0, %v3587_v17, 0.0 }
0x18b9   :  { %3596 = vadd.xlane.f32.xlu1 %v3595_v19 }
0x18ba   :  { %v3592_v20 = vsel %vm71_vm0, %v3586_v10, 0.0 }
0x18bb   :  { %3593 = vadd.xlane.f32.xlu0 %v3592_v20 }
0x1942   :  { %v3597_v21 = vpop.xlane.xlu1 %3596 }
0x1943   :  { %v3599_v22 = vmul.f32 0.03125, %v3597_v21 }
0x1944   :  { %v3594_v23 = vpop.xlane.xlu0 %3593 }
0x1945   :  { %v3601_v24 = vsub.f32 %v3587_v17, %v3599_v22  ;;  %v3598_v25 = vmul.f32 0.03125, %v3594_v23 }
0x1947   :  { %v3600_v26 = vsub.f32 %v3586_v10, %v3598_v25  ;;  %v3603_v8 = vmul.f32 %v3601_v24, %v3601_v24 }
0x1949   :  { %v3607_v27 = vsel %vm71_vm0, %v3603_v8, 0.0  ;;  %v3602_v28 = vmul.f32 %v3600_v26, %v3600_v26 }
0x194a   :  { %3608 = vadd.xlane.f32.xlu1 %v3607_v27 }
0x194b   :  { %v3604_v29 = vsel %vm71_vm0, %v3602_v28, 0.0 }
0x194c   :  { %3605 = vadd.xlane.f32.xlu0 %v3604_v29 }
0x19d3   :  { %v3609_v44 = vpop.xlane.xlu1 %3608 }
0x19d4   :  { %v3611_v45 = vmul.f32 0.03125, %v3609_v44 }
0x19d5   :  { %v3606_v46 = vpop.xlane.xlu0 %3605 }
0x19d6   :  { %v3613_v33 = vadd.f32 1e-05, %v3611_v45  ;;  %v3610_v32 = vmul.f32 0.03125, %v3606_v46 }
0x19d8   :  { %8393 = vrsqrt.f32 %v3613_v33  ;;  %v3612_v47 = vadd.f32 1e-05, %v3610_v32 }
0x19da   :  { %8395 = vrsqrt.f32 %v3612_v47 }
0x19e5   :  { %v8394_v48 = vpop.eup %8393 }
0x19e6   :  { %v3617_v50 = vmul.f32 %v8394_v48, %v3601_v24 }
0x19e7   :  { %v8396_v53 = vpop.eup %8395 }
0x19e8   :  { %v3616_v36 = vmul.f32 %v8396_v53, %v3600_v26  ;;  %v3625_v11 = vmul.f32 %v7358_v49, %v3617_v50 }
0x19ea   :  { %v3624_v56 = vmul.f32 %v7358_v49, %v3616_v36  ;;  %v9226_v51 = vadd.f32 %v7359_v55, %v3625_v11 }
0x19ec   :  { %v9224_v38 = vadd.f32 %v7359_v55, %v3624_v56 }
0x19ee   :  { %8030 = vmatprep.mubr.msk.f32.mxu1 %vm71_vm0, %v9224_v38 }
0x19ef   :  { %8031 = vmatmul.mubr.msk.f32.vlgmr.msra.gmra.mxu1 %vm71_vm0, %v9226_v51 }
0x19f0   :  { %8035 = vmatprep.mubr.msk.f32.mxu1 %vm8504_vm1, %v8503_v6 }
0x1aaf   :  { %v8032_v52 = vpop.f32.mrf.mxu1 }
0x1ab0   :  { %v9251_v39 = vadd.f32 %v8032_v52, %v7365_v5 }
0x1ab1   :  { %v3719_v2 = vpop.f32.mrf.mxu1 }
0x1ab2   :  { %v9237_v9 = vadd.f32 %v7365_v5, %v3719_v2 }
0x1ab4   :  { %3894 = vrot.lane.b32.xlu1 %v9237_v9, %s8508_s29  ;;  %3729 = vrot.lane.b32.xlu0 %v9237_v9, %s8506_s27 }
0x1ab8   :  { %3892 = vrot.lane.b32.xlu1 %v9237_v9, %s8505_s26  ;;  %4059 = vrot.lane.b32.xlu0 %v9237_v9, %s8507_s28 }
0x1abc   :  { %4057 = vrot.lane.b32.xlu1 %v9237_v9, %s8510_s15  ;;  %4224 = vrot.lane.b32.xlu0 %v9237_v9, %s9861_s30 }
0x1ac0   :  { %4222 = vrot.lane.b32.xlu1 %v9237_v9, %s9859_s16  ;;  %4403 = vrot.lane.b32.xlu0 %v9251_v39, %s8506_s27 }
0x1ac4   :  { %4568 = vrot.lane.b32.xlu1 %v9251_v39, %s8508_s29  ;;  %4566 = vrot.lane.b32.xlu0 %v9251_v39, %s8505_s26 }
0x1ac8   :  { %4733 = vrot.lane.b32.xlu1 %v9251_v39, %s8507_s28  ;;  %4731 = vrot.lane.b32.xlu0 %v9251_v39, %s8510_s15 }
0x1acc   :  { %4898 = vrot.lane.b32.xlu1 %v9251_v39, %s9861_s30  ;;  %4896 = vrot.lane.b32.xlu0 %v9251_v39, %s9859_s16 }
0x1ad0   :  { %3816 = vrot.lane.b32.xlu1 %v9237_v9, %s9862_s22 }
0x1b26   :  { %v3895_v58 = vpop.permute.xlu1 %3894  ;;  %v3730_v59 = vpop.permute.xlu0 %3729 }
0x1b27   :  { %8034 = vmatpush3.xpose.msk.msra.mxu1 %vm156_vm2, %v3730_v59  ;;  %8044 = vmatpush3.xpose.msk.msra.mxu0 %vm156_vm2, %v3895_v58 }
0x1b28   :  { %8053 = vmatprep.subr.mxu0 %v8503_v6  ;;  %8038 = vmatprep.subr.mxu1 %v8503_v6 }
0x1b2a   :  { %v3893_v60 = vpop.permute.xlu1 %3892  ;;  %8036 = vmatmul.mubr.msk.f32.vlgmr.msra.gmra.mxu1 %vm156_vm2, %v9237_v9  ;;  %v4060_v37 = vpop.permute.xlu0 %4059 }
0x1b2b   :  { %8046 = vmatmul.mubr.msk.f32.vlgmr.msra.gmra.mxu0 %vm156_vm2, %v3893_v60  ;;  %8040 = vmatprep.mubr.msk.f32.mxu1 %vm8504_vm1, %v8503_v6 }
0x1b2c   :  { %8054 = vmatpush3.xpose.msk.msra.mxu0 %vm156_vm2, %v4060_v37  ;;  %8055 = vmatprep.mubr.msk.f32.mxu0 %vm8504_vm1, %v8503_v6 }
0x1b2d   :  { %8063 = vmatprep.subr.mxu0 %v8503_v6 }
0x1b2e   :  { %v4058_v54 = vpop.permute.xlu1 %4057  ;;  %v4225_v61 = vpop.permute.xlu0 %4224 }
0x1b2f   :  { %8056 = vmatmul.mubr.msk.f32.vlgmr.msra.gmra.mxu0 %vm156_vm2, %v4058_v54 }
0x1b30   :  { %8064 = vmatpush3.xpose.msk.msra.mxu0 %vm156_vm2, %v4225_v61  ;;  %8065 = vmatprep.mubr.msk.f32.mxu0 %vm8504_vm1, %v8503_v6 }
0x1b31   :  { %8073 = vmatprep.subr.mxu0 %v8503_v6 }
0x1b32   :  { %v4223_v62 = vpop.permute.xlu1 %4222  ;;  %v4404_v63 = vpop.permute.xlu0 %4403 }
0x1b33   :  { %8066 = vmatmul.mubr.msk.f32.vlgmr.msra.gmra.mxu0 %vm156_vm2, %v4223_v62 }
0x1b34   :  { %8074 = vmatpush3.xpose.msk.msra.mxu0 %vm156_vm2, %v4404_v63  ;;  %8075 = vmatprep.mubr.msk.f32.mxu0 %vm8504_vm1, %v8503_v6 }
0x1b35   :  { %8083 = vmatprep.subr.mxu0 %v8503_v6 }
0x1b36   :  { %v4569_v0 = vpop.permute.xlu1 %4568  ;;  %v4567_v1 = vpop.permute.xlu0 %4566 }
0x1b37   :  { %8076 = vmatmul.mubr.msk.f32.vlgmr.msra.gmra.mxu0 %vm156_vm2, %v9251_v39 }
0x1b38   :  { %8084 = vmatpush3.xpose.msk.msra.mxu0 %vm156_vm2, %v4569_v0  ;;  %8085 = vmatprep.mubr.msk.f32.mxu0 %vm8504_vm1, %v8503_v6 }
0x1b39   :  { %8093 = vmatprep.subr.mxu0 %v8503_v6 }
0x1b3a   :  { %v4734_v57 = vpop.permute.xlu1 %4733  ;;  %v4732_v3 = vpop.permute.xlu0 %4731 }
0x1b3b   :  { %8086 = vmatmul.mubr.msk.f32.vlgmr.msra.gmra.mxu0 %vm156_vm2, %v4567_v1 }
0x1b3c   :  { %8094 = vmatpush3.xpose.msk.msra.mxu0 %vm156_vm2, %v4734_v57  ;;  %8095 = vmatprep.mubr.msk.f32.mxu0 %vm8504_vm1, %v8503_v6 }
0x1b3d   :  { %8103 = vmatprep.subr.mxu0 %v8503_v6 }
0x1b3e   :  { %v4899_v41 = vpop.permute.xlu1 %4898  ;;  %v4897_v34 = vpop.permute.xlu0 %4896 }
0x1b3f   :  { %8096 = vmatmul.mubr.msk.f32.vlgmr.msra.gmra.mxu0 %vm156_vm2, %v4732_v3 }
0x1b40   :  { %8104 = vmatpush3.xpose.msk.msra.mxu0 %vm156_vm2, %v4899_v41  ;;  %8105 = vmatprep.mubr.msk.f32.mxu0 %vm8504_vm1, %v8503_v6 }
0x1b42   :  { %v3817_v4 = vpop.permute.xlu1 %3816 }
0x1b43   :  { %8039 = vmatpush3.msra.mxu1 %v3817_v4  ;;  %8106 = vmatmul.mubr.msk.f32.vlgmr.msra.gmra.mxu0 %vm156_vm2, %v4897_v34 }
0x1b44   :  { %8048 = vmatprep.subr.mxu1 %v8503_v6 }
0x1bea   :  { %v3801_v7 = vpop.f32.mrf.mxu1 }
0x1beb   :  { %v3802_v30 = vadd.f32 %v3801_v7, %v8708_v31  ;;  %v3966_v12 = vpop.f32.mrf.mxu0 }
0x1bec   :  { %v3967_v13 = vadd.f32 %v3966_v12, %v8708_v31  ;;  %v8037_v14 = vpop.f32.mrf.mxu1 }
0x1bed   :  { %v8047_v15 = vpop.f32.mrf.mxu0  ;;  %v3805_v16 = vsel %vm156_vm2, %v3802_v30, -inf }
0x1bee   :  { %3806 = vmax.xlane.f32.xlu1 %v3805_v16  ;;  %v3970_v17 = vsel %vm156_vm2, %v3967_v13, -inf }
0x1bef   :  { %3971 = vmax.xlane.f32.xlu0 %v3970_v17  ;;  %v4131_v18 = vpop.f32.mrf.mxu0 }
0x1bf0   :  { %v4132_v10 = vadd.f32 %v4131_v18, %v8708_v31 }
0x1bf1   :  { %v8057_v19 = vpop.f32.mrf.mxu0 }
0x1bf2   :  { %v4135_v20 = vsel %vm156_vm2, %v4132_v10, -inf }
0x1bf3   :  { %4136 = vmax.xlane.f32.xlu0 %v4135_v20  ;;  %v4296_v21 = vpop.f32.mrf.mxu0 }
0x1bf4   :  { %v4297_v22 = vadd.f32 %v4296_v21, %v8708_v31 }
0x1bf5   :  { %v8067_v23 = vpop.f32.mrf.mxu0 }
0x1bf6   :  { %v4300_v24 = vsel %vm156_vm2, %v4297_v22, -inf }
0x1bf7   :  { %4301 = vmax.xlane.f32.xlu1 %v4300_v24  ;;  %v4475_v25 = vpop.f32.mrf.mxu0 }
0x1bf8   :  { %v4476_v26 = vadd.f32 %v4475_v25, %v8708_v31 }
0x1bf9   :  { %v8077_v8 = vpop.f32.mrf.mxu0 }
0x1bfa   :  { %v4479_v27 = vsel %vm156_vm2, %v4476_v26, -inf }
0x1bfb   :  { %4480 = vmax.xlane.f32.xlu0 %v4479_v27  ;;  %v4640_v28 = vpop.f32.mrf.mxu0 }
0x1bfc   :  { %v4641_v29 = vadd.f32 %v4640_v28, %v8708_v31 }
0x1bfd   :  { %v8087_v35 = vpop.f32.mrf.mxu0 }
0x1bfe   :  { %v4644_v40 = vsel %vm156_vm2, %v4641_v29, -inf }
0x1bff   :  { %4645 = vmax.xlane.f32.xlu1 %v4644_v40  ;;  %v4805_v42 = vpop.f32.mrf.mxu0 }
0x1c00   :  { %v4806_v43 = vadd.f32 %v4805_v42, %v8708_v31 }
0x1c01   :  { %v8097_v44 = vpop.f32.mrf.mxu0 }
0x1c02   :  { %v4809_v45 = vsel %vm156_vm2, %v4806_v43, -inf }
0x1c03   :  { %4810 = vmax.xlane.f32.xlu0 %v4809_v45  ;;  %v4970_v46 = vpop.f32.mrf.mxu0 }
0x1c04   :  { %v4971_v32 = vadd.f32 %v4970_v46, %v8708_v31 }
0x1c05   :  { %v8107_v33 = vpop.f32.mrf.mxu0 }
0x1c06   :  { %v4974_v47 = vsel %vm156_vm2, %v4971_v32, -inf }
0x1c10   :  { %4146 = vrot.lane.b32.xlu1 %v9237_v9, %s9863_s17 }
0x1c19   :  { %3981 = vrot.lane.b32.xlu0 %v9237_v9, %s9864_s18 }
0x1c34   :  { %4975 = vmax.xlane.f32.xlu1 %v4974_v47 }
0x1c45   :  { %4311 = vrot.lane.b32.xlu1 %v9237_v9, %s9865_s19 }
0x1c77   :  { %v3807_v48 = vpop.xlane.xlu1 %3806 }
0x1c78   :  { %v3808_v49 = vsub.f32 %v3802_v30, %v3807_v48  ;;  %v3972_v50 = vpop.xlane.xlu0 %3971 }
0x1c79   :  { %v3973_v53 = vsub.f32 %v3967_v13, %v3972_v50 }
0x1c7a   :  { %v3809_v36 = vmul.f32 1.442695, %v3808_v49 }
0x1c7b   :  { %v3974_v11 = vmul.f32 1.442695, %v3973_v53 }
0x1c7c   :  { %8397 = vpow2.f32 %v3809_v36  ;;  %v4137_v55 = vpop.xlane.xlu0 %4136 }
0x1c7d   :  { %8399 = vpow2.f32 %v3974_v11  ;;  %v4138_v56 = vsub.f32 %v4132_v10, %v4137_v55 }
0x1c7f   :  { %v4139_v52 = vmul.f32 1.442695, %v4138_v56 }
0x1c80   :  { %v4302_v60 = vpop.xlane.xlu1 %4301 }
0x1c81   :  { %8401 = vpow2.f32 %v4139_v52  ;;  %v4303_v37 = vsub.f32 %v4297_v22, %v4302_v60 }
0x1c83   :  { %v4304_v63 = vmul.f32 1.442695, %v4303_v37  ;;  %v7395_v37 = vld [vmem:[%s9836_s4 + $0x58] sm:$0xff] }
0x1c84   :  { %v4481_v54 = vpop.xlane.xlu0 %4480  ;;  %8113 = vmatprep.subr.mxu0 %v7395_v37 }
0x1c85   :  { %v4482_v62 = vsub.f32 %v4476_v26, %v4481_v54  ;;  %8403 = vpow2.f32 %v4304_v63  ;;  %v7394_v54 = vld [vmem:[%s9836_s4 + $0x50] sm:$0xff]  ;;  %8114 = vmatpush3.msra.mxu0 %v7395_v37  ;;  %v7392_v63 = vld [vmem:[%s9836_s4 + $0x40] sm:$0xff]  ;;  %v8480_v37 = vld [vmem:[%s9833_s1 + $0x18] sm:$0xff] }
0x1c86   :  { %8115 = vmatprep.subr.mxu0 %v7394_v54 }
0x1c87   :  { %v4483_v57 = vmul.f32 1.442695, %v4482_v62  ;;  %8116 = vmatpush3.msra.mxu0 %v7394_v54  ;;  %v7393_v62 = vld [vmem:[%s9836_s4 + $0x48] sm:$0xff] }
0x1c88   :  { %v4646_v61 = vpop.xlane.xlu1 %4645  ;;  %8117 = vmatprep.subr.mxu0 %v7393_v62 }
0x1c89   :  { %v8398_v5 = vpop.eup %8397  ;;  %v4647_v0 = vsub.f32 %v4641_v29, %v4646_v61  ;;  %8405 = vpow2.f32 %v4483_v57  ;;  %8118 = vmatpush3.msra.mxu0 %v7393_v62 }
0x1c8a   :  { %v9333_v31 = vpop.eup %8399  ;;  %v3811_v2 = vsel %vm156_vm2, %v8398_v5, 0.0  ;;  %8119 = vmatprep.subr.mxu0 %v7392_v63 }
0x1c8b   :  { %3812 = vadd.xlane.f32.xlu0 %v3811_v2  ;;  %v3976_v9 = vsel %vm156_vm2, %v9333_v31, 0.0  ;;  %v4648_v3 = vmul.f32 1.442695, %v4647_v0  ;;  %8120 = vmatpush3.msra.mxu0 %v7392_v63 }
0x1c8c   :  { %3977 = vadd.xlane.f32.xlu1 %v3976_v9  ;;  %v4811_v1 = vpop.xlane.xlu0 %4810  ;;  %v4147_v4 = vpop.permute.xlu1 %4146 }
0x1c8d   :  { %v4812_v41 = vsub.f32 %v4806_v43, %v4811_v1  ;;  %8407 = vpow2.f32 %v4648_v3 }
0x1c8e   :  { %v9338_v58 = vpop.eup %8401 }
0x1c8f   :  { %v4141_v59 = vsel %vm156_vm2, %v9338_v58, 0.0  ;;  %v4813_v34 = vmul.f32 1.442695, %v4812_v41 }
0x1c90   :  { %4142 = vadd.xlane.f32.xlu0 %v4141_v59  ;;  %v3982_v22 = vpop.permute.xlu0 %3981 }
0x1c91   :  { %8409 = vpow2.f32 %v4813_v34 }
0x1c92   :  { %v8404_v7 = vpop.eup %8403 }
0x1c93   :  { %v4306_v15 = vsel %vm156_vm2, %v8404_v7, 0.0 }
0x1c96   :  { %v9346_v13 = vpop.eup %8405 }
0x1c97   :  { %v4485_v18 = vsel %vm156_vm2, %v9346_v13, 0.0 }
0x1c9a   :  { %v9349_v16 = vpop.eup %8407 }
0x1c9b   :  { %v4650_v17 = vsel %vm156_vm2, %v9349_v16, 0.0 }
0x1c9d   :  { %4490 = vrot.lane.b32.xlu1 %v9251_v39, %s9862_s22 }
0x1c9e   :  { %v9355_v10 = vpop.eup %8409 }
0x1c9f   :  { %v4815_v19 = vsel %vm156_vm2, %v9355_v10, 0.0 }
0x1ca6   :  { %4655 = vrot.lane.b32.xlu0 %v9251_v39, %s9864_s18 }
0x1cbd   :  { %v4976_v30 = vpop.xlane.xlu1 %4975 }
0x1cbe   :  { %v4977_v12 = vsub.f32 %v4971_v32, %v4976_v30 }
0x1cc0   :  { %v4978_v14 = vmul.f32 1.442695, %v4977_v12 }
0x1cc1   :  { %4307 = vadd.xlane.f32.xlu1 %v4306_v15  ;;  %v4312_v23 = vpop.permute.xlu1 %4311 }
0x1cc2   :  { %8411 = vpow2.f32 %v4978_v14 }
0x1cc5   :  { %4651 = vadd.xlane.f32.xlu1 %v4650_v17  ;;  %4486 = vadd.xlane.f32.xlu0 %v4485_v18 }
0x1cc9   :  { %4816 = vadd.xlane.f32.xlu0 %v4815_v19 }
0x1ccf   :  { %v9359_v20 = vpop.eup %8411 }
0x1cd0   :  { %v4980_v21 = vsel %vm156_vm2, %v9359_v20, 0.0 }
0x1cd1   :  { %4981 = vadd.xlane.f32.xlu0 %v4980_v21 }
0x1cd6   :  { %4820 = vrot.lane.b32.xlu1 %v9251_v39, %s9863_s17 }
0x1ce7   :  { %4985 = vrot.lane.b32.xlu0 %v9251_v39, %s9865_s19 }
0x1d14   :  { %v3813_v24 = vpop.xlane.xlu0 %3812 }
0x1d15   :  { %8413 = vrcp.f32 %v3813_v24  ;;  %v3978_v25 = vpop.xlane.xlu1 %3977  ;;  %v7407_v24 = vld [vmem:[%s9834_s2 + $0x78] sm:$0xff] }
0x1d16   :  { %8415 = vrcp.f32 %v3978_v25  ;;  %v7406_v25 = vld [vmem:[%s9834_s2 + $0x70] sm:$0xff] }
0x1d19   :  { %v4143_v26 = vpop.xlane.xlu0 %4142  ;;  %v4491_v40 = vpop.permute.xlu1 %4490 }
0x1d1a   :  { %8417 = vrcp.f32 %v4143_v26  ;;  %v7397_v26 = vld [vmem:[%s9837_s5 + $0x2] ss:$0 sm:$0xff] }
0x1d1d   :  { %v4656_v42 = vpop.permute.xlu0 %4655 }
0x1d22   :  { %v8414_v8 = vpop.eup %8413 }
0x1d23   :  { %v3815_v27 = vmul.f32 %v8414_v8, %v8398_v5  ;;  %v8416_v28 = vpop.eup %8415 }
0x1d24   :  { %v3980_v39 = vmul.f32 %v8416_v28, %v9333_v31 }
0x1d25   :  { %8041 = vmatmul.mubr.msk.f32.vlgmr.msra.gmra.mxu1 %vm156_vm2, %v3815_v27 }
0x1d26   :  { %8049 = vmatpush3.msra.mxu1 %v3982_v22  ;;  %8050 = vmatprep.mubr.msk.f32.mxu1 %vm8504_vm1, %v8503_v6 }
0x1d27   :  { %8058 = vmatprep.subr.mxu1 %v8503_v6  ;;  %v8418_v29 = vpop.eup %8417 }
0x1d28   :  { %v4145_v35 = vmul.f32 %v8418_v29, %v9338_v58 }
0x1d29   :  { %8051 = vmatmul.mubr.msk.f32.vlgmr.msra.gmra.mxu1 %vm156_vm2, %v3980_v39 }
0x1d2a   :  { %8059 = vmatpush3.msra.mxu1 %v4147_v4  ;;  %8060 = vmatprep.mubr.msk.f32.mxu1 %vm8504_vm1, %v8503_v6 }
0x1d2b   :  { %8068 = vmatprep.subr.mxu1 %v8503_v6 }
0x1d2d   :  { %8061 = vmatmul.mubr.msk.f32.vlgmr.msra.gmra.mxu1 %vm156_vm2, %v4145_v35 }
0x1d2e   :  { %8069 = vmatpush3.msra.mxu1 %v4312_v23  ;;  %8070 = vmatprep.mubr.msk.f32.mxu1 %vm8504_vm1, %v8503_v6  ;;  %v8477_v23 = vld [vmem:[%s9833_s1] sm:$0xff] }
0x1d2f   :  { %8078 = vmatprep.subr.mxu1 %v8503_v6 }
0x1d4a   :  { %v4308_v43 = vpop.xlane.xlu1 %4307 }
0x1d4b   :  { %8419 = vrcp.f32 %v4308_v43  ;;  %v7405_v43 = vld [vmem:[%s9834_s2 + $0x68] sm:$0xff] }
0x1d4e   :  { %v4487_v44 = vpop.xlane.xlu0 %4486  ;;  %v4652_v45 = vpop.xlane.xlu1 %4651 }
0x1d4f   :  { %8421 = vrcp.f32 %v4487_v44 }
0x1d50   :  { %8423 = vrcp.f32 %v4652_v45 }
0x1d52   :  { %v4817_v46 = vpop.xlane.xlu0 %4816  ;;  %v4821_v11 = vpop.permute.xlu1 %4820 }
0x1d53   :  { %8425 = vrcp.f32 %v4817_v46 }
0x1d58   :  { %v8420_v33 = vpop.eup %8419 }
0x1d59   :  { %v4310_v32 = vmul.f32 %v8420_v33, %v8404_v7 }
0x1d5a   :  { %v4982_v47 = vpop.xlane.xlu0 %4981 }
0x1d5b   :  { %8427 = vrcp.f32 %v4982_v47  ;;  %8071 = vmatmul.mubr.msk.f32.vlgmr.msra.gmra.mxu1 %vm156_vm2, %v4310_v32 }
0x1d5c   :  { %8079 = vmatpush3.msra.mxu1 %v4491_v40  ;;  %8080 = vmatprep.mubr.msk.f32.mxu1 %vm8504_vm1, %v8503_v6  ;;  %v8422_v48 = vpop.eup %8421 }
0x1d5d   :  { %8088 = vmatprep.subr.mxu1 %v8503_v6  ;;  %v4489_v49 = vmul.f32 %v8422_v48, %v9346_v13  ;;  %v8424_v50 = vpop.eup %8423 }
0x1d5e   :  { %v4654_v53 = vmul.f32 %v8424_v50, %v9349_v16  ;;  %v4986_v52 = vpop.permute.xlu0 %4985 }
0x1d5f   :  { %8081 = vmatmul.mubr.msk.f32.vlgmr.msra.gmra.mxu1 %vm156_vm2, %v4489_v49 }
0x1d60   :  { %8089 = vmatpush3.msra.mxu1 %v4656_v42  ;;  %8090 = vmatprep.mubr.msk.f32.mxu1 %vm8504_vm1, %v8503_v6  ;;  %v8426_v36 = vpop.eup %8425 }
0x1d61   :  { %8098 = vmatprep.subr.mxu1 %v8503_v6  ;;  %v4819_v55 = vmul.f32 %v8426_v36, %v9355_v10 }
0x1d63   :  { %8091 = vmatmul.mubr.msk.f32.vlgmr.msra.gmra.mxu1 %vm156_vm2, %v4654_v53 }
0x1d64   :  { %8099 = vmatpush3.msra.mxu1 %v4821_v11  ;;  %8100 = vmatprep.mubr.msk.f32.mxu1 %vm8504_vm1, %v8503_v6  ;;  %v9460_v11 = vld [vmem:[%s9835_s3 + $0x3] ss:$0 sm:$0xff] }
0x1d65   :  { %8108 = vmatprep.subr.mxu1 %v8503_v6 }
0x1d67   :  { %8101 = vmatmul.mubr.msk.f32.vlgmr.msra.gmra.mxu1 %vm156_vm2, %v4819_v55 }
0x1d68   :  { %v8428_v56 = vpop.eup %8427  ;;  %8109 = vmatpush3.msra.mxu1 %v4986_v52  ;;  %8110 = vmatprep.mubr.msk.f32.mxu1 %vm8504_vm1, %v8503_v6 }
0x1d69   :  { %v4984_v5 = vmul.f32 %v8428_v56, %v9359_v20  ;;  %8124 = vmatprep.subr.mxu1 %v7407_v24 }
0x1d6b   :  { %8111 = vmatmul.mubr.msk.f32.vlgmr.msra.gmra.mxu1 %vm156_vm2, %v4984_v5 }
0x1d6c   :  { %8125 = vmatpush3.msra.mxu1 %v7407_v24 }
0x1d6d   :  { %8126 = vmatprep.subr.mxu1 %v7406_v25 }
0x1d6e   :  { %8127 = vmatpush3.msra.mxu1 %v7406_v25 }
0x1d6f   :  { %8128 = vmatprep.subr.mxu1 %v7405_v43 }
0x1d70   :  { %8129 = vmatpush3.msra.mxu1 %v7405_v43 }
0x1de5   :  { %v3888_v31 = vpop.f32.mrf.mxu1 }
0x1de7   :  { %v8042_v2 = vpop.f32.mrf.mxu1 }
0x1de9   :  { %v4053_v9 = vpop.f32.mrf.mxu1 }
0x1dea   :  { %4388 = vrot.lane.b32.xlu1 %v4053_v9, %s8517_s21 }
0x1deb   :  { %v8052_v58 = vpop.f32.mrf.mxu1 }
0x1ded   :  { %v4218_v59 = vpop.f32.mrf.mxu1 }
0x1dee   :  { %4392 = vrot.lane.b32.xlu0 %v4218_v59, %s9866_s20  ;;  %v8478_v59 = vld [vmem:[%s9833_s1 + $0x8] sm:$0xff] }
0x1def   :  { %v8062_v60 = vpop.f32.mrf.mxu1 }
0x1df0   :  { %v8479_v60 = vld [vmem:[%s9833_s1 + $0x10] sm:$0xff]  ;;  %s9867_s1 = smov 104  }
0x1e1b   :  { %v4383_v61 = vpop.f32.mrf.mxu1 }
0x1e1c   :  { %4396 = vrot.lane.b32.xlu0 %v4383_v61, %s8519_s23  ;;  %v7402_v61 = vld [vmem:[%s9842_s10 + $0x3] ss:$0 sm:$0xff] }
0x1e1d   :  { %v8072_v0 = vpop.f32.mrf.mxu1 }
0x1e1f   :  { %v4562_v1 = vpop.f32.mrf.mxu1 }
0x1e21   :  { %v8082_v57 = vpop.f32.mrf.mxu1 }
0x1e22   :  { %v7403_v57 = vld [vmem:[%s9843_s11 + $0x3] ss:$0 sm:$0xff] }
0x1e23   :  { %v4727_v3 = vpop.f32.mrf.mxu1 }
0x1e24   :  { %5062 = vrot.lane.b32.xlu1 %v4727_v3, %s8517_s21 }
0x1e25   :  { %v8092_v41 = vpop.f32.mrf.mxu1 }
0x1e27   :  { %v4892_v34 = vpop.f32.mrf.mxu1 }
0x1e28   :  { %5066 = vrot.lane.b32.xlu1 %v4892_v34, %s9866_s20 }
0x1e29   :  { %v8102_v4 = vpop.f32.mrf.mxu1 }
0x1e2b   :  { %v5057_v7 = vpop.f32.mrf.mxu1 }
0x1e2c   :  { %5070 = vrot.lane.b32.xlu0 %v5057_v7, %s8519_s23 }
0x1e2d   :  { %v8112_v30 = vpop.f32.mrf.mxu1 }
0x1e5c   :  { %v4389_v12 = vpop.permute.xlu1 %4388 }
0x1e5d   :  { %v4399_v14 = vsel %vm156_vm2, %v3888_v31, %v4389_v12 }
0x1e60   :  { %v4393_v13 = vpop.permute.xlu0 %4392 }
0x1e61   :  { %v4400_v15 = vsel %vm826_vm4, %v4399_v14, %v4393_v13 }
0x1e8e   :  { %v4397_v16 = vpop.permute.xlu0 %4396 }
0x1e8f   :  { %v4401_v17 = vsel %vm828_vm5, %v4400_v15, %v4397_v16 }
0x1e90   :  { %8121 = vmatprep.mubr.msk.f32.mxu0 %vm71_vm0, %v4401_v17 }
0x1e96   :  { %v5063_v18 = vpop.permute.xlu1 %5062 }
0x1e97   :  { %v5073_v19 = vsel %vm156_vm2, %v4562_v1, %v5063_v18 }
0x1e9a   :  { %v5067_v10 = vpop.permute.xlu1 %5066 }
0x1e9b   :  { %v5074_v20 = vsel %vm826_vm4, %v5073_v19, %v5067_v10 }
0x1e9e   :  { %v5071_v21 = vpop.permute.xlu0 %5070 }
0x1e9f   :  { %v5075_v22 = vsel %vm828_vm5, %v5074_v20, %v5071_v21 }
0x1ea0   :  { %8122 = vmatmul.mubr.msk.f32.vlgmr.msra.gmra.mxu0 %vm71_vm0, %v5075_v22 }
0x1ea1   :  { %8143 = vmatprep.mubr.msk.f32.mxu0 %vm71_vm0, %v8477_v23 }
0x1f60   :  { %v8123_v8 = vpop.f32.mrf.mxu0 }
0x1f61   :  { %v5167_v27 = vadd.f32 %v8123_v8, %v7397_v26 }
0x1f62   :  { %v5161_v28 = vpop.f32.mrf.mxu0 }
0x1f63   :  { %v5171_v39 = vadd.f32 %v5167_v27, %v9226_v51  ;;  %v5162_v29 = vadd.f32 %v7397_v26, %v5161_v28 }
0x1f65   :  { %v5170_v35 = vadd.f32 %v5162_v29, %v9224_v38  ;;  %v5179_v40 = vsel %vm71_vm0, %v5171_v39, 0.0  ;;  %v7404_v38 = vld [vmem:[%s9834_s2 + $0x60] sm:$0xff] }
0x1f66   :  { %5180 = vadd.xlane.f32.xlu0 %v5179_v40  ;;  %8130 = vmatprep.subr.mxu1 %v7404_v38 }
0x1f67   :  { %v5176_v42 = vsel %vm71_vm0, %v5170_v35, 0.0  ;;  %8131 = vmatpush3.msra.mxu1 %v7404_v38 }
0x1f68   :  { %5177 = vadd.xlane.f32.xlu1 %v5176_v42  ;;  %8149 = vmatprep.subr.mxu1 %v8503_v6 }
0x1f79   :  { %5320 = vrot.lane.b32.xlu1 %v7406_v25, %s8506_s27 }
0x1f7c   :  { %5322 = vrot.lane.b32.xlu0 %v7407_v24, %s8506_s27 }
0x1fef   :  { %v5181_v51 = vpop.xlane.xlu0 %5180 }
0x1ff0   :  { %v5183_v44 = vmul.f32 0.03125, %v5181_v51 }
0x1ff1   :  { %v5178_v45 = vpop.xlane.xlu1 %5177 }
0x1ff2   :  { %v5185_v46 = vsub.f32 %v5171_v39, %v5183_v44  ;;  %v5182_v33 = vmul.f32 0.03125, %v5178_v45 }
0x1ff3   :  { %v5323_v32 = vpop.permute.xlu0 %5322 }
0x1ff4   :  { %v5184_v47 = vsub.f32 %v5170_v35, %v5182_v33  ;;  %v5187_v48 = vmul.f32 %v5185_v46, %v5185_v46  ;;  %8135 = vmatprep.subr.mxu0 %v5323_v32 }
0x1ff5   :  { %8136 = vmatpush3.msra.mxu0 %v5323_v32  ;;  %v5321_v49 = vpop.permute.xlu1 %5320 }
0x1ff6   :  { %v5191_v50 = vsel %vm71_vm0, %v5187_v48, 0.0  ;;  %v5186_v53 = vmul.f32 %v5184_v47, %v5184_v47  ;;  %8137 = vmatprep.subr.mxu0 %v5321_v49 }
0x1ff7   :  { %5192 = vadd.xlane.f32.xlu1 %v5191_v50  ;;  %8138 = vmatpush3.msra.mxu0 %v5321_v49 }
0x1ff8   :  { %v5188_v36 = vsel %vm71_vm0, %v5186_v53, 0.0 }
0x1ff9   :  { %5189 = vadd.xlane.f32.xlu0 %v5188_v36 }
0x2008   :  { %5318 = vrot.lane.b32.xlu1 %v7405_v43, %s8506_s27 }
0x200c   :  { %5328 = vrot.lane.b32.xlu1 %v9460_v11, %s8506_s27 }
0x200f   :  { %5316 = vrot.lane.b32.xlu0 %v7404_v38, %s8506_s27 }
0x2080   :  { %v5193_v55 = vpop.xlane.xlu1 %5192 }
0x2081   :  { %v5195_v56 = vmul.f32 0.03125, %v5193_v55 }
0x2082   :  { %v5190_v52 = vpop.xlane.xlu0 %5189 }
0x2083   :  { %v5197_v5 = vadd.f32 1e-05, %v5195_v56  ;;  %v5194_v31 = vmul.f32 0.03125, %v5190_v52 }
0x2084   :  { %v5319_v2 = vpop.permute.xlu1 %5318 }
0x2085   :  { %8429 = vrsqrt.f32 %v5197_v5  ;;  %v5196_v9 = vadd.f32 1e-05, %v5194_v31  ;;  %8139 = vmatprep.subr.mxu0 %v5319_v2 }
0x2086   :  { %v5317_v58 = vpop.permute.xlu0 %5316  ;;  %8140 = vmatpush3.msra.mxu0 %v5319_v2 }
0x2087   :  { %8431 = vrsqrt.f32 %v5196_v9  ;;  %8141 = vmatprep.subr.mxu0 %v5317_v58 }
0x2088   :  { %8142 = vmatpush3.msra.mxu0 %v5317_v58  ;;  %v9495_v4 = vpop.permute.xlu1 %5328 }
0x2089   :  { %8144 = vmatmul.mubr.msk.f32.vlgmr.msra.gmra.mxu0 %vm71_vm0, %v8478_v59  ;;  %8163 = vmatprep.subr.mxu0 %v8503_v6 }
0x208a   :  { %8146 = vmatprep.mubr.msk.f32.mxu0 %vm71_vm0, %v8479_v60 }
0x208d   :  { %8147 = vmatmul.mubr.msk.f32.gmra.mxu0 %vm71_vm0, %v8480_v37 }
0x208e   :  { %8167 = vmatprep.mubr.msk.f32.mxu0 %vm8504_vm1, %v8503_v6 }
0x2092   :  { %v8430_v54 = vpop.eup %8429 }
0x2093   :  { %v5201_v62 = vmul.f32 %v8430_v54, %v5185_v46 }
0x2094   :  { %v8432_v63 = vpop.eup %8431 }
0x2095   :  { %v5200_v0 = vmul.f32 %v8432_v63, %v5184_v47  ;;  %v5209_v1 = vmul.f32 %v7402_v61, %v5201_v62 }
0x2097   :  { %v5208_v3 = vmul.f32 %v7402_v61, %v5200_v0  ;;  %v9487_v34 = vadd.f32 %v7403_v57, %v5209_v1 }
0x2099   :  { %v9485_v41 = vadd.f32 %v7403_v57, %v5208_v3 }
0x209b   :  { %8132 = vmatprep.mubr.msk.f32.mxu1 %vm71_vm0, %v9485_v41 }
0x209c   :  { %8133 = vmatmul.mubr.msk.f32.vlgmr.msra.gmra.mxu1 %vm71_vm0, %v9487_v34 }
0x209d   :  { %8153 = vmatprep.mubr.msk.f32.mxu1 %vm8504_vm1, %v8503_v6 }
0x2149   :  { %v8145_v7 = vpop.f32.mrf.mxu0 }
0x214a   :  { %v9498_v30 = vadd.f32 %v8145_v7, %v9495_v4 }
0x214b   :  { %v5397_v12 = vpop.f32.mrf.mxu0 }
0x214c   :  { %v9501_v13 = vadd.f32 %v5397_v12, %v9495_v4  ;;  %5589 = vrot.lane.b32.xlu0 %v9498_v30, %s8505_s26  ;;  %8150 = vmatpush3.xpose.msk.msra.mxu1 %vm156_vm2, %v9498_v30 }
0x214d   :  { %8151 = vmatprep.subr.mxu1 %v8503_v6  ;;  %v9545_v25 = vpop.f32.mrf.mxu0 }
0x214e   :  { %5587 = vrot.lane.b32.xlu1 %v9501_v13, %s8505_s26 }
0x214f   :  { %v9547_v26 = vpop.f32.mrf.mxu0 }
0x2150   :  { %8152 = vmatpush3.xpose.msk.msra.mxu1 %vm156_vm2, %v9501_v13 }
0x2151   :  { %8156 = vmatprep.subr.mxu1 %v8503_v6 }
0x2152   :  { %5761 = vrot.lane.b32.xlu1 %v9498_v30, %s8510_s15 }
0x215c   :  { %v9515_v14 = vpop.f32.mrf.mxu1 }
0x215e   :  { %v5303_v15 = vpop.f32.mrf.mxu1 }
0x215f   :  { %v9518_v16 = vadd.f32 %v9460_v11, %v5303_v15 }
0x2161   :  { %5585 = vrot.lane.b32.xlu0 %v9518_v16, %s8505_s26  ;;  %5757 = vrot.lane.b32.xlu1 %v9518_v16, %s8510_s15 }
0x2162   :  { %8154 = vmatmul.mubr.msk.f32.vlgmr.msra.gmra.mxu1 %vm156_vm2, %v9518_v16 }
0x2163   :  { %8160 = vmatprep.mubr.msk.f32.mxu1 %vm8504_vm1, %v8503_v6 }
0x2165   :  { %5759 = vrot.lane.b32.xlu0 %v9501_v13, %s8510_s15 }
0x21be   :  { %v5590_v17 = vpop.permute.xlu0 %5589 }
0x21bf   :  { %8164 = vmatpush3.xpose.msk.msra.mxu0 %vm156_vm2, %v5590_v17 }
0x21c0   :  { %8165 = vmatprep.subr.mxu0 %v8503_v6  ;;  %v5588_v18 = vpop.permute.xlu1 %5587 }
0x21c3   :  { %8166 = vmatpush3.xpose.msk.msra.mxu0 %vm156_vm2, %v5588_v18 }
0x21c4   :  { %8177 = vmatprep.subr.mxu0 %v8503_v6  ;;  %v5762_v19 = vpop.permute.xlu1 %5761 }
0x21d3   :  { %v5586_v10 = vpop.permute.xlu0 %5585  ;;  %v5758_v21 = vpop.permute.xlu1 %5757 }
0x21d4   :  { %8168 = vmatmul.mubr.msk.f32.vlgmr.msra.gmra.mxu0 %vm156_vm2, %v5586_v10 }
0x21d5   :  { %8178 = vmatpush3.xpose.msk.msra.mxu0 %vm156_vm2, %v5762_v19  ;;  %8181 = vmatprep.mubr.msk.f32.mxu0 %vm8504_vm1, %v8503_v6 }
0x21d6   :  { %8179 = vmatprep.subr.mxu0 %v8503_v6 }
0x21d7   :  { %v5760_v20 = vpop.permute.xlu0 %5759 }
0x21d9   :  { %8180 = vmatpush3.xpose.msk.msra.mxu0 %vm156_vm2, %v5760_v20 }
0x21da   :  { %8198 = vmatprep.subr.mxu0 %v8503_v6 }
0x21dc   :  { %8182 = vmatmul.mubr.msk.f32.vlgmr.msra.gmra.mxu0 %vm156_vm2, %v5758_v21 }
0x21dd   :  { %8202 = vmatprep.mubr.msk.f32.mxu0 %vm8504_vm1, %v8503_v6 }
0x2222   :  { %v5491_v22 = vpop.f32.mrf.mxu1 }
0x2223   :  { %v5495_v23 = vsel %vm826_vm4, %v5491_v22, -inf }
0x2224   :  { %5496 = vmax.xlane.f32.xlu0 %v5495_v23  ;;  %v8155_v24 = vpop.f32.mrf.mxu1 }
0x2294   :  { %v5663_v8 = vpop.f32.mrf.mxu0 }
0x2295   :  { %v5667_v27 = vsel %vm826_vm4, %v5663_v8, -inf }
0x2296   :  { %5668 = vmax.xlane.f32.xlu1 %v5667_v27  ;;  %v8169_v28 = vpop.f32.mrf.mxu0 }
0x229c   :  { %v5835_v39 = vpop.f32.mrf.mxu0 }
0x229d   :  { %v5839_v29 = vsel %vm826_vm4, %v5835_v39, -inf }
0x229e   :  { %v8183_v35 = vpop.f32.mrf.mxu0  ;;  %5840 = vmax.xlane.f32.xlu0 %v5839_v29 }
0x22a7   :  { %5508 = vrot.lane.b32.xlu1 %v9498_v30, %s8506_s27 }
0x22ab   :  { %5680 = vrot.lane.b32.xlu1 %v9498_v30, %s8508_s29 }
0x22ad   :  { %v5497_v40 = vpop.xlane.xlu0 %5496 }
0x22ae   :  { %v5498_v42 = vsub.f32 %v5491_v22, %v5497_v40 }
0x22af   :  { %5678 = vrot.lane.b32.xlu1 %v9501_v13, %s8508_s29 }
0x22b0   :  { %v5499_v43 = vmul.f32 1.442695, %v5498_v42 }
0x22b2   :  { %8433 = vpow2.f32 %v5499_v43 }
0x22b3   :  { %5850 = vrot.lane.b32.xlu1 %v9501_v13, %s8507_s28 }
0x22b4   :  { %5506 = vrot.lane.b32.xlu0 %v9501_v13, %s8506_s27 }
0x22bf   :  { %v8434_v38 = vpop.eup %8433 }
0x22c0   :  { %v5501_v51 = vsel %vm826_vm4, %v8434_v38, 0.0 }
0x22d3   :  { %5502 = vadd.xlane.f32.xlu0 %v5501_v51 }
0x22e9   :  { %5852 = vrot.lane.b32.xlu0 %v9498_v30, %s8507_s28 }
0x231f   :  { %v5669_v44 = vpop.xlane.xlu1 %5668 }
0x2320   :  { %v5670_v45 = vsub.f32 %v5663_v8, %v5669_v44 }
0x2322   :  { %v5671_v46 = vmul.f32 1.442695, %v5670_v45 }
0x2323   :  { %v5509_v33 = vpop.permute.xlu1 %5508 }
0x2324   :  { %8435 = vpow2.f32 %v5671_v46  ;;  %8157 = vmatpush3.msra.mxu1 %v5509_v33 }
0x2325   :  { %8158 = vmatprep.subr.mxu1 %v8503_v6 }
0x2327   :  { %v5841_v32 = vpop.xlane.xlu0 %5840  ;;  %v5681_v52 = vpop.permute.xlu1 %5680 }
0x2328   :  { %v5842_v47 = vsub.f32 %v5835_v39, %v5841_v32  ;;  %v9610_v39 = vadd.f32 %v9545_v25, %v9495_v4  ;;  %v9626_v25 = vadd.f32 %v9515_v14, %v9460_v11 }
0x232a   :  { %v5843_v48 = vmul.f32 1.442695, %v5842_v47 }
0x232b   :  { %v5507_v49 = vpop.permute.xlu0 %5506  ;;  %v5679_v2 = vpop.permute.xlu1 %5678 }
0x232c   :  { %8437 = vpow2.f32 %v5843_v48  ;;  %8159 = vmatpush3.msra.mxu1 %v5507_v49 }
0x232d   :  { %8170 = vmatprep.subr.mxu1 %v8503_v6 }
0x232f   :  { %v5851_v9 = vpop.permute.xlu1 %5850 }
0x2331   :  { %v8436_v50 = vpop.eup %8435 }
0x2332   :  { %v5673_v53 = vsel %vm826_vm4, %v8436_v50, 0.0 }
0x2333   :  { %5674 = vadd.xlane.f32.xlu1 %v5673_v53 }
0x2339   :  { %v8438_v36 = vpop.eup %8437 }
0x233a   :  { %v5845_v55 = vsel %vm826_vm4, %v8438_v36, 0.0 }
0x233b   :  { %5846 = vadd.xlane.f32.xlu0 %v5845_v55 }
0x2344   :  { %5931 = vrot.lane.b32.xlu1 %v9501_v13, %s9867_s1 }
0x2351   :  { %5933 = vrot.lane.b32.xlu0 %v9498_v30, %s9867_s1 }
0x2355   :  { %5929 = vrot.lane.b32.xlu0 %v9518_v16, %s9867_s1 }
0x235c   :  { %v5503_v56 = vpop.xlane.xlu0 %5502 }
0x235d   :  { %8439 = vrcp.f32 %v5503_v56 }
0x2360   :  { %v5853_v59 = vpop.permute.xlu0 %5852 }
0x236a   :  { %v8440_v5 = vpop.eup %8439 }
0x236b   :  { %v5505_v31 = vmul.f32 %v8440_v5, %v8434_v38 }
0x236d   :  { %8161 = vmatmul.mubr.msk.f32.vlgmr.msra.gmra.mxu1 %vm826_vm4, %v5505_v31 }
0x236e   :  { %8171 = vmatpush3.msra.mxu1 %v5681_v52  ;;  %8174 = vmatprep.mubr.msk.f32.mxu1 %vm8504_vm1, %v8503_v6 }
0x236f   :  { %8172 = vmatprep.subr.mxu1 %v8503_v6 }
0x2370   :  { %8173 = vmatpush3.msra.mxu1 %v5679_v2 }
0x2371   :  { %8184 = vmatprep.subr.mxu1 %v8503_v6 }
0x23bc   :  { %v5675_v58 = vpop.xlane.xlu1 %5674 }
0x23bd   :  { %8441 = vrcp.f32 %v5675_v58 }
0x23c0   :  { %v5932_v0 = vpop.permute.xlu1 %5931 }
0x23c4   :  { %v5847_v60 = vpop.xlane.xlu0 %5846 }
0x23c5   :  { %8443 = vrcp.f32 %v5847_v60 }
0x23c8   :  { %v5934_v63 = vpop.permute.xlu0 %5933 }
0x23ca   :  { %v8442_v37 = vpop.eup %8441 }
0x23cb   :  { %v5677_v54 = vmul.f32 %v8442_v37, %v8436_v50 }
0x23cc   :  { %v5930_v1 = vpop.permute.xlu0 %5929 }
0x23cd   :  { %8175 = vmatmul.mubr.msk.f32.vlgmr.msra.gmra.mxu1 %vm826_vm4, %v5677_v54 }
0x23ce   :  { %8185 = vmatpush3.msra.mxu1 %v5853_v59  ;;  %8188 = vmatprep.mubr.msk.f32.mxu1 %vm8504_vm1, %v8503_v6 }
0x23cf   :  { %8186 = vmatprep.subr.mxu1 %v8503_v6 }
0x23d0   :  { %8187 = vmatpush3.msra.mxu1 %v5851_v9 }
0x23d1   :  { %8191 = vmatprep.subr.mxu1 %v8503_v6 }
0x23d2   :  { %v8444_v61 = vpop.eup %8443 }
0x23d3   :  { %v5849_v62 = vmul.f32 %v8444_v61, %v8438_v36 }
0x23d5   :  { %8189 = vmatmul.mubr.msk.f32.vlgmr.msra.gmra.mxu1 %vm826_vm4, %v5849_v62 }
0x23d6   :  { %8192 = vmatpush3.xpose.msk.msra.mxu1 %vm156_vm2, %v5934_v63  ;;  %8195 = vmatprep.mubr.msk.f32.mxu1 %vm8504_vm1, %v8503_v6 }
0x23d7   :  { %8193 = vmatprep.subr.mxu1 %v8503_v6 }
0x23da   :  { %8194 = vmatpush3.xpose.msk.msra.mxu1 %vm156_vm2, %v5932_v0 }
0x23db   :  { %8212 = vmatprep.subr.mxu1 %v8503_v6 }
0x23dd   :  { %8196 = vmatmul.mubr.msk.f32.vlgmr.msra.gmra.mxu1 %vm156_vm2, %v5930_v1 }
0x23de   :  { %8216 = vmatprep.mubr.msk.f32.mxu1 %vm8504_vm1, %v8503_v6 }
0x242d   :  { %v9594_v57 = vpop.f32.mrf.mxu1 }
0x242f   :  { %v8162_v3 = vpop.f32.mrf.mxu1 }
0x248d   :  { %v9596_v7 = vpop.f32.mrf.mxu1 }
0x248f   :  { %v8176_v12 = vpop.f32.mrf.mxu1 }
0x2495   :  { %v9598_v15 = vpop.f32.mrf.mxu1 }
0x2497   :  { %v8190_v16 = vpop.f32.mrf.mxu1 }
0x249d   :  { %v6007_v17 = vpop.f32.mrf.mxu1 }
0x249e   :  { %v6011_v18 = vsel %vm826_vm4, %v6007_v17, -inf }
0x249f   :  { %6012 = vmax.xlane.f32.xlu1 %v6011_v18  ;;  %v8197_v10 = vpop.f32.mrf.mxu1 }
0x24b0   :  { %6022 = vrot.lane.b32.xlu1 %v9501_v13, %s9861_s30 }
0x2528   :  { %v6013_v19 = vpop.xlane.xlu1 %6012 }
0x2529   :  { %v6014_v20 = vsub.f32 %v6007_v17, %v6013_v19 }
0x252b   :  { %v6015_v21 = vmul.f32 1.442695, %v6014_v20 }
0x252c   :  { %v6023_v27 = vpop.permute.xlu1 %6022 }
0x252d   :  { %8445 = vpow2.f32 %v6015_v21 }
0x253a   :  { %v8446_v22 = vpop.eup %8445 }
0x253b   :  { %v6017_v23 = vsel %vm826_vm4, %v8446_v22, 0.0 }
0x253c   :  { %6018 = vadd.xlane.f32.xlu0 %v6017_v23 }
0x2552   :  { %6024 = vrot.lane.b32.xlu0 %v9498_v30, %s9861_s30  ;;  %v9620_v30 = vadd.f32 %v9547_v26, %v9495_v4 }
0x25c5   :  { %v6019_v24 = vpop.xlane.xlu0 %6018 }
0x25c6   :  { %8447 = vrcp.f32 %v6019_v24 }
0x25c9   :  { %v6025_v8 = vpop.permute.xlu0 %6024 }
0x25ca   :  { %8199 = vmatpush3.msra.mxu0 %v6025_v8 }
0x25cb   :  { %8200 = vmatprep.subr.mxu0 %v8503_v6 }
0x25cc   :  { %8201 = vmatpush3.msra.mxu0 %v6023_v27 }
0x25cd   :  { %8205 = vmatprep.subr.mxu0 %v8503_v6 }
0x25d3   :  { %v8448_v13 = vpop.eup %8447 }
0x25d4   :  { %v6021_v28 = vmul.f32 %v8448_v13, %v8446_v22 }
0x25d6   :  { %8203 = vmatmul.mubr.msk.f32.vlgmr.msra.gmra.mxu0 %vm826_vm4, %v6021_v28 }
0x25d7   :  { %8206 = vmatpush3.xpose.msk.msra.mxu0 %vm156_vm2, %v9610_v39  ;;  %8209 = vmatprep.mubr.msk.f32.mxu0 %vm8504_vm1, %v8503_v6 }
0x25d8   :  { %8207 = vmatprep.subr.mxu0 %v8503_v6 }
0x25db   :  { %8208 = vmatpush3.xpose.msk.msra.mxu0 %vm156_vm2, %v9620_v30 }
0x25dc   :  { %8226 = vmatprep.subr.mxu0 %v8503_v6 }
0x25de   :  { %8210 = vmatmul.mubr.msk.f32.vlgmr.msra.gmra.mxu0 %vm156_vm2, %v9626_v25 }
0x25df   :  { %8230 = vmatprep.mubr.msk.f32.mxu0 %vm8504_vm1, %v8503_v6 }
0x2696   :  { %v9633_v29 = vpop.f32.mrf.mxu0 }
0x2698   :  { %v8204_v35 = vpop.f32.mrf.mxu0 }
0x269e   :  { %v6191_v4 = vpop.f32.mrf.mxu0 }
0x269f   :  { %v6195_v26 = vsel %vm826_vm4, %v6191_v4, -inf }
0x26a0   :  { %6196 = vmax.xlane.f32.xlu1 %v6195_v26  ;;  %v8211_v40 = vpop.f32.mrf.mxu0 }
0x26b1   :  { %6206 = vrot.lane.b32.xlu1 %v9620_v30, %s8506_s27 }
0x26b5   :  { %6289 = vrot.lane.b32.xlu1 %v9610_v39, %s8505_s26 }
0x26b9   :  { %6285 = vrot.lane.b32.xlu1 %v9626_v25, %s8505_s26 }
0x26bd   :  { %6378 = vrot.lane.b32.xlu1 %v9620_v30, %s8508_s29 }
0x2729   :  { %v6197_v11 = vpop.xlane.xlu1 %6196 }
0x272a   :  { %v6198_v14 = vsub.f32 %v6191_v4, %v6197_v11 }
0x272c   :  { %v6199_v42 = vmul.f32 1.442695, %v6198_v14 }
0x272d   :  { %v6207_v45 = vpop.permute.xlu1 %6206 }
0x272e   :  { %8449 = vpow2.f32 %v6199_v42 }
0x2731   :  { %v6290_v32 = vpop.permute.xlu1 %6289 }
0x2735   :  { %v6286_v48 = vpop.permute.xlu1 %6285 }
0x2739   :  { %v6379_v2 = vpop.permute.xlu1 %6378 }
0x273b   :  { %v8450_v43 = vpop.eup %8449 }
0x273c   :  { %v6201_v38 = vsel %vm826_vm4, %v8450_v43, 0.0 }
0x273d   :  { %6202 = vadd.xlane.f32.xlu0 %v6201_v38 }
0x2753   :  { %6208 = vrot.lane.b32.xlu0 %v9610_v39, %s8506_s27 }
0x2757   :  { %6287 = vrot.lane.b32.xlu0 %v9620_v30, %s8505_s26 }
0x27c6   :  { %v6203_v51 = vpop.xlane.xlu0 %6202 }
0x27c7   :  { %8451 = vrcp.f32 %v6203_v51 }
0x27ca   :  { %v6209_v44 = vpop.permute.xlu0 %6208 }
0x27cb   :  { %8213 = vmatpush3.msra.mxu1 %v6209_v44 }
0x27cc   :  { %8214 = vmatprep.subr.mxu1 %v8503_v6 }
0x27cd   :  { %8215 = vmatpush3.msra.mxu1 %v6207_v45 }
0x27ce   :  { %8219 = vmatprep.subr.mxu1 %v8503_v6  ;;  %v6288_v47 = vpop.permute.xlu0 %6287 }
0x27d4   :  { %v8452_v46 = vpop.eup %8451 }
0x27d5   :  { %v6205_v33 = vmul.f32 %v8452_v46, %v8450_v43 }
0x27d7   :  { %8217 = vmatmul.mubr.msk.f32.vlgmr.msra.gmra.mxu1 %vm826_vm4, %v6205_v33 }
0x27d8   :  { %8220 = vmatpush3.xpose.msk.msra.mxu1 %vm156_vm2, %v6290_v32  ;;  %8223 = vmatprep.mubr.msk.f32.mxu1 %vm8504_vm1, %v8503_v6 }
0x27d9   :  { %8221 = vmatprep.subr.mxu1 %v8503_v6 }
0x27dc   :  { %8222 = vmatpush3.xpose.msk.msra.mxu1 %vm156_vm2, %v6288_v47  ;;  %v7448_v47 = vld [vmem:[%s9836_s4 + $0x60] sm:$0xff] }
0x27dd   :  { %8240 = vmatprep.subr.mxu1 %v8503_v6 }
0x27df   :  { %8224 = vmatmul.mubr.msk.f32.vlgmr.msra.gmra.mxu1 %vm156_vm2, %v6286_v48 }
0x27e0   :  { %8244 = vmatprep.mubr.msk.f32.mxu1 %vm8504_vm1, %v8503_v6 }
0x2897   :  { %v9661_v49 = vpop.f32.mrf.mxu1 }
0x2899   :  { %v8218_v50 = vpop.f32.mrf.mxu1 }
0x289f   :  { %v6363_v53 = vpop.f32.mrf.mxu1 }
0x28a0   :  { %v6367_v36 = vsel %vm826_vm4, %v6363_v53, -inf }
0x28a1   :  { %6368 = vmax.xlane.f32.xlu0 %v6367_v36  ;;  %v8225_v55 = vpop.f32.mrf.mxu1 }
0x28b7   :  { %6380 = vrot.lane.b32.xlu0 %v9610_v39, %s8508_s29 }
0x28bb   :  { %6461 = vrot.lane.b32.xlu0 %v9610_v39, %s8510_s15 }
0x28bf   :  { %6457 = vrot.lane.b32.xlu0 %v9626_v25, %s8510_s15 }
0x292a   :  { %v6369_v56 = vpop.xlane.xlu0 %6368 }
0x292b   :  { %v6370_v52 = vsub.f32 %v6363_v53, %v6369_v56 }
0x292d   :  { %v6371_v5 = vmul.f32 1.442695, %v6370_v52 }
0x292e   :  { %v6381_v31 = vpop.permute.xlu0 %6380 }
0x292f   :  { %8453 = vpow2.f32 %v6371_v5  ;;  %8227 = vmatpush3.msra.mxu0 %v6381_v31  ;;  %v7453_v31 = vld [vmem:[%s9837_s5 + $0x3] ss:$0 sm:$0xff] }
0x2930   :  { %8228 = vmatprep.subr.mxu0 %v8503_v6 }
0x2931   :  { %8229 = vmatpush3.msra.mxu0 %v6379_v2 }
0x2932   :  { %8233 = vmatprep.subr.mxu0 %v8503_v6  ;;  %v6462_v54 = vpop.permute.xlu0 %6461 }
0x2936   :  { %v6458_v62 = vpop.permute.xlu0 %6457 }
0x293c   :  { %v8454_v9 = vpop.eup %8453 }
0x293d   :  { %v6373_v58 = vsel %vm826_vm4, %v8454_v9, 0.0 }
0x293e   :  { %6374 = vadd.xlane.f32.xlu1 %v6373_v58 }
0x294f   :  { %6459 = vrot.lane.b32.xlu1 %v9620_v30, %s8510_s15 }
0x29c7   :  { %v6375_v59 = vpop.xlane.xlu1 %6374 }
0x29c8   :  { %8455 = vrcp.f32 %v6375_v59 }
0x29cb   :  { %v6460_v61 = vpop.permute.xlu1 %6459 }
0x29d5   :  { %v8456_v60 = vpop.eup %8455 }
0x29d6   :  { %v6377_v37 = vmul.f32 %v8456_v60, %v8454_v9 }
0x29d8   :  { %8231 = vmatmul.mubr.msk.f32.vlgmr.msra.gmra.mxu0 %vm826_vm4, %v6377_v37 }
0x29d9   :  { %8234 = vmatpush3.xpose.msk.msra.mxu0 %vm156_vm2, %v6462_v54  ;;  %8237 = vmatprep.mubr.msk.f32.mxu0 %vm8504_vm1, %v8503_v6 }
0x29da   :  { %8235 = vmatprep.subr.mxu0 %v8503_v6 }
0x29dd   :  { %8236 = vmatpush3.xpose.msk.msra.mxu0 %vm156_vm2, %v6460_v61 }
0x29de   :  { %8254 = vmatprep.subr.mxu0 %v8503_v6 }
0x29e0   :  { %8238 = vmatmul.mubr.msk.f32.vlgmr.msra.gmra.mxu0 %vm156_vm2, %v6458_v62 }
0x29e1   :  { %8258 = vmatprep.mubr.msk.f32.mxu0 %vm8504_vm1, %v8503_v6 }
0x2a98   :  { %v6453_v63 = vpop.f32.mrf.mxu0 }
0x2a9a   :  { %v8232_v0 = vpop.f32.mrf.mxu0 }
0x2aa0   :  { %v6535_v1 = vpop.f32.mrf.mxu0 }
0x2aa1   :  { %v6539_v3 = vsel %vm826_vm4, %v6535_v1, -inf }
0x2aa2   :  { %6540 = vmax.xlane.f32.xlu1 %v6539_v3  ;;  %v8239_v12 = vpop.f32.mrf.mxu0 }
0x2ab3   :  { %6550 = vrot.lane.b32.xlu1 %v9620_v30, %s8507_s28 }
0x2ab7   :  { %6633 = vrot.lane.b32.xlu1 %v9610_v39, %s9867_s1 }
0x2abb   :  { %6629 = vrot.lane.b32.xlu1 %v9626_v25, %s9867_s1 }
0x2b2b   :  { %v6541_v16 = vpop.xlane.xlu1 %6540 }
0x2b2c   :  { %v6542_v17 = vsub.f32 %v6535_v1, %v6541_v16 }
0x2b2e   :  { %v6543_v18 = vmul.f32 1.442695, %v6542_v17 }
0x2b2f   :  { %v6551_v22 = vpop.permute.xlu1 %6550 }
0x2b30   :  { %8457 = vpow2.f32 %v6543_v18  ;;  %v7462_v18 = vld [vmem:[%s9838_s6 + $0x30] sm:$0xff] }
0x2b33   :  { %v6634_v8 = vpop.permute.xlu1 %6633 }
0x2b37   :  { %v6630_v13 = vpop.permute.xlu1 %6629 }
0x2b3d   :  { %v8458_v10 = vpop.eup %8457 }
0x2b3e   :  { %v6545_v19 = vsel %vm826_vm4, %v8458_v10, 0.0 }
0x2b3f   :  { %6546 = vadd.xlane.f32.xlu0 %v6545_v19  ;;  %v7460_v19 = vld [vmem:[%s9838_s6 + $0x20] sm:$0xff] }
0x2b55   :  { %6552 = vrot.lane.b32.xlu0 %v9610_v39, %s8507_s28  ;;  %s8520_s28 = smov [#allocation2]  }
0x2b56   :  { %s7251_s29 = sshll.u32 %s8520_s28, 4  ;;  %s7252_s29 = int_to_ptr.vmem [resolvable:$true] %s7251_s29 }
0x2b57   :  { %p8486_p1 = scmp.lt.s32.totalorder %s7252_s29, %s7252_s29 }
0x2b59   :  { %6631 = vrot.lane.b32.xlu0 %v9620_v30, %s9867_s1 }
0x2bc8   :  { %v6547_v20 = vpop.xlane.xlu0 %6546 }
0x2bc9   :  { %8459 = vrcp.f32 %v6547_v20  ;;  %v7475_v20 = vld [vmem:[%s9840_s8 + $0x78] sm:$0xff] }
0x2bcc   :  { %v6553_v21 = vpop.permute.xlu0 %6552 }
0x2bcd   :  { %8241 = vmatpush3.msra.mxu1 %v6553_v21  ;;  %v7474_v21 = vld [vmem:[%s9840_s8 + $0x70] sm:$0xff] }
0x2bce   :  { %8242 = vmatprep.subr.mxu1 %v8503_v6 }
0x2bcf   :  { %8243 = vmatpush3.msra.mxu1 %v6551_v22  ;;  %v7473_v22 = vld [vmem:[%s9840_s8 + $0x68] sm:$0xff] }
0x2bd0   :  { %8247 = vmatprep.subr.mxu1 %v8503_v6  ;;  %v6632_v27 = vpop.permute.xlu0 %6631 }
0x2bd6   :  { %v8460_v23 = vpop.eup %8459 }
0x2bd7   :  { %v6549_v24 = vmul.f32 %v8460_v23, %v8458_v10  ;;  %v7461_v10 = vld [vmem:[%s9838_s6 + $0x28] sm:$0xff]  ;;  %v7472_v23 = vld [vmem:[%s9840_s8 + $0x60] sm:$0xff] }
0x2bd9   :  { %8245 = vmatmul.mubr.msk.f32.vlgmr.msra.gmra.mxu1 %vm826_vm4, %v6549_v24 }
0x2bda   :  { %8248 = vmatpush3.xpose.msk.msra.mxu1 %vm156_vm2, %v6634_v8  ;;  %8251 = vmatprep.mubr.msk.f32.mxu1 %vm8504_vm1, %v8503_v6 }
0x2bdb   :  { %8249 = vmatprep.subr.mxu1 %v8503_v6 }
0x2bde   :  { %8250 = vmatpush3.xpose.msk.msra.mxu1 %vm156_vm2, %v6632_v27 }
0x2be1   :  { %8252 = vmatmul.mubr.msk.f32.vlgmr.msra.gmra.mxu1 %vm156_vm2, %v6630_v13 }
0x2c99   :  { %v6625_v28 = vpop.f32.mrf.mxu1 }
0x2c9b   :  { %v8246_v25 = vpop.f32.mrf.mxu1 }
0x2ca1   :  { %v6707_v35 = vpop.f32.mrf.mxu1 }
0x2ca2   :  { %v6711_v4 = vsel %vm826_vm4, %v6707_v35, -inf }
0x2ca3   :  { %6712 = vmax.xlane.f32.xlu0 %v6711_v4  ;;  %v8253_v26 = vpop.f32.mrf.mxu1  ;;  %v7458_v4 = vld [vmem:[%s9842_s10 + $0x4] ss:$0 sm:$0xff] }
0x2cb9   :  { %6724 = vrot.lane.b32.xlu0 %v9610_v39, %s9861_s30 }
0x2cbd   :  { %6102 = vrot.lane.b32.xlu0 %v9596_v7, %s8517_s21 }
0x2cc1   :  { %6802 = vrot.lane.b32.xlu0 %v6453_v63, %s8517_s21 }
0x2cc5   :  { %6806 = vrot.lane.b32.xlu0 %v6625_v28, %s9866_s20 }
0x2d2c   :  { %v6713_v40 = vpop.xlane.xlu0 %6712 }
0x2d2d   :  { %v6714_v11 = vsub.f32 %v6707_v35, %v6713_v40  ;;  %v7459_v40 = vld [vmem:[%s9843_s11 + $0x4] ss:$0 sm:$0xff] }
0x2d2f   :  { %v6715_v14 = vmul.f32 1.442695, %v6714_v11 }
0x2d30   :  { %v6725_v42 = vpop.permute.xlu0 %6724 }
0x2d31   :  { %8461 = vpow2.f32 %v6715_v14  ;;  %8255 = vmatpush3.msra.mxu0 %v6725_v42 }
0x2d32   :  { %8256 = vmatprep.subr.mxu0 %v8503_v6 }
0x2d34   :  { %v6103_v44 = vpop.permute.xlu0 %6102 }
0x2d35   :  { %v6113_v46 = vsel %vm156_vm2, %v9594_v57, %v6103_v44  ;;  %v7449_v57 = vld [vmem:[%s9836_s4 + $0x68] sm:$0xff] }
0x2d36   :  { %v7469_v44 = vld [vmem:[%s9840_s8 + $0x48] sm:$0xff] }
0x2d38   :  { %v6803_v53 = vpop.permute.xlu0 %6802 }
0x2d39   :  { %v6813_v55 = vsel %vm156_vm2, %v9661_v49, %v6803_v53 }
0x2d3c   :  { %v6807_v36 = vpop.permute.xlu0 %6806 }
0x2d3d   :  { %v6814_v56 = vsel %vm826_vm4, %v6813_v55, %v6807_v36 }
0x2d3e   :  { %v8462_v43 = vpop.eup %8461 }
0x2d3f   :  { %v6717_v38 = vsel %vm826_vm4, %v8462_v43, 0.0 }
0x2d40   :  { %6718 = vadd.xlane.f32.xlu1 %v6717_v38 }
0x2d51   :  { %6722 = vrot.lane.b32.xlu1 %v9620_v30, %s9861_s30 }
0x2d55   :  { %6106 = vrot.lane.b32.xlu1 %v9598_v15, %s9866_s20  ;;  %v7451_v15 = vld [vmem:[%s9836_s4 + $0x78] sm:$0xff] }
0x2d59   :  { %6110 = vrot.lane.b32.xlu1 %v9633_v29, %s8519_s23  ;;  %v7450_v29 = vld [vmem:[%s9836_s4 + $0x70] sm:$0xff] }
0x2dc9   :  { %v6719_v7 = vpop.xlane.xlu1 %6718 }
0x2dca   :  { %8463 = vrcp.f32 %v6719_v7 }
0x2dcd   :  { %v6723_v39 = vpop.permute.xlu1 %6722 }
0x2dce   :  { %8257 = vmatpush3.msra.mxu0 %v6723_v39  ;;  %v7471_v39 = vld [vmem:[%s9840_s8 + $0x58] sm:$0xff] }
0x2dcf   :  { %8261 = vmatprep.subr.mxu0 %v7451_v15 }
0x2dd1   :  { %v6107_v51 = vpop.permute.xlu1 %6106 }
0x2dd2   :  { %v6114_v30 = vsel %vm826_vm4, %v6113_v46, %v6107_v51  ;;  %v7470_v51 = vld [vmem:[%s9840_s8 + $0x50] sm:$0xff] }
0x2dd5   :  { %v6111_v45 = vpop.permute.xlu1 %6110 }
0x2dd6   :  { %v6115_v32 = vsel %vm828_vm5, %v6114_v30, %v6111_v45  ;;  %v7465_v45 = vld [vmem:[%s9839_s7 + $0x1] ss:$0 sm:$0xff] }
0x2dd7   :  { %v8464_v6 = vpop.eup %8463 }
0x2dd8   :  { %v6721_v33 = vmul.f32 %v8464_v6, %v8462_v43  ;;  %v7468_v6 = vld [vmem:[%s9840_s8 + $0x40] sm:$0xff] }
0x2dda   :  { %8259 = vmatmul.mubr.msk.f32.vlgmr.msra.gmra.mxu0 %vm826_vm4, %v6721_v33 }
0x2ddb   :  { %8269 = vmatprep.mubr.msk.f32.mxu0 %vm71_vm0, %v6115_v32  ;;  %8262 = vmatpush3.msra.mxu0 %v7451_v15 }
0x2ddc   :  { %8263 = vmatprep.subr.mxu0 %v7450_v29 }
0x2ddd   :  { %8264 = vmatpush3.msra.mxu0 %v7450_v29 }
0x2dde   :  { %8265 = vmatprep.subr.mxu0 %v7449_v57 }
0x2ddf   :  { %8266 = vmatpush3.msra.mxu0 %v7449_v57  ;;  %v7477_v57 = vld [vmem:[%s9841_s9 + $0x1] ss:$0 sm:$0xff] }
0x2de0   :  { %8267 = vmatprep.subr.mxu0 %v7448_v47 }
0x2de1   :  { %8268 = vmatpush3.msra.mxu0 %v7448_v47 }
0x2de2   :  { %8283 = vmatprep.subr.mxu0 %v7475_v20 }
0x2e9a   :  { %v6797_v48 = vpop.f32.mrf.mxu0 }
0x2e9b   :  { %6810 = vrot.lane.b32.xlu1 %v6797_v48, %s8519_s23 }
0x2e9c   :  { %v8260_v50 = vpop.f32.mrf.mxu0 }
0x2f0d   :  { %v6811_v52 = vpop.permute.xlu1 %6810 }
0x2f0e   :  { %v6815_v5 = vsel %vm828_vm5, %v6814_v56, %v6811_v52 }
0x2f0f   :  { %8270 = vmatmul.mubr.msk.f32.vlgmr.msra.gmra.mxu0 %vm71_vm0, %v6815_v5 }
0x2f10   :  { %8284 = vmatpush3.msra.mxu0 %v7475_v20 }
0x2f11   :  { %8285 = vmatprep.subr.mxu0 %v7474_v21 }
0x2f12   :  { %8286 = vmatpush3.msra.mxu0 %v7474_v21 }
0x2f13   :  { %8287 = vmatprep.subr.mxu0 %v7473_v22 }
0x2f14   :  { %8288 = vmatpush3.msra.mxu0 %v7473_v22 }
0x2f15   :  { %8289 = vmatprep.subr.mxu0 %v7472_v23 }
0x2f16   :  { %8290 = vmatpush3.msra.mxu0 %v7472_v23 }
0x2f17   :  { %8291 = vmatprep.subr.mxu0 %v7471_v39 }
0x2f18   :  { %8292 = vmatpush3.msra.mxu0 %v7471_v39 }
0x2f19   :  { %8293 = vmatprep.subr.mxu0 %v7470_v51 }
0x2f1a   :  { %8294 = vmatpush3.msra.mxu0 %v7470_v51  ;;  %v7484_v51 = vld [vmem:[%s9844_s12] ss:$0 sm:$0xff] }
0x2f1b   :  { %8295 = vmatprep.subr.mxu0 %v7469_v44 }
0x2f1c   :  { %8296 = vmatpush3.msra.mxu0 %v7469_v44 }
0x2f1d   :  { %8297 = vmatprep.subr.mxu0 %v7468_v6 }
0x2f1e   :  { %8298 = vmatpush3.msra.mxu0 %v7468_v6 }
0x2fcf   :  { %v8271_v2 = vpop.f32.mrf.mxu0 }
0x2fd0   :  { %v6907_v9 = vadd.f32 %v8271_v2, %v7453_v31 }
0x2fd1   :  { %v6901_v58 = vpop.f32.mrf.mxu0 }
0x2fd2   :  { %v6911_v59 = vadd.f32 %v6907_v9, %v9487_v34  ;;  %v6902_v60 = vadd.f32 %v7453_v31, %v6901_v58 }
0x2fd4   :  { %v6910_v37 = vadd.f32 %v6902_v60, %v9485_v41  ;;  %v6919_v49 = vsel %vm71_vm0, %v6911_v59, 0.0  ;;  %v7463_v41 = vld [vmem:[%s9838_s6 + $0x38] sm:$0xff]  ;;  %s8481_s6 = scalar_lea.vmem %s7252_s29, 256 }
0x2fd5   :  { %6920 = vadd.xlane.f32.xlu1 %v6919_v49  ;;  %8272 = vmatprep.subr.mxu1 %v7463_v41  ;;  %p8482_p0 = scmp.ne.s32.totalorder %s7252_s29, %s8481_s6  ;;  %p8487_p2 = scmp.lt.s32.totalorder %s8481_s6, %s8481_s6 }
0x2fd6   :  { %v6916_v54 = vsel %vm71_vm0, %v6910_v37, 0.0  ;;  %8273 = vmatpush3.msra.mxu1 %v7463_v41  ;;  %v7483_v41 = vld [vmem:[%s9843_s11 + $0x5] ss:$0 sm:$0xff] }
0x2fd7   :  { %6917 = vadd.xlane.f32.xlu0 %v6916_v54  ;;  %8274 = vmatprep.subr.mxu1 %v7462_v18  ;;  %p8488_p3 = por %p8487_p2, %p8486_p1 }
0x2fd8   :  { %8275 = vmatpush3.msra.mxu1 %v7462_v18 }
0x2fd9   :  { %8276 = vmatprep.subr.mxu1 %v7461_v10  ;;  %p8489_p4 = pnand %p8488_p3, %p8482_p0 }
0x2fda   :  { %8277 = vmatpush3.msra.mxu1 %v7461_v10 }
0x2fdb   :  { %8278 = vmatprep.subr.mxu1 %v7460_v19 }
0x2fdc   :  { %8279 = vmatpush3.msra.mxu1 %v7460_v19 }
0x305e   :  { %v6921_v61 = vpop.xlane.xlu1 %6920 }
0x305f   :  { %v6923_v62 = vmul.f32 0.03125, %v6921_v61 }
0x3060   :  { %v6918_v63 = vpop.xlane.xlu0 %6917 }
0x3061   :  { %v6922_v0 = vmul.f32 0.03125, %v6918_v63  ;;  %v6925_v1 = vsub.f32 %v6911_v59, %v6923_v62 }
0x3063   :  { %v6924_v3 = vsub.f32 %v6910_v37, %v6922_v0  ;;  %v6927_v17 = vmul.f32 %v6925_v1, %v6925_v1 }
0x3065   :  { %v6926_v12 = vmul.f32 %v6924_v3, %v6924_v3  ;;  %v6931_v34 = vsel %vm71_vm0, %v6927_v17, 0.0 }
0x3067   :  { %v6928_v16 = vsel %vm71_vm0, %v6926_v12, 0.0 }
0x3068   :  { %6929 = vadd.xlane.f32.xlu0 %v6928_v16  ;;  %v7482_v16 = vld [vmem:[%s9842_s10 + $0x5] ss:$0 sm:$0xff] }
0x306c   :  { %6932 = vadd.xlane.f32.xlu0 %v6931_v34 }
0x30f1   :  { %v6930_v24 = vpop.xlane.xlu0 %6929 }
0x30f2   :  { %v6934_v8 = vmul.f32 0.03125, %v6930_v24 }
0x30f4   :  { %v6936_v27 = vadd.f32 1e-05, %v6934_v8 }
0x30f5   :  { %v6933_v13 = vpop.xlane.xlu0 %6932 }
0x30f6   :  { %8465 = vrsqrt.f32 %v6936_v27  ;;  %v6935_v28 = vmul.f32 0.03125, %v6933_v13 }
0x30f8   :  { %v6937_v25 = vadd.f32 1e-05, %v6935_v28 }
0x30fa   :  { %8467 = vrsqrt.f32 %v6937_v25 }
0x3103   :  { %v8466_v35 = vpop.eup %8465 }
0x3104   :  { %v6940_v26 = vmul.f32 %v8466_v35, %v6924_v3 }
0x3106   :  { %v6948_v11 = vmul.f32 %v7458_v4, %v6940_v26 }
0x3107   :  { %v8468_v14 = vpop.eup %8467 }
0x3108   :  { %v6941_v42 = vmul.f32 %v8468_v14, %v6925_v1  ;;  %v6956_v43 = vadd.f32 %v7459_v40, %v6948_v11 }
0x310a   :  { %v6949_v38 = vmul.f32 %v7458_v4, %v6941_v42  ;;  %8280 = vmatprep.mubr.msk.f32.mxu1 %vm71_vm0, %v6956_v43 }
0x310c   :  { %v6957_v7 = vadd.f32 %v7459_v40, %v6949_v38 }
0x310e   :  { %8281 = vmatmul.mubr.msk.f32.vlgmr.msra.gmra.mxu1 %vm71_vm0, %v6957_v7 }
0x31ce   :  { %v8282_v46 = vpop.f32.mrf.mxu1 }
0x31cf   :  { %v7049_v33 = vadd.f32 %v8282_v46, %v7465_v45 }
0x31d0   :  { %v7043_v30 = vpop.f32.mrf.mxu1 }
0x31d1   :  { %v7044_v32 = vadd.f32 %v7465_v45, %v7043_v30  ;;  %v7053_v29 = vmax.f32 %v7049_v33, 0.0  ;;  %v7485_v45 = vld [vmem:[%s9845_s13] ss:$0 sm:$0xff] }
0x31d3   :  { %v7052_v15 = vmax.f32 %v7044_v32, 0.0 }
0x31d5   :  { %8299 = vmatprep.mubr.msk.f32.mxu0 %vm3504_vm6, %v7052_v15 }
0x31d6   :  { %8300 = vmatmul.mubr.msk.f32.vlgmr.msra.gmra.mxu0 %vm3504_vm6, %v7053_v29 }
0x3296   :  { %v8301_v47 = vpop.f32.mrf.mxu0 }
0x3297   :  { %v7149_v48 = vadd.f32 %v8301_v47, %v7477_v57 }
0x3298   :  { %v7143_v50 = vpop.f32.mrf.mxu0 }
0x3299   :  { %v7153_v53 = vadd.f32 %v7149_v48, %v6957_v7  ;;  %v7144_v36 = vadd.f32 %v7477_v57, %v7143_v50 }
0x329b   :  { %v7152_v55 = vadd.f32 %v7144_v36, %v6956_v43  ;;  %v7161_v56 = vsel %vm71_vm0, %v7153_v53, 0.0 }
0x329c   :  { %7162 = vadd.xlane.f32.xlu0 %v7161_v56 }
0x329d   :  { %v7158_v52 = vsel %vm71_vm0, %v7152_v55, 0.0 }
0x329e   :  { %7159 = vadd.xlane.f32.xlu1 %v7158_v52 }
0x3325   :  { %v7163_v5 = vpop.xlane.xlu0 %7162 }
0x3326   :  { %v7165_v31 = vmul.f32 0.03125, %v7163_v5 }
0x3327   :  { %v7160_v2 = vpop.xlane.xlu1 %7159 }
0x3328   :  { %v7167_v9 = vsub.f32 %v7153_v53, %v7165_v31  ;;  %v7164_v58 = vmul.f32 0.03125, %v7160_v2 }
0x332a   :  { %v7166_v59 = vsub.f32 %v7152_v55, %v7164_v58  ;;  %v7169_v60 = vmul.f32 %v7167_v9, %v7167_v9 }
0x332c   :  { %v7173_v37 = vsel %vm71_vm0, %v7169_v60, 0.0  ;;  %v7168_v49 = vmul.f32 %v7166_v59, %v7166_v59 }
0x332d   :  { %7174 = vadd.xlane.f32.xlu0 %v7173_v37 }
0x332e   :  { %v7170_v54 = vsel %vm71_vm0, %v7168_v49, 0.0 }
0x332f   :  { %7171 = vadd.xlane.f32.xlu1 %v7170_v54 }
0x33b6   :  { %v7175_v61 = vpop.xlane.xlu0 %7174 }
0x33b7   :  { %v7177_v62 = vmul.f32 0.03125, %v7175_v61 }
0x33b8   :  { %v7172_v63 = vpop.xlane.xlu1 %7171 }
0x33b9   :  { %v7179_v0 = vadd.f32 1e-05, %v7177_v62  ;;  %v7176_v1 = vmul.f32 0.03125, %v7172_v63 }
0x33bb   :  { %8469 = vrsqrt.f32 %v7179_v0  ;;  %v7178_v3 = vadd.f32 1e-05, %v7176_v1 }
0x33bd   :  { %8471 = vrsqrt.f32 %v7178_v3 }
0x33c8   :  { %v8470_v12 = vpop.eup %8469 }
0x33c9   :  { %v7183_v17 = vmul.f32 %v8470_v12, %v7167_v9 }
0x33ca   :  { %v8472_v34 = vpop.eup %8471 }
0x33cb   :  { %v7191_v18 = vmul.f32 %v7482_v16, %v7183_v17  ;;  %v7182_v10 = vmul.f32 %v8472_v34, %v7166_v59 }
0x33cd   :  { %v7199_v19 = vadd.f32 %v7483_v41, %v7191_v18  ;;  %v7190_v20 = vmul.f32 %v7482_v16, %v7182_v10 }
0x33cf   :  { %v7205_v21 = vsel %vm71_vm0, %v7199_v19, 0.0  ;;  %v7198_v22 = vadd.f32 %v7483_v41, %v7190_v20 }
0x33d0   :  { %7206 = vadd.xlane.f32.xlu0 %v7205_v21 }
0x33d1   :  { %v7202_v23 = vsel %vm71_vm0, %v7198_v22, 0.0 }
0x33d2   :  { %7203 = vadd.xlane.f32.xlu1 %v7202_v23 }
0x3459   :  { %v7207_v24 = vpop.xlane.xlu0 %7206 }
0x345a   :  { %v7209_v8 = vmul.f32 0.03125, %v7207_v24 }
0x345b   :  { %v7204_v27 = vpop.xlane.xlu1 %7203 }
0x345c   :  { %v7211_v13 = vsub.f32 %v7199_v19, %v7209_v8  ;;  %v7208_v28 = vmul.f32 0.03125, %v7204_v27 }
0x345e   :  { %v7210_v25 = vsub.f32 %v7198_v22, %v7208_v28  ;;  %v7213_v35 = vmul.f32 %v7211_v13, %v7211_v13 }
0x3460   :  { %v7217_v4 = vsel %vm71_vm0, %v7213_v35, 0.0  ;;  %v7212_v26 = vmul.f32 %v7210_v25, %v7210_v25 }
0x3461   :  { %7218 = vadd.xlane.f32.xlu0 %v7217_v4 }
0x3462   :  { %v7214_v40 = vsel %vm71_vm0, %v7212_v26, 0.0 }
0x3463   :  { %7215 = vadd.xlane.f32.xlu1 %v7214_v40 }
0x34ea   :  { %v7219_v11 = vpop.xlane.xlu0 %7218 }
0x34eb   :  { %v7221_v14 = vmul.f32 0.03125, %v7219_v11 }
0x34ec   :  { %v7216_v42 = vpop.xlane.xlu1 %7215 }
0x34ed   :  { %v7223_v43 = vadd.f32 1e-05, %v7221_v14  ;;  %v7220_v38 = vmul.f32 0.03125, %v7216_v42 }
0x34ef   :  { %8473 = vrsqrt.f32 %v7223_v43  ;;  %v7222_v7 = vadd.f32 1e-05, %v7220_v38 }
0x34f1   :  { %8475 = vrsqrt.f32 %v7222_v7 }
0x34fc   :  { %v8474_v39 = vpop.eup %8473 }
0x34fd   :  { %v7227_v44 = vmul.f32 %v8474_v39, %v7211_v13 }
0x34fe   :  { %v8476_v6 = vpop.eup %8475 }
0x34ff   :  { %v7226_v46 = vmul.f32 %v8476_v6, %v7210_v25  ;;  %v7235_v33 = vmul.f32 %v7484_v51, %v7227_v44 }
0x3501   :  { %v7234_v30 = vmul.f32 %v7484_v51, %v7226_v46  ;;  %v7243_v32 = vadd.f32 %v7485_v45, %v7235_v33 }
0x3503   :  { %v7242_v15 = vadd.f32 %v7485_v45, %v7234_v30  ;;  %7245 = vst.msk [vmem:[#allocation2 + $0x8] sm:$0xff] %vm71_vm0, %v7243_v32 }
0x3505   :  { %7244 = vst.msk [vmem:[#allocation2] sm:$0xff] %vm71_vm0, %v7242_v15 }
0x3506   :  { %8492 = shalt.err (!%p8489_p4)
}
0x3507   :  { %s8521_s12 = smov 128  }
0x3508   :  { %7257 = dma.vmem_to_hbm [thread:$0]  %s7252_s29, 256, %s9846_s14, [#allocation3], %s8521_s12, %s8521_s12, %s8517_s21  }
0x3509   :  { %8501 = dma.done.wait [#allocation3], 256  }
0x350a   :  { %8502 = vsyncadd [#allocation3], 4294967040 }
0x350b   :  { %7261 = vsyncpa [#allocation3], 1 }

</bundles_post_ra>
